<compile_context>
chip_gen: v7x
topology: tpu7x:2x2x1
jax: 0.10.0
libtpu: 0.0.40
codegen_flags: <defaults>
</compile_context>

<pallas_src>
import jax
import jax.numpy as jnp
from jax.experimental import pallas as pl
from jax.experimental.pallas import tpu as pltpu


def _conv1x1_pad1_add_kernel(x_ref, w_ref, b_ref, other_ref, x4_ref, out_ref):
    """Fused conv1x1(pad=1) + bias + other + x4, single invocation.

      x_ref     : (N, Cin, H,  W )  VMEM  un-padded input
      w_ref     : (Cout, Cin)       SMEM  1x1 conv weights (scalars)
      b_ref     : (Cout,)           SMEM  conv bias        (scalars)
      other_ref : (N, Cout, Hp, Wp) VMEM
      x4_ref    : (N, Cout, Hp, Wp) VMEM
      out_ref   : (N, Cout, Hp, Wp) VMEM   (Hp = H + 2, Wp = W + 2)
    """
    N, Cin, H, W = x_ref.shape
    Cout = out_ref.shape[1]

    x = x_ref[...]                                    # (N, Cin, H, W), loaded once

    # Cout / Cin are small static ints -> fully unrolled at trace time.
    for o in range(Cout):
        # Every output pixel (including the 1-pixel padding border, where the
        # conv sees only zeros) gets: bias + other + x4.
        frame = (other_ref[:, o:o + 1, :, :]
                 + x4_ref[:, o:o + 1, :, :]
                 + b_ref[o])                          # (N, 1, Hp, Wp)
        out_ref[:, o:o + 1, :, :] = frame

        # Interior pixels additionally get the 1x1 convolution:
        #   sum_c w[o, c] * x[:, c]   (f32 scalar*vector FMAs on the VPU)
        acc = w_ref[o, 0] * x[:, 0:1, :, :]
        for c in range(1, Cin):
            acc = acc + w_ref[o, c] * x[:, c:c + 1, :, :]   # (N, 1, H, W)

        out_ref[:, o:o + 1, 1:H + 1, 1:W + 1] = (
            frame[:, :, 1:H + 1, 1:W + 1] + acc)


@jax.jit
def model_forward(x1, w1, b1, other, x4):
    """x1: (N, Cin, H, W) NCHW.  w1: (Cout, Cin, 1, 1).  b1: (Cout,).
    other, x4: (N, Cout, H+2, W+2) NCHW.
    Returns v4 = conv1x1_pad1(x1) + other + x4, shape (N, Cout, H+2, W+2)."""
    N, Cin, H, W = x1.shape
    Cout = w1.shape[0]
    Hp, Wp = H + 2, W + 2

    w_m = w1.reshape(Cout, Cin)   # free reshape of the 1x1 kernel

    return pl.pallas_call(
        _conv1x1_pad1_add_kernel,
        out_shape=jax.ShapeDtypeStruct((N, Cout, Hp, Wp), jnp.float32),
        in_specs=[
            pl.BlockSpec(memory_space=pltpu.MemorySpace.VMEM),   # x1 (un-padded)
            pl.BlockSpec(memory_space=pltpu.MemorySpace.SMEM),   # weights
            pl.BlockSpec(memory_space=pltpu.MemorySpace.SMEM),   # bias
            pl.BlockSpec(memory_space=pltpu.MemorySpace.VMEM),   # other
            pl.BlockSpec(memory_space=pltpu.MemorySpace.VMEM),   # x4
        ],
        out_specs=pl.BlockSpec(memory_space=pltpu.MemorySpace.VMEM),
    )(x1, w_m, b1, other, x4)


def _init_conv_params(key, cin, cout):
    # PyTorch Conv2d default init: U(-1/sqrt(fan_in), 1/sqrt(fan_in)) (1x1 kernel)
    kw, kb = jax.random.split(key)
    bound = 1.0 / jnp.sqrt(cin)
    w = jax.random.uniform(kw, (cout, cin, 1, 1), jnp.float32, -bound, bound)
    b = jax.random.uniform(kb, (cout,), jnp.float32, -bound, bound)
    return w, b


if __name__ == "__main__":
    key = jax.random.PRNGKey(0)
    k_x, k_c1, k_other, k_x4 = jax.random.split(key, 4)

    # small shapes consistent with the module: N=2, Cin=6, Cout=16, H=W=16
    N, Cin, Cout, H, W = 2, 6, 16, 16, 16
    x1 = jax.random.normal(k_x, (N, Cin, H, W), jnp.float32)
    w1, b1 = _init_conv_params(k_c1, Cin, Cout)

    out_shape = (N, Cout, H + 2, W + 2)
    other = jax.random.normal(k_other, out_shape, jnp.float32)
    x4 = jax.random.normal(k_x4, out_shape, jnp.float32)

    v4 = model_forward(x1, w1, b1, other, x4)
    jax.block_until_ready(v4)

    # reference check in plain JAX (1x1 conv with padding=1)
    x_pad = jnp.pad(x1, ((0, 0), (0, 0), (1, 1), (1, 1)))
    v1_ref = (jnp.einsum('nchw,oc->nohw', x_pad, w1.reshape(Cout, Cin))
              + b1[None, :, None, None])
    v4_ref = v1_ref + other + x4
    assert v4.shape == out_shape
    assert jnp.max(jnp.abs(v4 - v4_ref)) < 1e-4

    print("KERNEL_OK")
</pallas_src>

<mosaic_0001>
module attributes {stable_mosaic.version = 11 : i64} {
  func.func @_conv1x1_pad1_add_kernel(%arg0: memref<2x6x16x16xf32, #tpu.memory_space<vmem>>, %arg1: memref<16x6xf32, #tpu.memory_space<smem>>, %arg2: memref<16xf32, #tpu.memory_space<smem>>, %arg3: memref<2x16x18x18xf32, #tpu.memory_space<vmem>>, %arg4: memref<2x16x18x18xf32, #tpu.memory_space<vmem>>, %arg5: memref<2x16x18x18xf32, #tpu.memory_space<vmem>>) attributes {dimension_semantics = [], scalar_prefetch = 0 : i64, scratch_operands = 0 : i64, tpu.core_type = #tpu.core_type<tc>} {
    %c0 = arith.constant 0 : index
    %c0_0 = arith.constant 0 : index
    %c0_1 = arith.constant 0 : index
    %c0_2 = arith.constant 0 : index
    %0 = vector.load %arg0[%c0, %c0_0, %c0_1, %c0_2] : memref<2x6x16x16xf32, #tpu.memory_space<vmem>>, vector<2x6x16x16xf32>
    %c0_3 = arith.constant 0 : index
    %c0_4 = arith.constant 0 : index
    %c0_5 = arith.constant 0 : index
    %c0_6 = arith.constant 0 : index
    %1 = vector.load %arg3[%c0_3, %c0_4, %c0_5, %c0_6] : memref<2x16x18x18xf32, #tpu.memory_space<vmem>>, vector<2x1x18x18xf32>
    %c0_7 = arith.constant 0 : index
    %c0_8 = arith.constant 0 : index
    %c0_9 = arith.constant 0 : index
    %c0_10 = arith.constant 0 : index
    %2 = vector.load %arg4[%c0_7, %c0_8, %c0_9, %c0_10] : memref<2x16x18x18xf32, #tpu.memory_space<vmem>>, vector<2x1x18x18xf32>
    %3 = arith.addf %1, %2 : vector<2x1x18x18xf32>
    %c0_11 = arith.constant 0 : index
    %4 = memref.load %arg2[%c0_11] : memref<16xf32, #tpu.memory_space<smem>>
    %5 = vector.broadcast %4 : f32 to vector<2x1x18x18xf32>
    %6 = arith.addf %3, %5 : vector<2x1x18x18xf32>
    %c0_12 = arith.constant 0 : index
    %c0_13 = arith.constant 0 : index
    %c0_14 = arith.constant 0 : index
    %c0_15 = arith.constant 0 : index
    %7 = vector.load %arg5[%c0_12, %c0_13, %c0_14, %c0_15] : memref<2x16x18x18xf32, #tpu.memory_space<vmem>>, vector<2x1x18x18xf32>
    tpu.vector_store %arg5[%c0_12, %c0_13, %c0_14, %c0_15], %6 {strides = array<i32>} : memref<2x16x18x18xf32, #tpu.memory_space<vmem>>, vector<2x1x18x18xf32>,
    %c0_16 = arith.constant 0 : index
    %c0_17 = arith.constant 0 : index
    %8 = memref.load %arg1[%c0_16, %c0_17] : memref<16x6xf32, #tpu.memory_space<smem>>
    %9 = vector.extract_strided_slice %0 {offsets = [0, 0, 0, 0], sizes = [2, 1, 16, 16], strides = [1, 1, 1, 1]} : vector<2x6x16x16xf32> to vector<2x1x16x16xf32>
    %10 = vector.broadcast %8 : f32 to vector<2x1x16x16xf32>
    %11 = arith.mulf %10, %9 : vector<2x1x16x16xf32>
    %c0_18 = arith.constant 0 : index
    %c1 = arith.constant 1 : index
    %12 = memref.load %arg1[%c0_18, %c1] : memref<16x6xf32, #tpu.memory_space<smem>>
    %13 = vector.extract_strided_slice %0 {offsets = [0, 1, 0, 0], sizes = [2, 1, 16, 16], strides = [1, 1, 1, 1]} : vector<2x6x16x16xf32> to vector<2x1x16x16xf32>
    %14 = vector.broadcast %12 : f32 to vector<2x1x16x16xf32>
    %15 = arith.mulf %14, %13 : vector<2x1x16x16xf32>
    %16 = arith.addf %11, %15 : vector<2x1x16x16xf32>
    %c0_19 = arith.constant 0 : index
    %c2 = arith.constant 2 : index
    %17 = memref.load %arg1[%c0_19, %c2] : memref<16x6xf32, #tpu.memory_space<smem>>
    %18 = vector.extract_strided_slice %0 {offsets = [0, 2, 0, 0], sizes = [2, 1, 16, 16], strides = [1, 1, 1, 1]} : vector<2x6x16x16xf32> to vector<2x1x16x16xf32>
    %19 = vector.broadcast %17 : f32 to vector<2x1x16x16xf32>
    %20 = arith.mulf %19, %18 : vector<2x1x16x16xf32>
    %21 = arith.addf %16, %20 : vector<2x1x16x16xf32>
    %c0_20 = arith.constant 0 : index
    %c3 = arith.constant 3 : index
    %22 = memref.load %arg1[%c0_20, %c3] : memref<16x6xf32, #tpu.memory_space<smem>>
    %23 = vector.extract_strided_slice %0 {offsets = [0, 3, 0, 0], sizes = [2, 1, 16, 16], strides = [1, 1, 1, 1]} : vector<2x6x16x16xf32> to vector<2x1x16x16xf32>
    %24 = vector.broadcast %22 : f32 to vector<2x1x16x16xf32>
    %25 = arith.mulf %24, %23 : vector<2x1x16x16xf32>
    %26 = arith.addf %21, %25 : vector<2x1x16x16xf32>
    %c0_21 = arith.constant 0 : index
    %c4 = arith.constant 4 : index
    %27 = memref.load %arg1[%c0_21, %c4] : memref<16x6xf32, #tpu.memory_space<smem>>
    %28 = vector.extract_strided_slice %0 {offsets = [0, 4, 0, 0], sizes = [2, 1, 16, 16], strides = [1, 1, 1, 1]} : vector<2x6x16x16xf32> to vector<2x1x16x16xf32>
    %29 = vector.broadcast %27 : f32 to vector<2x1x16x16xf32>
    %30 = arith.mulf %29, %28 : vector<2x1x16x16xf32>
    %31 = arith.addf %26, %30 : vector<2x1x16x16xf32>
    %c0_22 = arith.constant 0 : index
    %c5 = arith.constant 5 : index
    %32 = memref.load %arg1[%c0_22, %c5] : memref<16x6xf32, #tpu.memory_space<smem>>
    %33 = vector.extract_strided_slice %0 {offsets = [0, 5, 0, 0], sizes = [2, 1, 16, 16], strides = [1, 1, 1, 1]} : vector<2x6x16x16xf32> to vector<2x1x16x16xf32>
    %34 = vector.broadcast %32 : f32 to vector<2x1x16x16xf32>
    %35 = arith.mulf %34, %33 : vector<2x1x16x16xf32>
    %36 = arith.addf %31, %35 : vector<2x1x16x16xf32>
    %37 = vector.extract_strided_slice %6 {offsets = [0, 0, 1, 1], sizes = [2, 1, 16, 16], strides = [1, 1, 1, 1]} : vector<2x1x18x18xf32> to vector<2x1x16x16xf32>
    %38 = arith.addf %37, %36 : vector<2x1x16x16xf32>
    %c0_23 = arith.constant 0 : index
    %c0_24 = arith.constant 0 : index
    %c1_25 = arith.constant 1 : index
    %c1_26 = arith.constant 1 : index
    %39 = vector.load %arg5[%c0_23, %c0_24, %c1_25, %c1_26] : memref<2x16x18x18xf32, #tpu.memory_space<vmem>>, vector<2x1x16x16xf32>
    tpu.vector_store %arg5[%c0_23, %c0_24, %c1_25, %c1_26], %38 {strides = array<i32>} : memref<2x16x18x18xf32, #tpu.memory_space<vmem>>, vector<2x1x16x16xf32>,
    %c0_27 = arith.constant 0 : index
    %c1_28 = arith.constant 1 : index
    %c0_29 = arith.constant 0 : index
    %c0_30 = arith.constant 0 : index
    %40 = vector.load %arg3[%c0_27, %c1_28, %c0_29, %c0_30] : memref<2x16x18x18xf32, #tpu.memory_space<vmem>>, vector<2x1x18x18xf32>
    %c0_31 = arith.constant 0 : index
    %c1_32 = arith.constant 1 : index
    %c0_33 = arith.constant 0 : index
    %c0_34 = arith.constant 0 : index
    %41 = vector.load %arg4[%c0_31, %c1_32, %c0_33, %c0_34] : memref<2x16x18x18xf32, #tpu.memory_space<vmem>>, vector<2x1x18x18xf32>
    %42 = arith.addf %40, %41 : vector<2x1x18x18xf32>
    %c1_35 = arith.constant 1 : index
    %43 = memref.load %arg2[%c1_35] : memref<16xf32, #tpu.memory_space<smem>>
    %44 = vector.broadcast %43 : f32 to vector<2x1x18x18xf32>
    %45 = arith.addf %42, %44 : vector<2x1x18x18xf32>
    %c0_36 = arith.constant 0 : index
    %c1_37 = arith.constant 1 : index
    %c0_38 = arith.constant 0 : index
    %c0_39 = arith.constant 0 : index
    %46 = vector.load %arg5[%c0_36, %c1_37, %c0_38, %c0_39] : memref<2x16x18x18xf32, #tpu.memory_space<vmem>>, vector<2x1x18x18xf32>
    tpu.vector_store %arg5[%c0_36, %c1_37, %c0_38, %c0_39], %45 {strides = array<i32>} : memref<2x16x18x18xf32, #tpu.memory_space<vmem>>, vector<2x1x18x18xf32>,
    %c1_40 = arith.constant 1 : index
    %c0_41 = arith.constant 0 : index
    %47 = memref.load %arg1[%c1_40, %c0_41] : memref<16x6xf32, #tpu.memory_space<smem>>
    %48 = vector.extract_strided_slice %0 {offsets = [0, 0, 0, 0], sizes = [2, 1, 16, 16], strides = [1, 1, 1, 1]} : vector<2x6x16x16xf32> to vector<2x1x16x16xf32>
    %49 = vector.broadcast %47 : f32 to vector<2x1x16x16xf32>
    %50 = arith.mulf %49, %48 : vector<2x1x16x16xf32>
    %c1_42 = arith.constant 1 : index
    %c1_43 = arith.constant 1 : index
    %51 = memref.load %arg1[%c1_42, %c1_43] : memref<16x6xf32, #tpu.memory_space<smem>>
    %52 = vector.extract_strided_slice %0 {offsets = [0, 1, 0, 0], sizes = [2, 1, 16, 16], strides = [1, 1, 1, 1]} : vector<2x6x16x16xf32> to vector<2x1x16x16xf32>
    %53 = vector.broadcast %51 : f32 to vector<2x1x16x16xf32>
    %54 = arith.mulf %53, %52 : vector<2x1x16x16xf32>
    %55 = arith.addf %50, %54 : vector<2x1x16x16xf32>
    %c1_44 = arith.constant 1 : index
    %c2_45 = arith.constant 2 : index
    %56 = memref.load %arg1[%c1_44, %c2_45] : memref<16x6xf32, #tpu.memory_space<smem>>
    %57 = vector.extract_strided_slice %0 {offsets = [0, 2, 0, 0], sizes = [2, 1, 16, 16], strides = [1, 1, 1, 1]} : vector<2x6x16x16xf32> to vector<2x1x16x16xf32>
    %58 = vector.broadcast %56 : f32 to vector<2x1x16x16xf32>
    %59 = arith.mulf %58, %57 : vector<2x1x16x16xf32>
    %60 = arith.addf %55, %59 : vector<2x1x16x16xf32>
    %c1_46 = arith.constant 1 : index
    %c3_47 = arith.constant 3 : index
    %61 = memref.load %arg1[%c1_46, %c3_47] : memref<16x6xf32, #tpu.memory_space<smem>>
    %62 = vector.extract_strided_slice %0 {offsets = [0, 3, 0, 0], sizes = [2, 1, 16, 16], strides = [1, 1, 1, 1]} : vector<2x6x16x16xf32> to vector<2x1x16x16xf32>
    %63 = vector.broadcast %61 : f32 to vector<2x1x16x16xf32>
    %64 = arith.mulf %63, %62 : vector<2x1x16x16xf32>
    %65 = arith.addf %60, %64 : vector<2x1x16x16xf32>
    %c1_48 = arith.constant 1 : index
    %c4_49 = arith.constant 4 : index
    %66 = memref.load %arg1[%c1_48, %c4_49] : memref<16x6xf32, #tpu.memory_space<smem>>
    %67 = vector.extract_strided_slice %0 {offsets = [0, 4, 0, 0], sizes = [2, 1, 16, 16], strides = [1, 1, 1, 1]} : vector<2x6x16x16xf32> to vector<2x1x16x16xf32>
    %68 = vector.broadcast %66 : f32 to vector<2x1x16x16xf32>
    %69 = arith.mulf %68, %67 : vector<2x1x16x16xf32>
    %70 = arith.addf %65, %69 : vector<2x1x16x16xf32>
    %c1_50 = arith.constant 1 : index
    %c5_51 = arith.constant 5 : index
    %71 = memref.load %arg1[%c1_50, %c5_51] : memref<16x6xf32, #tpu.memory_space<smem>>
    %72 = vector.extract_strided_slice %0 {offsets = [0, 5, 0, 0], sizes = [2, 1, 16, 16], strides = [1, 1, 1, 1]} : vector<2x6x16x16xf32> to vector<2x1x16x16xf32>
    %73 = vector.broadcast %71 : f32 to vector<2x1x16x16xf32>
    %74 = arith.mulf %73, %72 : vector<2x1x16x16xf32>
    %75 = arith.addf %70, %74 : vector<2x1x16x16xf32>
    %76 = vector.extract_strided_slice %45 {offsets = [0, 0, 1, 1], sizes = [2, 1, 16, 16], strides = [1, 1, 1, 1]} : vector<2x1x18x18xf32> to vector<2x1x16x16xf32>
    %77 = arith.addf %76, %75 : vector<2x1x16x16xf32>
    %c0_52 = arith.constant 0 : index
    %c1_53 = arith.constant 1 : index
    %c1_54 = arith.constant 1 : index
    %c1_55 = arith.constant 1 : index
    %78 = vector.load %arg5[%c0_52, %c1_53, %c1_54, %c1_55] : memref<2x16x18x18xf32, #tpu.memory_space<vmem>>, vector<2x1x16x16xf32>
    tpu.vector_store %arg5[%c0_52, %c1_53, %c1_54, %c1_55], %77 {strides = array<i32>} : memref<2x16x18x18xf32, #tpu.memory_space<vmem>>, vector<2x1x16x16xf32>,
    %c0_56 = arith.constant 0 : index
    %c2_57 = arith.constant 2 : index
    %c0_58 = arith.constant 0 : index
    %c0_59 = arith.constant 0 : index
    %79 = vector.load %arg3[%c0_56, %c2_57, %c0_58, %c0_59] : memref<2x16x18x18xf32, #tpu.memory_space<vmem>>, vector<2x1x18x18xf32>
    %c0_60 = arith.constant 0 : index
    %c2_61 = arith.constant 2 : index
    %c0_62 = arith.constant 0 : index
    %c0_63 = arith.constant 0 : index
    %80 = vector.load %arg4[%c0_60, %c2_61, %c0_62, %c0_63] : memref<2x16x18x18xf32, #tpu.memory_space<vmem>>, vector<2x1x18x18xf32>
    %81 = arith.addf %79, %80 : vector<2x1x18x18xf32>
    %c2_64 = arith.constant 2 : index
    %82 = memref.load %arg2[%c2_64] : memref<16xf32, #tpu.memory_space<smem>>
    %83 = vector.broadcast %82 : f32 to vector<2x1x18x18xf32>
    %84 = arith.addf %81, %83 : vector<2x1x18x18xf32>
    %c0_65 = arith.constant 0 : index
    %c2_66 = arith.constant 2 : index
    %c0_67 = arith.constant 0 : index
    %c0_68 = arith.constant 0 : index
    %85 = vector.load %arg5[%c0_65, %c2_66, %c0_67, %c0_68] : memref<2x16x18x18xf32, #tpu.memory_space<vmem>>, vector<2x1x18x18xf32>
    tpu.vector_store %arg5[%c0_65, %c2_66, %c0_67, %c0_68], %84 {strides = array<i32>} : memref<2x16x18x18xf32, #tpu.memory_space<vmem>>, vector<2x1x18x18xf32>,
    %c2_69 = arith.constant 2 : index
    %c0_70 = arith.constant 0 : index
    %86 = memref.load %arg1[%c2_69, %c0_70] : memref<16x6xf32, #tpu.memory_space<smem>>
    %87 = vector.extract_strided_slice %0 {offsets = [0, 0, 0, 0], sizes = [2, 1, 16, 16], strides = [1, 1, 1, 1]} : vector<2x6x16x16xf32> to vector<2x1x16x16xf32>
    %88 = vector.broadcast %86 : f32 to vector<2x1x16x16xf32>
    %89 = arith.mulf %88, %87 : vector<2x1x16x16xf32>
    %c2_71 = arith.constant 2 : index
    %c1_72 = arith.constant 1 : index
    %90 = memref.load %arg1[%c2_71, %c1_72] : memref<16x6xf32, #tpu.memory_space<smem>>
    %91 = vector.extract_strided_slice %0 {offsets = [0, 1, 0, 0], sizes = [2, 1, 16, 16], strides = [1, 1, 1, 1]} : vector<2x6x16x16xf32> to vector<2x1x16x16xf32>
    %92 = vector.broadcast %90 : f32 to vector<2x1x16x16xf32>
    %93 = arith.mulf %92, %91 : vector<2x1x16x16xf32>
    %94 = arith.addf %89, %93 : vector<2x1x16x16xf32>
    %c2_73 = arith.constant 2 : index
    %c2_74 = arith.constant 2 : index
    %95 = memref.load %arg1[%c2_73, %c2_74] : memref<16x6xf32, #tpu.memory_space<smem>>
    %96 = vector.extract_strided_slice %0 {offsets = [0, 2, 0, 0], sizes = [2, 1, 16, 16], strides = [1, 1, 1, 1]} : vector<2x6x16x16xf32> to vector<2x1x16x16xf32>
    %97 = vector.broadcast %95 : f32 to vector<2x1x16x16xf32>
    %98 = arith.mulf %97, %96 : vector<2x1x16x16xf32>
    %99 = arith.addf %94, %98 : vector<2x1x16x16xf32>
    %c2_75 = arith.constant 2 : index
    %c3_76 = arith.constant 3 : index
    %100 = memref.load %arg1[%c2_75, %c3_76] : memref<16x6xf32, #tpu.memory_space<smem>>
    %101 = vector.extract_strided_slice %0 {offsets = [0, 3, 0, 0], sizes = [2, 1, 16, 16], strides = [1, 1, 1, 1]} : vector<2x6x16x16xf32> to vector<2x1x16x16xf32>
    %102 = vector.broadcast %100 : f32 to vector<2x1x16x16xf32>
    %103 = arith.mulf %102, %101 : vector<2x1x16x16xf32>
    %104 = arith.addf %99, %103 : vector<2x1x16x16xf32>
    %c2_77 = arith.constant 2 : index
    %c4_78 = arith.constant 4 : index
    %105 = memref.load %arg1[%c2_77, %c4_78] : memref<16x6xf32, #tpu.memory_space<smem>>
    %106 = vector.extract_strided_slice %0 {offsets = [0, 4, 0, 0], sizes = [2, 1, 16, 16], strides = [1, 1, 1, 1]} : vector<2x6x16x16xf32> to vector<2x1x16x16xf32>
    %107 = vector.broadcast %105 : f32 to vector<2x1x16x16xf32>
    %108 = arith.mulf %107, %106 : vector<2x1x16x16xf32>
    %109 = arith.addf %104, %108 : vector<2x1x16x16xf32>
    %c2_79 = arith.constant 2 : index
    %c5_80 = arith.constant 5 : index
    %110 = memref.load %arg1[%c2_79, %c5_80] : memref<16x6xf32, #tpu.memory_space<smem>>
    %111 = vector.extract_strided_slice %0 {offsets = [0, 5, 0, 0], sizes = [2, 1, 16, 16], strides = [1, 1, 1, 1]} : vector<2x6x16x16xf32> to vector<2x1x16x16xf32>
    %112 = vector.broadcast %110 : f32 to vector<2x1x16x16xf32>
    %113 = arith.mulf %112, %111 : vector<2x1x16x16xf32>
    %114 = arith.addf %109, %113 : vector<2x1x16x16xf32>
    %115 = vector.extract_strided_slice %84 {offsets = [0, 0, 1, 1], sizes = [2, 1, 16, 16], strides = [1, 1, 1, 1]} : vector<2x1x18x18xf32> to vector<2x1x16x16xf32>
    %116 = arith.addf %115, %114 : vector<2x1x16x16xf32>
    %c0_81 = arith.constant 0 : index
    %c2_82 = arith.constant 2 : index
    %c1_83 = arith.constant 1 : index
    %c1_84 = arith.constant 1 : index
    %117 = vector.load %arg5[%c0_81, %c2_82, %c1_83, %c1_84] : memref<2x16x18x18xf32, #tpu.memory_space<vmem>>, vector<2x1x16x16xf32>
    tpu.vector_store %arg5[%c0_81, %c2_82, %c1_83, %c1_84], %116 {strides = array<i32>} : memref<2x16x18x18xf32, #tpu.memory_space<vmem>>, vector<2x1x16x16xf32>,
    %c0_85 = arith.constant 0 : index
    %c3_86 = arith.constant 3 : index
    %c0_87 = arith.constant 0 : index
    %c0_88 = arith.constant 0 : index
    %118 = vector.load %arg3[%c0_85, %c3_86, %c0_87, %c0_88] : memref<2x16x18x18xf32, #tpu.memory_space<vmem>>, vector<2x1x18x18xf32>
    %c0_89 = arith.constant 0 : index
    %c3_90 = arith.constant 3 : index
    %c0_91 = arith.constant 0 : index
    %c0_92 = arith.constant 0 : index
    %119 = vector.load %arg4[%c0_89, %c3_90, %c0_91, %c0_92] : memref<2x16x18x18xf32, #tpu.memory_space<vmem>>, vector<2x1x18x18xf32>
    %120 = arith.addf %118, %119 : vector<2x1x18x18xf32>
    %c3_93 = arith.constant 3 : index
    %121 = memref.load %arg2[%c3_93] : memref<16xf32, #tpu.memory_space<smem>>
    %122 = vector.broadcast %121 : f32 to vector<2x1x18x18xf32>
    %123 = arith.addf %120, %122 : vector<2x1x18x18xf32>
    %c0_94 = arith.constant 0 : index
    %c3_95 = arith.constant 3 : index
    %c0_96 = arith.constant 0 : index
    %c0_97 = arith.constant 0 : index
    %124 = vector.load %arg5[%c0_94, %c3_95, %c0_96, %c0_97] : memref<2x16x18x18xf32, #tpu.memory_space<vmem>>, vector<2x1x18x18xf32>
    tpu.vector_store %arg5[%c0_94, %c3_95, %c0_96, %c0_97], %123 {strides = array<i32>} : memref<2x16x18x18xf32, #tpu.memory_space<vmem>>, vector<2x1x18x18xf32>,
    %c3_98 = arith.constant 3 : index
    %c0_99 = arith.constant 0 : index
    %125 = memref.load %arg1[%c3_98, %c0_99] : memref<16x6xf32, #tpu.memory_space<smem>>
    %126 = vector.extract_strided_slice %0 {offsets = [0, 0, 0, 0], sizes = [2, 1, 16, 16], strides = [1, 1, 1, 1]} : vector<2x6x16x16xf32> to vector<2x1x16x16xf32>
    %127 = vector.broadcast %125 : f32 to vector<2x1x16x16xf32>
    %128 = arith.mulf %127, %126 : vector<2x1x16x16xf32>
    %c3_100 = arith.constant 3 : index
    %c1_101 = arith.constant 1 : index
    %129 = memref.load %arg1[%c3_100, %c1_101] : memref<16x6xf32, #tpu.memory_space<smem>>
    %130 = vector.extract_strided_slice %0 {offsets = [0, 1, 0, 0], sizes = [2, 1, 16, 16], strides = [1, 1, 1, 1]} : vector<2x6x16x16xf32> to vector<2x1x16x16xf32>
    %131 = vector.broadcast %129 : f32 to vector<2x1x16x16xf32>
    %132 = arith.mulf %131, %130 : vector<2x1x16x16xf32>
    %133 = arith.addf %128, %132 : vector<2x1x16x16xf32>
    %c3_102 = arith.constant 3 : index
    %c2_103 = arith.constant 2 : index
    %134 = memref.load %arg1[%c3_102, %c2_103] : memref<16x6xf32, #tpu.memory_space<smem>>
    %135 = vector.extract_strided_slice %0 {offsets = [0, 2, 0, 0], sizes = [2, 1, 16, 16], strides = [1, 1, 1, 1]} : vector<2x6x16x16xf32> to vector<2x1x16x16xf32>
    %136 = vector.broadcast %134 : f32 to vector<2x1x16x16xf32>
    %137 = arith.mulf %136, %135 : vector<2x1x16x16xf32>
    %138 = arith.addf %133, %137 : vector<2x1x16x16xf32>
    %c3_104 = arith.constant 3 : index
    %c3_105 = arith.constant 3 : index
    %139 = memref.load %arg1[%c3_104, %c3_105] : memref<16x6xf32, #tpu.memory_space<smem>>
    %140 = vector.extract_strided_slice %0 {offsets = [0, 3, 0, 0], sizes = [2, 1, 16, 16], strides = [1, 1, 1, 1]} : vector<2x6x16x16xf32> to vector<2x1x16x16xf32>
    %141 = vector.broadcast %139 : f32 to vector<2x1x16x16xf32>
    %142 = arith.mulf %141, %140 : vector<2x1x16x16xf32>
    %143 = arith.addf %138, %142 : vector<2x1x16x16xf32>
    %c3_106 = arith.constant 3 : index
    %c4_107 = arith.constant 4 : index
    %144 = memref.load %arg1[%c3_106, %c4_107] : memref<16x6xf32, #tpu.memory_space<smem>>
    %145 = vector.extract_strided_slice %0 {offsets = [0, 4, 0, 0], sizes = [2, 1, 16, 16], strides = [1, 1, 1, 1]} : vector<2x6x16x16xf32> to vector<2x1x16x16xf32>
    %146 = vector.broadcast %144 : f32 to vector<2x1x16x16xf32>
    %147 = arith.mulf %146, %145 : vector<2x1x16x16xf32>
    %148 = arith.addf %143, %147 : vector<2x1x16x16xf32>
    %c3_108 = arith.constant 3 : index
    %c5_109 = arith.constant 5 : index
    %149 = memref.load %arg1[%c3_108, %c5_109] : memref<16x6xf32, #tpu.memory_space<smem>>
    %150 = vector.extract_strided_slice %0 {offsets = [0, 5, 0, 0], sizes = [2, 1, 16, 16], strides = [1, 1, 1, 1]} : vector<2x6x16x16xf32> to vector<2x1x16x16xf32>
    %151 = vector.broadcast %149 : f32 to vector<2x1x16x16xf32>
    %152 = arith.mulf %151, %150 : vector<2x1x16x16xf32>
    %153 = arith.addf %148, %152 : vector<2x1x16x16xf32>
    %154 = vector.extract_strided_slice %123 {offsets = [0, 0, 1, 1], sizes = [2, 1, 16, 16], strides = [1, 1, 1, 1]} : vector<2x1x18x18xf32> to vector<2x1x16x16xf32>
    %155 = arith.addf %154, %153 : vector<2x1x16x16xf32>
    %c0_110 = arith.constant 0 : index
    %c3_111 = arith.constant 3 : index
    %c1_112 = arith.constant 1 : index
    %c1_113 = arith.constant 1 : index
    %156 = vector.load %arg5[%c0_110, %c3_111, %c1_112, %c1_113] : memref<2x16x18x18xf32, #tpu.memory_space<vmem>>, vector<2x1x16x16xf32>
    tpu.vector_store %arg5[%c0_110, %c3_111, %c1_112, %c1_113], %155 {strides = array<i32>} : memref<2x16x18x18xf32, #tpu.memory_space<vmem>>, vector<2x1x16x16xf32>,
    %c0_114 = arith.constant 0 : index
    %c4_115 = arith.constant 4 : index
    %c0_116 = arith.constant 0 : index
    %c0_117 = arith.constant 0 : index
    %157 = vector.load %arg3[%c0_114, %c4_115, %c0_116, %c0_117] : memref<2x16x18x18xf32, #tpu.memory_space<vmem>>, vector<2x1x18x18xf32>
    %c0_118 = arith.constant 0 : index
    %c4_119 = arith.constant 4 : index
    %c0_120 = arith.constant 0 : index
    %c0_121 = arith.constant 0 : index
    %158 = vector.load %arg4[%c0_118, %c4_119, %c0_120, %c0_121] : memref<2x16x18x18xf32, #tpu.memory_space<vmem>>, vector<2x1x18x18xf32>
    %159 = arith.addf %157, %158 : vector<2x1x18x18xf32>
    %c4_122 = arith.constant 4 : index
    %160 = memref.load %arg2[%c4_122] : memref<16xf32, #tpu.memory_space<smem>>
    %161 = vector.broadcast %160 : f32 to vector<2x1x18x18xf32>
    %162 = arith.addf %159, %161 : vector<2x1x18x18xf32>
    %c0_123 = arith.constant 0 : index
    %c4_124 = arith.constant 4 : index
    %c0_125 = arith.constant 0 : index
    %c0_126 = arith.constant 0 : index
    %163 = vector.load %arg5[%c0_123, %c4_124, %c0_125, %c0_126] : memref<2x16x18x18xf32, #tpu.memory_space<vmem>>, vector<2x1x18x18xf32>
    tpu.vector_store %arg5[%c0_123, %c4_124, %c0_125, %c0_126], %162 {strides = array<i32>} : memref<2x16x18x18xf32, #tpu.memory_space<vmem>>, vector<2x1x18x18xf32>,
    %c4_127 = arith.constant 4 : index
    %c0_128 = arith.constant 0 : index
    %164 = memref.load %arg1[%c4_127, %c0_128] : memref<16x6xf32, #tpu.memory_space<smem>>
    %165 = vector.extract_strided_slice %0 {offsets = [0, 0, 0, 0], sizes = [2, 1, 16, 16], strides = [1, 1, 1, 1]} : vector<2x6x16x16xf32> to vector<2x1x16x16xf32>
    %166 = vector.broadcast %164 : f32 to vector<2x1x16x16xf32>
    %167 = arith.mulf %166, %165 : vector<2x1x16x16xf32>
    %c4_129 = arith.constant 4 : index
    %c1_130 = arith.constant 1 : index
    %168 = memref.load %arg1[%c4_129, %c1_130] : memref<16x6xf32, #tpu.memory_space<smem>>
    %169 = vector.extract_strided_slice %0 {offsets = [0, 1, 0, 0], sizes = [2, 1, 16, 16], strides = [1, 1, 1, 1]} : vector<2x6x16x16xf32> to vector<2x1x16x16xf32>
    %170 = vector.broadcast %168 : f32 to vector<2x1x16x16xf32>
    %171 = arith.mulf %170, %169 : vector<2x1x16x16xf32>
    %172 = arith.addf %167, %171 : vector<2x1x16x16xf32>
    %c4_131 = arith.constant 4 : index
    %c2_132 = arith.constant 2 : index
    %173 = memref.load %arg1[%c4_131, %c2_132] : memref<16x6xf32, #tpu.memory_space<smem>>
    %174 = vector.extract_strided_slice %0 {offsets = [0, 2, 0, 0], sizes = [2, 1, 16, 16], strides = [1, 1, 1, 1]} : vector<2x6x16x16xf32> to vector<2x1x16x16xf32>
    %175 = vector.broadcast %173 : f32 to vector<2x1x16x16xf32>
    %176 = arith.mulf %175, %174 : vector<2x1x16x16xf32>
    %177 = arith.addf %172, %176 : vector<2x1x16x16xf32>
    %c4_133 = arith.constant 4 : index
    %c3_134 = arith.constant 3 : index
    %178 = memref.load %arg1[%c4_133, %c3_134] : memref<16x6xf32, #tpu.memory_space<smem>>
    %179 = vector.extract_strided_slice %0 {offsets = [0, 3, 0, 0], sizes = [2, 1, 16, 16], strides = [1, 1, 1, 1]} : vector<2x6x16x16xf32> to vector<2x1x16x16xf32>
    %180 = vector.broadcast %178 : f32 to vector<2x1x16x16xf32>
    %181 = arith.mulf %180, %179 : vector<2x1x16x16xf32>
    %182 = arith.addf %177, %181 : vector<2x1x16x16xf32>
    %c4_135 = arith.constant 4 : index
    %c4_136 = arith.constant 4 : index
    %183 = memref.load %arg1[%c4_135, %c4_136] : memref<16x6xf32, #tpu.memory_space<smem>>
    %184 = vector.extract_strided_slice %0 {offsets = [0, 4, 0, 0], sizes = [2, 1, 16, 16], strides = [1, 1, 1, 1]} : vector<2x6x16x16xf32> to vector<2x1x16x16xf32>
    %185 = vector.broadcast %183 : f32 to vector<2x1x16x16xf32>
    %186 = arith.mulf %185, %184 : vector<2x1x16x16xf32>
    %187 = arith.addf %182, %186 : vector<2x1x16x16xf32>
    %c4_137 = arith.constant 4 : index
    %c5_138 = arith.constant 5 : index
    %188 = memref.load %arg1[%c4_137, %c5_138] : memref<16x6xf32, #tpu.memory_space<smem>>
    %189 = vector.extract_strided_slice %0 {offsets = [0, 5, 0, 0], sizes = [2, 1, 16, 16], strides = [1, 1, 1, 1]} : vector<2x6x16x16xf32> to vector<2x1x16x16xf32>
    %190 = vector.broadcast %188 : f32 to vector<2x1x16x16xf32>
    %191 = arith.mulf %190, %189 : vector<2x1x16x16xf32>
    %192 = arith.addf %187, %191 : vector<2x1x16x16xf32>
    %193 = vector.extract_strided_slice %162 {offsets = [0, 0, 1, 1], sizes = [2, 1, 16, 16], strides = [1, 1, 1, 1]} : vector<2x1x18x18xf32> to vector<2x1x16x16xf32>
    %194 = arith.addf %193, %192 : vector<2x1x16x16xf32>
    %c0_139 = arith.constant 0 : index
    %c4_140 = arith.constant 4 : index
    %c1_141 = arith.constant 1 : index
    %c1_142 = arith.constant 1 : index
    %195 = vector.load %arg5[%c0_139, %c4_140, %c1_141, %c1_142] : memref<2x16x18x18xf32, #tpu.memory_space<vmem>>, vector<2x1x16x16xf32>
    tpu.vector_store %arg5[%c0_139, %c4_140, %c1_141, %c1_142], %194 {strides = array<i32>} : memref<2x16x18x18xf32, #tpu.memory_space<vmem>>, vector<2x1x16x16xf32>,
    %c0_143 = arith.constant 0 : index
    %c5_144 = arith.constant 5 : index
    %c0_145 = arith.constant 0 : index
    %c0_146 = arith.constant 0 : index
    %196 = vector.load %arg3[%c0_143, %c5_144, %c0_145, %c0_146] : memref<2x16x18x18xf32, #tpu.memory_space<vmem>>, vector<2x1x18x18xf32>
    %c0_147 = arith.constant 0 : index
    %c5_148 = arith.constant 5 : index
    %c0_149 = arith.constant 0 : index
    %c0_150 = arith.constant 0 : index
    %197 = vector.load %arg4[%c0_147, %c5_148, %c0_149, %c0_150] : memref<2x16x18x18xf32, #tpu.memory_space<vmem>>, vector<2x1x18x18xf32>
    %198 = arith.addf %196, %197 : vector<2x1x18x18xf32>
    %c5_151 = arith.constant 5 : index
    %199 = memref.load %arg2[%c5_151] : memref<16xf32, #tpu.memory_space<smem>>
    %200 = vector.broadcast %199 : f32 to vector<2x1x18x18xf32>
    %201 = arith.addf %198, %200 : vector<2x1x18x18xf32>
    %c0_152 = arith.constant 0 : index
    %c5_153 = arith.constant 5 : index
    %c0_154 = arith.constant 0 : index
    %c0_155 = arith.constant 0 : index
    %202 = vector.load %arg5[%c0_152, %c5_153, %c0_154, %c0_155] : memref<2x16x18x18xf32, #tpu.memory_space<vmem>>, vector<2x1x18x18xf32>
    tpu.vector_store %arg5[%c0_152, %c5_153, %c0_154, %c0_155], %201 {strides = array<i32>} : memref<2x16x18x18xf32, #tpu.memory_space<vmem>>, vector<2x1x18x18xf32>,
    %c5_156 = arith.constant 5 : index
    %c0_157 = arith.constant 0 : index
    %203 = memref.load %arg1[%c5_156, %c0_157] : memref<16x6xf32, #tpu.memory_space<smem>>
    %204 = vector.extract_strided_slice %0 {offsets = [0, 0, 0, 0], sizes = [2, 1, 16, 16], strides = [1, 1, 1, 1]} : vector<2x6x16x16xf32> to vector<2x1x16x16xf32>
    %205 = vector.broadcast %203 : f32 to vector<2x1x16x16xf32>
    %206 = arith.mulf %205, %204 : vector<2x1x16x16xf32>
    %c5_158 = arith.constant 5 : index
    %c1_159 = arith.constant 1 : index
    %207 = memref.load %arg1[%c5_158, %c1_159] : memref<16x6xf32, #tpu.memory_space<smem>>
    %208 = vector.extract_strided_slice %0 {offsets = [0, 1, 0, 0], sizes = [2, 1, 16, 16], strides = [1, 1, 1, 1]} : vector<2x6x16x16xf32> to vector<2x1x16x16xf32>
    %209 = vector.broadcast %207 : f32 to vector<2x1x16x16xf32>
    %210 = arith.mulf %209, %208 : vector<2x1x16x16xf32>
    %211 = arith.addf %206, %210 : vector<2x1x16x16xf32>
    %c5_160 = arith.constant 5 : index
    %c2_161 = arith.constant 2 : index
    %212 = memref.load %arg1[%c5_160, %c2_161] : memref<16x6xf32, #tpu.memory_space<smem>>
    %213 = vector.extract_strided_slice %0 {offsets = [0, 2, 0, 0], sizes = [2, 1, 16, 16], strides = [1, 1, 1, 1]} : vector<2x6x16x16xf32> to vector<2x1x16x16xf32>
    %214 = vector.broadcast %212 : f32 to vector<2x1x16x16xf32>
    %215 = arith.mulf %214, %213 : vector<2x1x16x16xf32>
    %216 = arith.addf %211, %215 : vector<2x1x16x16xf32>
    %c5_162 = arith.constant 5 : index
    %c3_163 = arith.constant 3 : index
    %217 = memref.load %arg1[%c5_162, %c3_163] : memref<16x6xf32, #tpu.memory_space<smem>>
    %218 = vector.extract_strided_slice %0 {offsets = [0, 3, 0, 0], sizes = [2, 1, 16, 16], strides = [1, 1, 1, 1]} : vector<2x6x16x16xf32> to vector<2x1x16x16xf32>
    %219 = vector.broadcast %217 : f32 to vector<2x1x16x16xf32>
    %220 = arith.mulf %219, %218 : vector<2x1x16x16xf32>
    %221 = arith.addf %216, %220 : vector<2x1x16x16xf32>
    %c5_164 = arith.constant 5 : index
    %c4_165 = arith.constant 4 : index
    %222 = memref.load %arg1[%c5_164, %c4_165] : memref<16x6xf32, #tpu.memory_space<smem>>
    %223 = vector.extract_strided_slice %0 {offsets = [0, 4, 0, 0], sizes = [2, 1, 16, 16], strides = [1, 1, 1, 1]} : vector<2x6x16x16xf32> to vector<2x1x16x16xf32>
    %224 = vector.broadcast %222 : f32 to vector<2x1x16x16xf32>
    %225 = arith.mulf %224, %223 : vector<2x1x16x16xf32>
    %226 = arith.addf %221, %225 : vector<2x1x16x16xf32>
    %c5_166 = arith.constant 5 : index
    %c5_167 = arith.constant 5 : index
    %227 = memref.load %arg1[%c5_166, %c5_167] : memref<16x6xf32, #tpu.memory_space<smem>>
    %228 = vector.extract_strided_slice %0 {offsets = [0, 5, 0, 0], sizes = [2, 1, 16, 16], strides = [1, 1, 1, 1]} : vector<2x6x16x16xf32> to vector<2x1x16x16xf32>
    %229 = vector.broadcast %227 : f32 to vector<2x1x16x16xf32>
    %230 = arith.mulf %229, %228 : vector<2x1x16x16xf32>
    %231 = arith.addf %226, %230 : vector<2x1x16x16xf32>
    %232 = vector.extract_strided_slice %201 {offsets = [0, 0, 1, 1], sizes = [2, 1, 16, 16], strides = [1, 1, 1, 1]} : vector<2x1x18x18xf32> to vector<2x1x16x16xf32>
    %233 = arith.addf %232, %231 : vector<2x1x16x16xf32>
    %c0_168 = arith.constant 0 : index
    %c5_169 = arith.constant 5 : index
    %c1_170 = arith.constant 1 : index
    %c1_171 = arith.constant 1 : index
    %234 = vector.load %arg5[%c0_168, %c5_169, %c1_170, %c1_171] : memref<2x16x18x18xf32, #tpu.memory_space<vmem>>, vector<2x1x16x16xf32>
    tpu.vector_store %arg5[%c0_168, %c5_169, %c1_170, %c1_171], %233 {strides = array<i32>} : memref<2x16x18x18xf32, #tpu.memory_space<vmem>>, vector<2x1x16x16xf32>,
    %c0_172 = arith.constant 0 : index
    %c6 = arith.constant 6 : index
    %c0_173 = arith.constant 0 : index
    %c0_174 = arith.constant 0 : index
    %235 = vector.load %arg3[%c0_172, %c6, %c0_173, %c0_174] : memref<2x16x18x18xf32, #tpu.memory_space<vmem>>, vector<2x1x18x18xf32>
    %c0_175 = arith.constant 0 : index
    %c6_176 = arith.constant 6 : index
    %c0_177 = arith.constant 0 : index
    %c0_178 = arith.constant 0 : index
    %236 = vector.load %arg4[%c0_175, %c6_176, %c0_177, %c0_178] : memref<2x16x18x18xf32, #tpu.memory_space<vmem>>, vector<2x1x18x18xf32>
    %237 = arith.addf %235, %236 : vector<2x1x18x18xf32>
    %c6_179 = arith.constant 6 : index
    %238 = memref.load %arg2[%c6_179] : memref<16xf32, #tpu.memory_space<smem>>
    %239 = vector.broadcast %238 : f32 to vector<2x1x18x18xf32>
    %240 = arith.addf %237, %239 : vector<2x1x18x18xf32>
    %c0_180 = arith.constant 0 : index
    %c6_181 = arith.constant 6 : index
    %c0_182 = arith.constant 0 : index
    %c0_183 = arith.constant 0 : index
    %241 = vector.load %arg5[%c0_180, %c6_181, %c0_182, %c0_183] : memref<2x16x18x18xf32, #tpu.memory_space<vmem>>, vector<2x1x18x18xf32>
    tpu.vector_store %arg5[%c0_180, %c6_181, %c0_182, %c0_183], %240 {strides = array<i32>} : memref<2x16x18x18xf32, #tpu.memory_space<vmem>>, vector<2x1x18x18xf32>,
    %c6_184 = arith.constant 6 : index
    %c0_185 = arith.constant 0 : index
    %242 = memref.load %arg1[%c6_184, %c0_185] : memref<16x6xf32, #tpu.memory_space<smem>>
    %243 = vector.extract_strided_slice %0 {offsets = [0, 0, 0, 0], sizes = [2, 1, 16, 16], strides = [1, 1, 1, 1]} : vector<2x6x16x16xf32> to vector<2x1x16x16xf32>
    %244 = vector.broadcast %242 : f32 to vector<2x1x16x16xf32>
    %245 = arith.mulf %244, %243 : vector<2x1x16x16xf32>
    %c6_186 = arith.constant 6 : index
    %c1_187 = arith.constant 1 : index
    %246 = memref.load %arg1[%c6_186, %c1_187] : memref<16x6xf32, #tpu.memory_space<smem>>
    %247 = vector.extract_strided_slice %0 {offsets = [0, 1, 0, 0], sizes = [2, 1, 16, 16], strides = [1, 1, 1, 1]} : vector<2x6x16x16xf32> to vector<2x1x16x16xf32>
    %248 = vector.broadcast %246 : f32 to vector<2x1x16x16xf32>
    %249 = arith.mulf %248, %247 : vector<2x1x16x16xf32>
    %250 = arith.addf %245, %249 : vector<2x1x16x16xf32>
    %c6_188 = arith.constant 6 : index
    %c2_189 = arith.constant 2 : index
    %251 = memref.load %arg1[%c6_188, %c2_189] : memref<16x6xf32, #tpu.memory_space<smem>>
    %252 = vector.extract_strided_slice %0 {offsets = [0, 2, 0, 0], sizes = [2, 1, 16, 16], strides = [1, 1, 1, 1]} : vector<2x6x16x16xf32> to vector<2x1x16x16xf32>
    %253 = vector.broadcast %251 : f32 to vector<2x1x16x16xf32>
    %254 = arith.mulf %253, %252 : vector<2x1x16x16xf32>
    %255 = arith.addf %250, %254 : vector<2x1x16x16xf32>
    %c6_190 = arith.constant 6 : index
    %c3_191 = arith.constant 3 : index
    %256 = memref.load %arg1[%c6_190, %c3_191] : memref<16x6xf32, #tpu.memory_space<smem>>
    %257 = vector.extract_strided_slice %0 {offsets = [0, 3, 0, 0], sizes = [2, 1, 16, 16], strides = [1, 1, 1, 1]} : vector<2x6x16x16xf32> to vector<2x1x16x16xf32>
    %258 = vector.broadcast %256 : f32 to vector<2x1x16x16xf32>
    %259 = arith.mulf %258, %257 : vector<2x1x16x16xf32>
    %260 = arith.addf %255, %259 : vector<2x1x16x16xf32>
    %c6_192 = arith.constant 6 : index
    %c4_193 = arith.constant 4 : index
    %261 = memref.load %arg1[%c6_192, %c4_193] : memref<16x6xf32, #tpu.memory_space<smem>>
    %262 = vector.extract_strided_slice %0 {offsets = [0, 4, 0, 0], sizes = [2, 1, 16, 16], strides = [1, 1, 1, 1]} : vector<2x6x16x16xf32> to vector<2x1x16x16xf32>
    %263 = vector.broadcast %261 : f32 to vector<2x1x16x16xf32>
    %264 = arith.mulf %263, %262 : vector<2x1x16x16xf32>
    %265 = arith.addf %260, %264 : vector<2x1x16x16xf32>
    %c6_194 = arith.constant 6 : index
    %c5_195 = arith.constant 5 : index
    %266 = memref.load %arg1[%c6_194, %c5_195] : memref<16x6xf32, #tpu.memory_space<smem>>
    %267 = vector.extract_strided_slice %0 {offsets = [0, 5, 0, 0], sizes = [2, 1, 16, 16], strides = [1, 1, 1, 1]} : vector<2x6x16x16xf32> to vector<2x1x16x16xf32>
    %268 = vector.broadcast %266 : f32 to vector<2x1x16x16xf32>
    %269 = arith.mulf %268, %267 : vector<2x1x16x16xf32>
    %270 = arith.addf %265, %269 : vector<2x1x16x16xf32>
    %271 = vector.extract_strided_slice %240 {offsets = [0, 0, 1, 1], sizes = [2, 1, 16, 16], strides = [1, 1, 1, 1]} : vector<2x1x18x18xf32> to vector<2x1x16x16xf32>
    %272 = arith.addf %271, %270 : vector<2x1x16x16xf32>
    %c0_196 = arith.constant 0 : index
    %c6_197 = arith.constant 6 : index
    %c1_198 = arith.constant 1 : index
    %c1_199 = arith.constant 1 : index
    %273 = vector.load %arg5[%c0_196, %c6_197, %c1_198, %c1_199] : memref<2x16x18x18xf32, #tpu.memory_space<vmem>>, vector<2x1x16x16xf32>
    tpu.vector_store %arg5[%c0_196, %c6_197, %c1_198, %c1_199], %272 {strides = array<i32>} : memref<2x16x18x18xf32, #tpu.memory_space<vmem>>, vector<2x1x16x16xf32>,
    %c0_200 = arith.constant 0 : index
    %c7 = arith.constant 7 : index
    %c0_201 = arith.constant 0 : index
    %c0_202 = arith.constant 0 : index
    %274 = vector.load %arg3[%c0_200, %c7, %c0_201, %c0_202] : memref<2x16x18x18xf32, #tpu.memory_space<vmem>>, vector<2x1x18x18xf32>
    %c0_203 = arith.constant 0 : index
    %c7_204 = arith.constant 7 : index
    %c0_205 = arith.constant 0 : index
    %c0_206 = arith.constant 0 : index
    %275 = vector.load %arg4[%c0_203, %c7_204, %c0_205, %c0_206] : memref<2x16x18x18xf32, #tpu.memory_space<vmem>>, vector<2x1x18x18xf32>
    %276 = arith.addf %274, %275 : vector<2x1x18x18xf32>
    %c7_207 = arith.constant 7 : index
    %277 = memref.load %arg2[%c7_207] : memref<16xf32, #tpu.memory_space<smem>>
    %278 = vector.broadcast %277 : f32 to vector<2x1x18x18xf32>
    %279 = arith.addf %276, %278 : vector<2x1x18x18xf32>
    %c0_208 = arith.constant 0 : index
    %c7_209 = arith.constant 7 : index
    %c0_210 = arith.constant 0 : index
    %c0_211 = arith.constant 0 : index
    %280 = vector.load %arg5[%c0_208, %c7_209, %c0_210, %c0_211] : memref<2x16x18x18xf32, #tpu.memory_space<vmem>>, vector<2x1x18x18xf32>
    tpu.vector_store %arg5[%c0_208, %c7_209, %c0_210, %c0_211], %279 {strides = array<i32>} : memref<2x16x18x18xf32, #tpu.memory_space<vmem>>, vector<2x1x18x18xf32>,
    %c7_212 = arith.constant 7 : index
    %c0_213 = arith.constant 0 : index
    %281 = memref.load %arg1[%c7_212, %c0_213] : memref<16x6xf32, #tpu.memory_space<smem>>
    %282 = vector.extract_strided_slice %0 {offsets = [0, 0, 0, 0], sizes = [2, 1, 16, 16], strides = [1, 1, 1, 1]} : vector<2x6x16x16xf32> to vector<2x1x16x16xf32>
    %283 = vector.broadcast %281 : f32 to vector<2x1x16x16xf32>
    %284 = arith.mulf %283, %282 : vector<2x1x16x16xf32>
    %c7_214 = arith.constant 7 : index
    %c1_215 = arith.constant 1 : index
    %285 = memref.load %arg1[%c7_214, %c1_215] : memref<16x6xf32, #tpu.memory_space<smem>>
    %286 = vector.extract_strided_slice %0 {offsets = [0, 1, 0, 0], sizes = [2, 1, 16, 16], strides = [1, 1, 1, 1]} : vector<2x6x16x16xf32> to vector<2x1x16x16xf32>
    %287 = vector.broadcast %285 : f32 to vector<2x1x16x16xf32>
    %288 = arith.mulf %287, %286 : vector<2x1x16x16xf32>
    %289 = arith.addf %284, %288 : vector<2x1x16x16xf32>
    %c7_216 = arith.constant 7 : index
    %c2_217 = arith.constant 2 : index
    %290 = memref.load %arg1[%c7_216, %c2_217] : memref<16x6xf32, #tpu.memory_space<smem>>
    %291 = vector.extract_strided_slice %0 {offsets = [0, 2, 0, 0], sizes = [2, 1, 16, 16], strides = [1, 1, 1, 1]} : vector<2x6x16x16xf32> to vector<2x1x16x16xf32>
    %292 = vector.broadcast %290 : f32 to vector<2x1x16x16xf32>
    %293 = arith.mulf %292, %291 : vector<2x1x16x16xf32>
    %294 = arith.addf %289, %293 : vector<2x1x16x16xf32>
    %c7_218 = arith.constant 7 : index
    %c3_219 = arith.constant 3 : index
    %295 = memref.load %arg1[%c7_218, %c3_219] : memref<16x6xf32, #tpu.memory_space<smem>>
    %296 = vector.extract_strided_slice %0 {offsets = [0, 3, 0, 0], sizes = [2, 1, 16, 16], strides = [1, 1, 1, 1]} : vector<2x6x16x16xf32> to vector<2x1x16x16xf32>
    %297 = vector.broadcast %295 : f32 to vector<2x1x16x16xf32>
    %298 = arith.mulf %297, %296 : vector<2x1x16x16xf32>
    %299 = arith.addf %294, %298 : vector<2x1x16x16xf32>
    %c7_220 = arith.constant 7 : index
    %c4_221 = arith.constant 4 : index
    %300 = memref.load %arg1[%c7_220, %c4_221] : memref<16x6xf32, #tpu.memory_space<smem>>
    %301 = vector.extract_strided_slice %0 {offsets = [0, 4, 0, 0], sizes = [2, 1, 16, 16], strides = [1, 1, 1, 1]} : vector<2x6x16x16xf32> to vector<2x1x16x16xf32>
    %302 = vector.broadcast %300 : f32 to vector<2x1x16x16xf32>
    %303 = arith.mulf %302, %301 : vector<2x1x16x16xf32>
    %304 = arith.addf %299, %303 : vector<2x1x16x16xf32>
    %c7_222 = arith.constant 7 : index
    %c5_223 = arith.constant 5 : index
    %305 = memref.load %arg1[%c7_222, %c5_223] : memref<16x6xf32, #tpu.memory_space<smem>>
    %306 = vector.extract_strided_slice %0 {offsets = [0, 5, 0, 0], sizes = [2, 1, 16, 16], strides = [1, 1, 1, 1]} : vector<2x6x16x16xf32> to vector<2x1x16x16xf32>
    %307 = vector.broadcast %305 : f32 to vector<2x1x16x16xf32>
    %308 = arith.mulf %307, %306 : vector<2x1x16x16xf32>
    %309 = arith.addf %304, %308 : vector<2x1x16x16xf32>
    %310 = vector.extract_strided_slice %279 {offsets = [0, 0, 1, 1], sizes = [2, 1, 16, 16], strides = [1, 1, 1, 1]} : vector<2x1x18x18xf32> to vector<2x1x16x16xf32>
    %311 = arith.addf %310, %309 : vector<2x1x16x16xf32>
    %c0_224 = arith.constant 0 : index
    %c7_225 = arith.constant 7 : index
    %c1_226 = arith.constant 1 : index
    %c1_227 = arith.constant 1 : index
    %312 = vector.load %arg5[%c0_224, %c7_225, %c1_226, %c1_227] : memref<2x16x18x18xf32, #tpu.memory_space<vmem>>, vector<2x1x16x16xf32>
    tpu.vector_store %arg5[%c0_224, %c7_225, %c1_226, %c1_227], %311 {strides = array<i32>} : memref<2x16x18x18xf32, #tpu.memory_space<vmem>>, vector<2x1x16x16xf32>,
    %c0_228 = arith.constant 0 : index
    %c8 = arith.constant 8 : index
    %c0_229 = arith.constant 0 : index
    %c0_230 = arith.constant 0 : index
    %313 = vector.load %arg3[%c0_228, %c8, %c0_229, %c0_230] : memref<2x16x18x18xf32, #tpu.memory_space<vmem>>, vector<2x1x18x18xf32>
    %c0_231 = arith.constant 0 : index
    %c8_232 = arith.constant 8 : index
    %c0_233 = arith.constant 0 : index
    %c0_234 = arith.constant 0 : index
    %314 = vector.load %arg4[%c0_231, %c8_232, %c0_233, %c0_234] : memref<2x16x18x18xf32, #tpu.memory_space<vmem>>, vector<2x1x18x18xf32>
    %315 = arith.addf %313, %314 : vector<2x1x18x18xf32>
    %c8_235 = arith.constant 8 : index
    %316 = memref.load %arg2[%c8_235] : memref<16xf32, #tpu.memory_space<smem>>
    %317 = vector.broadcast %316 : f32 to vector<2x1x18x18xf32>
    %318 = arith.addf %315, %317 : vector<2x1x18x18xf32>
    %c0_236 = arith.constant 0 : index
    %c8_237 = arith.constant 8 : index
    %c0_238 = arith.constant 0 : index
    %c0_239 = arith.constant 0 : index
    %319 = vector.load %arg5[%c0_236, %c8_237, %c0_238, %c0_239] : memref<2x16x18x18xf32, #tpu.memory_space<vmem>>, vector<2x1x18x18xf32>
    tpu.vector_store %arg5[%c0_236, %c8_237, %c0_238, %c0_239], %318 {strides = array<i32>} : memref<2x16x18x18xf32, #tpu.memory_space<vmem>>, vector<2x1x18x18xf32>,
    %c8_240 = arith.constant 8 : index
    %c0_241 = arith.constant 0 : index
    %320 = memref.load %arg1[%c8_240, %c0_241] : memref<16x6xf32, #tpu.memory_space<smem>>
    %321 = vector.extract_strided_slice %0 {offsets = [0, 0, 0, 0], sizes = [2, 1, 16, 16], strides = [1, 1, 1, 1]} : vector<2x6x16x16xf32> to vector<2x1x16x16xf32>
    %322 = vector.broadcast %320 : f32 to vector<2x1x16x16xf32>
    %323 = arith.mulf %322, %321 : vector<2x1x16x16xf32>
    %c8_242 = arith.constant 8 : index
    %c1_243 = arith.constant 1 : index
    %324 = memref.load %arg1[%c8_242, %c1_243] : memref<16x6xf32, #tpu.memory_space<smem>>
    %325 = vector.extract_strided_slice %0 {offsets = [0, 1, 0, 0], sizes = [2, 1, 16, 16], strides = [1, 1, 1, 1]} : vector<2x6x16x16xf32> to vector<2x1x16x16xf32>
    %326 = vector.broadcast %324 : f32 to vector<2x1x16x16xf32>
    %327 = arith.mulf %326, %325 : vector<2x1x16x16xf32>
    %328 = arith.addf %323, %327 : vector<2x1x16x16xf32>
    %c8_244 = arith.constant 8 : index
    %c2_245 = arith.constant 2 : index
    %329 = memref.load %arg1[%c8_244, %c2_245] : memref<16x6xf32, #tpu.memory_space<smem>>
    %330 = vector.extract_strided_slice %0 {offsets = [0, 2, 0, 0], sizes = [2, 1, 16, 16], strides = [1, 1, 1, 1]} : vector<2x6x16x16xf32> to vector<2x1x16x16xf32>
    %331 = vector.broadcast %329 : f32 to vector<2x1x16x16xf32>
    %332 = arith.mulf %331, %330 : vector<2x1x16x16xf32>
    %333 = arith.addf %328, %332 : vector<2x1x16x16xf32>
    %c8_246 = arith.constant 8 : index
    %c3_247 = arith.constant 3 : index
    %334 = memref.load %arg1[%c8_246, %c3_247] : memref<16x6xf32, #tpu.memory_space<smem>>
    %335 = vector.extract_strided_slice %0 {offsets = [0, 3, 0, 0], sizes = [2, 1, 16, 16], strides = [1, 1, 1, 1]} : vector<2x6x16x16xf32> to vector<2x1x16x16xf32>
    %336 = vector.broadcast %334 : f32 to vector<2x1x16x16xf32>
    %337 = arith.mulf %336, %335 : vector<2x1x16x16xf32>
    %338 = arith.addf %333, %337 : vector<2x1x16x16xf32>
    %c8_248 = arith.constant 8 : index
    %c4_249 = arith.constant 4 : index
    %339 = memref.load %arg1[%c8_248, %c4_249] : memref<16x6xf32, #tpu.memory_space<smem>>
    %340 = vector.extract_strided_slice %0 {offsets = [0, 4, 0, 0], sizes = [2, 1, 16, 16], strides = [1, 1, 1, 1]} : vector<2x6x16x16xf32> to vector<2x1x16x16xf32>
    %341 = vector.broadcast %339 : f32 to vector<2x1x16x16xf32>
    %342 = arith.mulf %341, %340 : vector<2x1x16x16xf32>
    %343 = arith.addf %338, %342 : vector<2x1x16x16xf32>
    %c8_250 = arith.constant 8 : index
    %c5_251 = arith.constant 5 : index
    %344 = memref.load %arg1[%c8_250, %c5_251] : memref<16x6xf32, #tpu.memory_space<smem>>
    %345 = vector.extract_strided_slice %0 {offsets = [0, 5, 0, 0], sizes = [2, 1, 16, 16], strides = [1, 1, 1, 1]} : vector<2x6x16x16xf32> to vector<2x1x16x16xf32>
    %346 = vector.broadcast %344 : f32 to vector<2x1x16x16xf32>
    %347 = arith.mulf %346, %345 : vector<2x1x16x16xf32>
    %348 = arith.addf %343, %347 : vector<2x1x16x16xf32>
    %349 = vector.extract_strided_slice %318 {offsets = [0, 0, 1, 1], sizes = [2, 1, 16, 16], strides = [1, 1, 1, 1]} : vector<2x1x18x18xf32> to vector<2x1x16x16xf32>
    %350 = arith.addf %349, %348 : vector<2x1x16x16xf32>
    %c0_252 = arith.constant 0 : index
    %c8_253 = arith.constant 8 : index
    %c1_254 = arith.constant 1 : index
    %c1_255 = arith.constant 1 : index
    %351 = vector.load %arg5[%c0_252, %c8_253, %c1_254, %c1_255] : memref<2x16x18x18xf32, #tpu.memory_space<vmem>>, vector<2x1x16x16xf32>
    tpu.vector_store %arg5[%c0_252, %c8_253, %c1_254, %c1_255], %350 {strides = array<i32>} : memref<2x16x18x18xf32, #tpu.memory_space<vmem>>, vector<2x1x16x16xf32>,
    %c0_256 = arith.constant 0 : index
    %c9 = arith.constant 9 : index
    %c0_257 = arith.constant 0 : index
    %c0_258 = arith.constant 0 : index
    %352 = vector.load %arg3[%c0_256, %c9, %c0_257, %c0_258] : memref<2x16x18x18xf32, #tpu.memory_space<vmem>>, vector<2x1x18x18xf32>
    %c0_259 = arith.constant 0 : index
    %c9_260 = arith.constant 9 : index
    %c0_261 = arith.constant 0 : index
    %c0_262 = arith.constant 0 : index
    %353 = vector.load %arg4[%c0_259, %c9_260, %c0_261, %c0_262] : memref<2x16x18x18xf32, #tpu.memory_space<vmem>>, vector<2x1x18x18xf32>
    %354 = arith.addf %352, %353 : vector<2x1x18x18xf32>
    %c9_263 = arith.constant 9 : index
    %355 = memref.load %arg2[%c9_263] : memref<16xf32, #tpu.memory_space<smem>>
    %356 = vector.broadcast %355 : f32 to vector<2x1x18x18xf32>
    %357 = arith.addf %354, %356 : vector<2x1x18x18xf32>
    %c0_264 = arith.constant 0 : index
    %c9_265 = arith.constant 9 : index
    %c0_266 = arith.constant 0 : index
    %c0_267 = arith.constant 0 : index
    %358 = vector.load %arg5[%c0_264, %c9_265, %c0_266, %c0_267] : memref<2x16x18x18xf32, #tpu.memory_space<vmem>>, vector<2x1x18x18xf32>
    tpu.vector_store %arg5[%c0_264, %c9_265, %c0_266, %c0_267], %357 {strides = array<i32>} : memref<2x16x18x18xf32, #tpu.memory_space<vmem>>, vector<2x1x18x18xf32>,
    %c9_268 = arith.constant 9 : index
    %c0_269 = arith.constant 0 : index
    %359 = memref.load %arg1[%c9_268, %c0_269] : memref<16x6xf32, #tpu.memory_space<smem>>
    %360 = vector.extract_strided_slice %0 {offsets = [0, 0, 0, 0], sizes = [2, 1, 16, 16], strides = [1, 1, 1, 1]} : vector<2x6x16x16xf32> to vector<2x1x16x16xf32>
    %361 = vector.broadcast %359 : f32 to vector<2x1x16x16xf32>
    %362 = arith.mulf %361, %360 : vector<2x1x16x16xf32>
    %c9_270 = arith.constant 9 : index
    %c1_271 = arith.constant 1 : index
    %363 = memref.load %arg1[%c9_270, %c1_271] : memref<16x6xf32, #tpu.memory_space<smem>>
    %364 = vector.extract_strided_slice %0 {offsets = [0, 1, 0, 0], sizes = [2, 1, 16, 16], strides = [1, 1, 1, 1]} : vector<2x6x16x16xf32> to vector<2x1x16x16xf32>
    %365 = vector.broadcast %363 : f32 to vector<2x1x16x16xf32>
    %366 = arith.mulf %365, %364 : vector<2x1x16x16xf32>
    %367 = arith.addf %362, %366 : vector<2x1x16x16xf32>
    %c9_272 = arith.constant 9 : index
    %c2_273 = arith.constant 2 : index
    %368 = memref.load %arg1[%c9_272, %c2_273] : memref<16x6xf32, #tpu.memory_space<smem>>
    %369 = vector.extract_strided_slice %0 {offsets = [0, 2, 0, 0], sizes = [2, 1, 16, 16], strides = [1, 1, 1, 1]} : vector<2x6x16x16xf32> to vector<2x1x16x16xf32>
    %370 = vector.broadcast %368 : f32 to vector<2x1x16x16xf32>
    %371 = arith.mulf %370, %369 : vector<2x1x16x16xf32>
    %372 = arith.addf %367, %371 : vector<2x1x16x16xf32>
    %c9_274 = arith.constant 9 : index
    %c3_275 = arith.constant 3 : index
    %373 = memref.load %arg1[%c9_274, %c3_275] : memref<16x6xf32, #tpu.memory_space<smem>>
    %374 = vector.extract_strided_slice %0 {offsets = [0, 3, 0, 0], sizes = [2, 1, 16, 16], strides = [1, 1, 1, 1]} : vector<2x6x16x16xf32> to vector<2x1x16x16xf32>
    %375 = vector.broadcast %373 : f32 to vector<2x1x16x16xf32>
    %376 = arith.mulf %375, %374 : vector<2x1x16x16xf32>
    %377 = arith.addf %372, %376 : vector<2x1x16x16xf32>
    %c9_276 = arith.constant 9 : index
    %c4_277 = arith.constant 4 : index
    %378 = memref.load %arg1[%c9_276, %c4_277] : memref<16x6xf32, #tpu.memory_space<smem>>
    %379 = vector.extract_strided_slice %0 {offsets = [0, 4, 0, 0], sizes = [2, 1, 16, 16], strides = [1, 1, 1, 1]} : vector<2x6x16x16xf32> to vector<2x1x16x16xf32>
    %380 = vector.broadcast %378 : f32 to vector<2x1x16x16xf32>
    %381 = arith.mulf %380, %379 : vector<2x1x16x16xf32>
    %382 = arith.addf %377, %381 : vector<2x1x16x16xf32>
    %c9_278 = arith.constant 9 : index
    %c5_279 = arith.constant 5 : index
    %383 = memref.load %arg1[%c9_278, %c5_279] : memref<16x6xf32, #tpu.memory_space<smem>>
    %384 = vector.extract_strided_slice %0 {offsets = [0, 5, 0, 0], sizes = [2, 1, 16, 16], strides = [1, 1, 1, 1]} : vector<2x6x16x16xf32> to vector<2x1x16x16xf32>
    %385 = vector.broadcast %383 : f32 to vector<2x1x16x16xf32>
    %386 = arith.mulf %385, %384 : vector<2x1x16x16xf32>
    %387 = arith.addf %382, %386 : vector<2x1x16x16xf32>
    %388 = vector.extract_strided_slice %357 {offsets = [0, 0, 1, 1], sizes = [2, 1, 16, 16], strides = [1, 1, 1, 1]} : vector<2x1x18x18xf32> to vector<2x1x16x16xf32>
    %389 = arith.addf %388, %387 : vector<2x1x16x16xf32>
    %c0_280 = arith.constant 0 : index
    %c9_281 = arith.constant 9 : index
    %c1_282 = arith.constant 1 : index
    %c1_283 = arith.constant 1 : index
    %390 = vector.load %arg5[%c0_280, %c9_281, %c1_282, %c1_283] : memref<2x16x18x18xf32, #tpu.memory_space<vmem>>, vector<2x1x16x16xf32>
    tpu.vector_store %arg5[%c0_280, %c9_281, %c1_282, %c1_283], %389 {strides = array<i32>} : memref<2x16x18x18xf32, #tpu.memory_space<vmem>>, vector<2x1x16x16xf32>,
    %c0_284 = arith.constant 0 : index
    %c10 = arith.constant 10 : index
    %c0_285 = arith.constant 0 : index
    %c0_286 = arith.constant 0 : index
    %391 = vector.load %arg3[%c0_284, %c10, %c0_285, %c0_286] : memref<2x16x18x18xf32, #tpu.memory_space<vmem>>, vector<2x1x18x18xf32>
    %c0_287 = arith.constant 0 : index
    %c10_288 = arith.constant 10 : index
    %c0_289 = arith.constant 0 : index
    %c0_290 = arith.constant 0 : index
    %392 = vector.load %arg4[%c0_287, %c10_288, %c0_289, %c0_290] : memref<2x16x18x18xf32, #tpu.memory_space<vmem>>, vector<2x1x18x18xf32>
    %393 = arith.addf %391, %392 : vector<2x1x18x18xf32>
    %c10_291 = arith.constant 10 : index
    %394 = memref.load %arg2[%c10_291] : memref<16xf32, #tpu.memory_space<smem>>
    %395 = vector.broadcast %394 : f32 to vector<2x1x18x18xf32>
    %396 = arith.addf %393, %395 : vector<2x1x18x18xf32>
    %c0_292 = arith.constant 0 : index
    %c10_293 = arith.constant 10 : index
    %c0_294 = arith.constant 0 : index
    %c0_295 = arith.constant 0 : index
    %397 = vector.load %arg5[%c0_292, %c10_293, %c0_294, %c0_295] : memref<2x16x18x18xf32, #tpu.memory_space<vmem>>, vector<2x1x18x18xf32>
    tpu.vector_store %arg5[%c0_292, %c10_293, %c0_294, %c0_295], %396 {strides = array<i32>} : memref<2x16x18x18xf32, #tpu.memory_space<vmem>>, vector<2x1x18x18xf32>,
    %c10_296 = arith.constant 10 : index
    %c0_297 = arith.constant 0 : index
    %398 = memref.load %arg1[%c10_296, %c0_297] : memref<16x6xf32, #tpu.memory_space<smem>>
    %399 = vector.extract_strided_slice %0 {offsets = [0, 0, 0, 0], sizes = [2, 1, 16, 16], strides = [1, 1, 1, 1]} : vector<2x6x16x16xf32> to vector<2x1x16x16xf32>
    %400 = vector.broadcast %398 : f32 to vector<2x1x16x16xf32>
    %401 = arith.mulf %400, %399 : vector<2x1x16x16xf32>
    %c10_298 = arith.constant 10 : index
    %c1_299 = arith.constant 1 : index
    %402 = memref.load %arg1[%c10_298, %c1_299] : memref<16x6xf32, #tpu.memory_space<smem>>
    %403 = vector.extract_strided_slice %0 {offsets = [0, 1, 0, 0], sizes = [2, 1, 16, 16], strides = [1, 1, 1, 1]} : vector<2x6x16x16xf32> to vector<2x1x16x16xf32>
    %404 = vector.broadcast %402 : f32 to vector<2x1x16x16xf32>
    %405 = arith.mulf %404, %403 : vector<2x1x16x16xf32>
    %406 = arith.addf %401, %405 : vector<2x1x16x16xf32>
    %c10_300 = arith.constant 10 : index
    %c2_301 = arith.constant 2 : index
    %407 = memref.load %arg1[%c10_300, %c2_301] : memref<16x6xf32, #tpu.memory_space<smem>>
    %408 = vector.extract_strided_slice %0 {offsets = [0, 2, 0, 0], sizes = [2, 1, 16, 16], strides = [1, 1, 1, 1]} : vector<2x6x16x16xf32> to vector<2x1x16x16xf32>
    %409 = vector.broadcast %407 : f32 to vector<2x1x16x16xf32>
    %410 = arith.mulf %409, %408 : vector<2x1x16x16xf32>
    %411 = arith.addf %406, %410 : vector<2x1x16x16xf32>
    %c10_302 = arith.constant 10 : index
    %c3_303 = arith.constant 3 : index
    %412 = memref.load %arg1[%c10_302, %c3_303] : memref<16x6xf32, #tpu.memory_space<smem>>
    %413 = vector.extract_strided_slice %0 {offsets = [0, 3, 0, 0], sizes = [2, 1, 16, 16], strides = [1, 1, 1, 1]} : vector<2x6x16x16xf32> to vector<2x1x16x16xf32>
    %414 = vector.broadcast %412 : f32 to vector<2x1x16x16xf32>
    %415 = arith.mulf %414, %413 : vector<2x1x16x16xf32>
    %416 = arith.addf %411, %415 : vector<2x1x16x16xf32>
    %c10_304 = arith.constant 10 : index
    %c4_305 = arith.constant 4 : index
    %417 = memref.load %arg1[%c10_304, %c4_305] : memref<16x6xf32, #tpu.memory_space<smem>>
    %418 = vector.extract_strided_slice %0 {offsets = [0, 4, 0, 0], sizes = [2, 1, 16, 16], strides = [1, 1, 1, 1]} : vector<2x6x16x16xf32> to vector<2x1x16x16xf32>
    %419 = vector.broadcast %417 : f32 to vector<2x1x16x16xf32>
    %420 = arith.mulf %419, %418 : vector<2x1x16x16xf32>
    %421 = arith.addf %416, %420 : vector<2x1x16x16xf32>
    %c10_306 = arith.constant 10 : index
    %c5_307 = arith.constant 5 : index
    %422 = memref.load %arg1[%c10_306, %c5_307] : memref<16x6xf32, #tpu.memory_space<smem>>
    %423 = vector.extract_strided_slice %0 {offsets = [0, 5, 0, 0], sizes = [2, 1, 16, 16], strides = [1, 1, 1, 1]} : vector<2x6x16x16xf32> to vector<2x1x16x16xf32>
    %424 = vector.broadcast %422 : f32 to vector<2x1x16x16xf32>
    %425 = arith.mulf %424, %423 : vector<2x1x16x16xf32>
    %426 = arith.addf %421, %425 : vector<2x1x16x16xf32>
    %427 = vector.extract_strided_slice %396 {offsets = [0, 0, 1, 1], sizes = [2, 1, 16, 16], strides = [1, 1, 1, 1]} : vector<2x1x18x18xf32> to vector<2x1x16x16xf32>
    %428 = arith.addf %427, %426 : vector<2x1x16x16xf32>
    %c0_308 = arith.constant 0 : index
    %c10_309 = arith.constant 10 : index
    %c1_310 = arith.constant 1 : index
    %c1_311 = arith.constant 1 : index
    %429 = vector.load %arg5[%c0_308, %c10_309, %c1_310, %c1_311] : memref<2x16x18x18xf32, #tpu.memory_space<vmem>>, vector<2x1x16x16xf32>
    tpu.vector_store %arg5[%c0_308, %c10_309, %c1_310, %c1_311], %428 {strides = array<i32>} : memref<2x16x18x18xf32, #tpu.memory_space<vmem>>, vector<2x1x16x16xf32>,
    %c0_312 = arith.constant 0 : index
    %c11 = arith.constant 11 : index
    %c0_313 = arith.constant 0 : index
    %c0_314 = arith.constant 0 : index
    %430 = vector.load %arg3[%c0_312, %c11, %c0_313, %c0_314] : memref<2x16x18x18xf32, #tpu.memory_space<vmem>>, vector<2x1x18x18xf32>
    %c0_315 = arith.constant 0 : index
    %c11_316 = arith.constant 11 : index
    %c0_317 = arith.constant 0 : index
    %c0_318 = arith.constant 0 : index
    %431 = vector.load %arg4[%c0_315, %c11_316, %c0_317, %c0_318] : memref<2x16x18x18xf32, #tpu.memory_space<vmem>>, vector<2x1x18x18xf32>
    %432 = arith.addf %430, %431 : vector<2x1x18x18xf32>
    %c11_319 = arith.constant 11 : index
    %433 = memref.load %arg2[%c11_319] : memref<16xf32, #tpu.memory_space<smem>>
    %434 = vector.broadcast %433 : f32 to vector<2x1x18x18xf32>
    %435 = arith.addf %432, %434 : vector<2x1x18x18xf32>
    %c0_320 = arith.constant 0 : index
    %c11_321 = arith.constant 11 : index
    %c0_322 = arith.constant 0 : index
    %c0_323 = arith.constant 0 : index
    %436 = vector.load %arg5[%c0_320, %c11_321, %c0_322, %c0_323] : memref<2x16x18x18xf32, #tpu.memory_space<vmem>>, vector<2x1x18x18xf32>
    tpu.vector_store %arg5[%c0_320, %c11_321, %c0_322, %c0_323], %435 {strides = array<i32>} : memref<2x16x18x18xf32, #tpu.memory_space<vmem>>, vector<2x1x18x18xf32>,
    %c11_324 = arith.constant 11 : index
    %c0_325 = arith.constant 0 : index
    %437 = memref.load %arg1[%c11_324, %c0_325] : memref<16x6xf32, #tpu.memory_space<smem>>
    %438 = vector.extract_strided_slice %0 {offsets = [0, 0, 0, 0], sizes = [2, 1, 16, 16], strides = [1, 1, 1, 1]} : vector<2x6x16x16xf32> to vector<2x1x16x16xf32>
    %439 = vector.broadcast %437 : f32 to vector<2x1x16x16xf32>
    %440 = arith.mulf %439, %438 : vector<2x1x16x16xf32>
    %c11_326 = arith.constant 11 : index
    %c1_327 = arith.constant 1 : index
    %441 = memref.load %arg1[%c11_326, %c1_327] : memref<16x6xf32, #tpu.memory_space<smem>>
    %442 = vector.extract_strided_slice %0 {offsets = [0, 1, 0, 0], sizes = [2, 1, 16, 16], strides = [1, 1, 1, 1]} : vector<2x6x16x16xf32> to vector<2x1x16x16xf32>
    %443 = vector.broadcast %441 : f32 to vector<2x1x16x16xf32>
    %444 = arith.mulf %443, %442 : vector<2x1x16x16xf32>
    %445 = arith.addf %440, %444 : vector<2x1x16x16xf32>
    %c11_328 = arith.constant 11 : index
    %c2_329 = arith.constant 2 : index
    %446 = memref.load %arg1[%c11_328, %c2_329] : memref<16x6xf32, #tpu.memory_space<smem>>
    %447 = vector.extract_strided_slice %0 {offsets = [0, 2, 0, 0], sizes = [2, 1, 16, 16], strides = [1, 1, 1, 1]} : vector<2x6x16x16xf32> to vector<2x1x16x16xf32>
    %448 = vector.broadcast %446 : f32 to vector<2x1x16x16xf32>
    %449 = arith.mulf %448, %447 : vector<2x1x16x16xf32>
    %450 = arith.addf %445, %449 : vector<2x1x16x16xf32>
    %c11_330 = arith.constant 11 : index
    %c3_331 = arith.constant 3 : index
    %451 = memref.load %arg1[%c11_330, %c3_331] : memref<16x6xf32, #tpu.memory_space<smem>>
    %452 = vector.extract_strided_slice %0 {offsets = [0, 3, 0, 0], sizes = [2, 1, 16, 16], strides = [1, 1, 1, 1]} : vector<2x6x16x16xf32> to vector<2x1x16x16xf32>
    %453 = vector.broadcast %451 : f32 to vector<2x1x16x16xf32>
    %454 = arith.mulf %453, %452 : vector<2x1x16x16xf32>
    %455 = arith.addf %450, %454 : vector<2x1x16x16xf32>
    %c11_332 = arith.constant 11 : index
    %c4_333 = arith.constant 4 : index
    %456 = memref.load %arg1[%c11_332, %c4_333] : memref<16x6xf32, #tpu.memory_space<smem>>
    %457 = vector.extract_strided_slice %0 {offsets = [0, 4, 0, 0], sizes = [2, 1, 16, 16], strides = [1, 1, 1, 1]} : vector<2x6x16x16xf32> to vector<2x1x16x16xf32>
    %458 = vector.broadcast %456 : f32 to vector<2x1x16x16xf32>
    %459 = arith.mulf %458, %457 : vector<2x1x16x16xf32>
    %460 = arith.addf %455, %459 : vector<2x1x16x16xf32>
    %c11_334 = arith.constant 11 : index
    %c5_335 = arith.constant 5 : index
    %461 = memref.load %arg1[%c11_334, %c5_335] : memref<16x6xf32, #tpu.memory_space<smem>>
    %462 = vector.extract_strided_slice %0 {offsets = [0, 5, 0, 0], sizes = [2, 1, 16, 16], strides = [1, 1, 1, 1]} : vector<2x6x16x16xf32> to vector<2x1x16x16xf32>
    %463 = vector.broadcast %461 : f32 to vector<2x1x16x16xf32>
    %464 = arith.mulf %463, %462 : vector<2x1x16x16xf32>
    %465 = arith.addf %460, %464 : vector<2x1x16x16xf32>
    %466 = vector.extract_strided_slice %435 {offsets = [0, 0, 1, 1], sizes = [2, 1, 16, 16], strides = [1, 1, 1, 1]} : vector<2x1x18x18xf32> to vector<2x1x16x16xf32>
    %467 = arith.addf %466, %465 : vector<2x1x16x16xf32>
    %c0_336 = arith.constant 0 : index
    %c11_337 = arith.constant 11 : index
    %c1_338 = arith.constant 1 : index
    %c1_339 = arith.constant 1 : index
    %468 = vector.load %arg5[%c0_336, %c11_337, %c1_338, %c1_339] : memref<2x16x18x18xf32, #tpu.memory_space<vmem>>, vector<2x1x16x16xf32>
    tpu.vector_store %arg5[%c0_336, %c11_337, %c1_338, %c1_339], %467 {strides = array<i32>} : memref<2x16x18x18xf32, #tpu.memory_space<vmem>>, vector<2x1x16x16xf32>,
    %c0_340 = arith.constant 0 : index
    %c12 = arith.constant 12 : index
    %c0_341 = arith.constant 0 : index
    %c0_342 = arith.constant 0 : index
    %469 = vector.load %arg3[%c0_340, %c12, %c0_341, %c0_342] : memref<2x16x18x18xf32, #tpu.memory_space<vmem>>, vector<2x1x18x18xf32>
    %c0_343 = arith.constant 0 : index
    %c12_344 = arith.constant 12 : index
    %c0_345 = arith.constant 0 : index
    %c0_346 = arith.constant 0 : index
    %470 = vector.load %arg4[%c0_343, %c12_344, %c0_345, %c0_346] : memref<2x16x18x18xf32, #tpu.memory_space<vmem>>, vector<2x1x18x18xf32>
    %471 = arith.addf %469, %470 : vector<2x1x18x18xf32>
    %c12_347 = arith.constant 12 : index
    %472 = memref.load %arg2[%c12_347] : memref<16xf32, #tpu.memory_space<smem>>
    %473 = vector.broadcast %472 : f32 to vector<2x1x18x18xf32>
    %474 = arith.addf %471, %473 : vector<2x1x18x18xf32>
    %c0_348 = arith.constant 0 : index
    %c12_349 = arith.constant 12 : index
    %c0_350 = arith.constant 0 : index
    %c0_351 = arith.constant 0 : index
    %475 = vector.load %arg5[%c0_348, %c12_349, %c0_350, %c0_351] : memref<2x16x18x18xf32, #tpu.memory_space<vmem>>, vector<2x1x18x18xf32>
    tpu.vector_store %arg5[%c0_348, %c12_349, %c0_350, %c0_351], %474 {strides = array<i32>} : memref<2x16x18x18xf32, #tpu.memory_space<vmem>>, vector<2x1x18x18xf32>,
    %c12_352 = arith.constant 12 : index
    %c0_353 = arith.constant 0 : index
    %476 = memref.load %arg1[%c12_352, %c0_353] : memref<16x6xf32, #tpu.memory_space<smem>>
    %477 = vector.extract_strided_slice %0 {offsets = [0, 0, 0, 0], sizes = [2, 1, 16, 16], strides = [1, 1, 1, 1]} : vector<2x6x16x16xf32> to vector<2x1x16x16xf32>
    %478 = vector.broadcast %476 : f32 to vector<2x1x16x16xf32>
    %479 = arith.mulf %478, %477 : vector<2x1x16x16xf32>
    %c12_354 = arith.constant 12 : index
    %c1_355 = arith.constant 1 : index
    %480 = memref.load %arg1[%c12_354, %c1_355] : memref<16x6xf32, #tpu.memory_space<smem>>
    %481 = vector.extract_strided_slice %0 {offsets = [0, 1, 0, 0], sizes = [2, 1, 16, 16], strides = [1, 1, 1, 1]} : vector<2x6x16x16xf32> to vector<2x1x16x16xf32>
    %482 = vector.broadcast %480 : f32 to vector<2x1x16x16xf32>
    %483 = arith.mulf %482, %481 : vector<2x1x16x16xf32>
    %484 = arith.addf %479, %483 : vector<2x1x16x16xf32>
    %c12_356 = arith.constant 12 : index
    %c2_357 = arith.constant 2 : index
    %485 = memref.load %arg1[%c12_356, %c2_357] : memref<16x6xf32, #tpu.memory_space<smem>>
    %486 = vector.extract_strided_slice %0 {offsets = [0, 2, 0, 0], sizes = [2, 1, 16, 16], strides = [1, 1, 1, 1]} : vector<2x6x16x16xf32> to vector<2x1x16x16xf32>
    %487 = vector.broadcast %485 : f32 to vector<2x1x16x16xf32>
    %488 = arith.mulf %487, %486 : vector<2x1x16x16xf32>
    %489 = arith.addf %484, %488 : vector<2x1x16x16xf32>
    %c12_358 = arith.constant 12 : index
    %c3_359 = arith.constant 3 : index
    %490 = memref.load %arg1[%c12_358, %c3_359] : memref<16x6xf32, #tpu.memory_space<smem>>
    %491 = vector.extract_strided_slice %0 {offsets = [0, 3, 0, 0], sizes = [2, 1, 16, 16], strides = [1, 1, 1, 1]} : vector<2x6x16x16xf32> to vector<2x1x16x16xf32>
    %492 = vector.broadcast %490 : f32 to vector<2x1x16x16xf32>
    %493 = arith.mulf %492, %491 : vector<2x1x16x16xf32>
    %494 = arith.addf %489, %493 : vector<2x1x16x16xf32>
    %c12_360 = arith.constant 12 : index
    %c4_361 = arith.constant 4 : index
    %495 = memref.load %arg1[%c12_360, %c4_361] : memref<16x6xf32, #tpu.memory_space<smem>>
    %496 = vector.extract_strided_slice %0 {offsets = [0, 4, 0, 0], sizes = [2, 1, 16, 16], strides = [1, 1, 1, 1]} : vector<2x6x16x16xf32> to vector<2x1x16x16xf32>
    %497 = vector.broadcast %495 : f32 to vector<2x1x16x16xf32>
    %498 = arith.mulf %497, %496 : vector<2x1x16x16xf32>
    %499 = arith.addf %494, %498 : vector<2x1x16x16xf32>
    %c12_362 = arith.constant 12 : index
    %c5_363 = arith.constant 5 : index
    %500 = memref.load %arg1[%c12_362, %c5_363] : memref<16x6xf32, #tpu.memory_space<smem>>
    %501 = vector.extract_strided_slice %0 {offsets = [0, 5, 0, 0], sizes = [2, 1, 16, 16], strides = [1, 1, 1, 1]} : vector<2x6x16x16xf32> to vector<2x1x16x16xf32>
    %502 = vector.broadcast %500 : f32 to vector<2x1x16x16xf32>
    %503 = arith.mulf %502, %501 : vector<2x1x16x16xf32>
    %504 = arith.addf %499, %503 : vector<2x1x16x16xf32>
    %505 = vector.extract_strided_slice %474 {offsets = [0, 0, 1, 1], sizes = [2, 1, 16, 16], strides = [1, 1, 1, 1]} : vector<2x1x18x18xf32> to vector<2x1x16x16xf32>
    %506 = arith.addf %505, %504 : vector<2x1x16x16xf32>
    %c0_364 = arith.constant 0 : index
    %c12_365 = arith.constant 12 : index
    %c1_366 = arith.constant 1 : index
    %c1_367 = arith.constant 1 : index
    %507 = vector.load %arg5[%c0_364, %c12_365, %c1_366, %c1_367] : memref<2x16x18x18xf32, #tpu.memory_space<vmem>>, vector<2x1x16x16xf32>
    tpu.vector_store %arg5[%c0_364, %c12_365, %c1_366, %c1_367], %506 {strides = array<i32>} : memref<2x16x18x18xf32, #tpu.memory_space<vmem>>, vector<2x1x16x16xf32>,
    %c0_368 = arith.constant 0 : index
    %c13 = arith.constant 13 : index
    %c0_369 = arith.constant 0 : index
    %c0_370 = arith.constant 0 : index
    %508 = vector.load %arg3[%c0_368, %c13, %c0_369, %c0_370] : memref<2x16x18x18xf32, #tpu.memory_space<vmem>>, vector<2x1x18x18xf32>
    %c0_371 = arith.constant 0 : index
    %c13_372 = arith.constant 13 : index
    %c0_373 = arith.constant 0 : index
    %c0_374 = arith.constant 0 : index
    %509 = vector.load %arg4[%c0_371, %c13_372, %c0_373, %c0_374] : memref<2x16x18x18xf32, #tpu.memory_space<vmem>>, vector<2x1x18x18xf32>
    %510 = arith.addf %508, %509 : vector<2x1x18x18xf32>
    %c13_375 = arith.constant 13 : index
    %511 = memref.load %arg2[%c13_375] : memref<16xf32, #tpu.memory_space<smem>>
    %512 = vector.broadcast %511 : f32 to vector<2x1x18x18xf32>
    %513 = arith.addf %510, %512 : vector<2x1x18x18xf32>
    %c0_376 = arith.constant 0 : index
    %c13_377 = arith.constant 13 : index
    %c0_378 = arith.constant 0 : index
    %c0_379 = arith.constant 0 : index
    %514 = vector.load %arg5[%c0_376, %c13_377, %c0_378, %c0_379] : memref<2x16x18x18xf32, #tpu.memory_space<vmem>>, vector<2x1x18x18xf32>
    tpu.vector_store %arg5[%c0_376, %c13_377, %c0_378, %c0_379], %513 {strides = array<i32>} : memref<2x16x18x18xf32, #tpu.memory_space<vmem>>, vector<2x1x18x18xf32>,
    %c13_380 = arith.constant 13 : index
    %c0_381 = arith.constant 0 : index
    %515 = memref.load %arg1[%c13_380, %c0_381] : memref<16x6xf32, #tpu.memory_space<smem>>
    %516 = vector.extract_strided_slice %0 {offsets = [0, 0, 0, 0], sizes = [2, 1, 16, 16], strides = [1, 1, 1, 1]} : vector<2x6x16x16xf32> to vector<2x1x16x16xf32>
    %517 = vector.broadcast %515 : f32 to vector<2x1x16x16xf32>
    %518 = arith.mulf %517, %516 : vector<2x1x16x16xf32>
    %c13_382 = arith.constant 13 : index
    %c1_383 = arith.constant 1 : index
    %519 = memref.load %arg1[%c13_382, %c1_383] : memref<16x6xf32, #tpu.memory_space<smem>>
    %520 = vector.extract_strided_slice %0 {offsets = [0, 1, 0, 0], sizes = [2, 1, 16, 16], strides = [1, 1, 1, 1]} : vector<2x6x16x16xf32> to vector<2x1x16x16xf32>
    %521 = vector.broadcast %519 : f32 to vector<2x1x16x16xf32>
    %522 = arith.mulf %521, %520 : vector<2x1x16x16xf32>
    %523 = arith.addf %518, %522 : vector<2x1x16x16xf32>
    %c13_384 = arith.constant 13 : index
    %c2_385 = arith.constant 2 : index
    %524 = memref.load %arg1[%c13_384, %c2_385] : memref<16x6xf32, #tpu.memory_space<smem>>
    %525 = vector.extract_strided_slice %0 {offsets = [0, 2, 0, 0], sizes = [2, 1, 16, 16], strides = [1, 1, 1, 1]} : vector<2x6x16x16xf32> to vector<2x1x16x16xf32>
    %526 = vector.broadcast %524 : f32 to vector<2x1x16x16xf32>
    %527 = arith.mulf %526, %525 : vector<2x1x16x16xf32>
    %528 = arith.addf %523, %527 : vector<2x1x16x16xf32>
    %c13_386 = arith.constant 13 : index
    %c3_387 = arith.constant 3 : index
    %529 = memref.load %arg1[%c13_386, %c3_387] : memref<16x6xf32, #tpu.memory_space<smem>>
    %530 = vector.extract_strided_slice %0 {offsets = [0, 3, 0, 0], sizes = [2, 1, 16, 16], strides = [1, 1, 1, 1]} : vector<2x6x16x16xf32> to vector<2x1x16x16xf32>
    %531 = vector.broadcast %529 : f32 to vector<2x1x16x16xf32>
    %532 = arith.mulf %531, %530 : vector<2x1x16x16xf32>
    %533 = arith.addf %528, %532 : vector<2x1x16x16xf32>
    %c13_388 = arith.constant 13 : index
    %c4_389 = arith.constant 4 : index
    %534 = memref.load %arg1[%c13_388, %c4_389] : memref<16x6xf32, #tpu.memory_space<smem>>
    %535 = vector.extract_strided_slice %0 {offsets = [0, 4, 0, 0], sizes = [2, 1, 16, 16], strides = [1, 1, 1, 1]} : vector<2x6x16x16xf32> to vector<2x1x16x16xf32>
    %536 = vector.broadcast %534 : f32 to vector<2x1x16x16xf32>
    %537 = arith.mulf %536, %535 : vector<2x1x16x16xf32>
    %538 = arith.addf %533, %537 : vector<2x1x16x16xf32>
    %c13_390 = arith.constant 13 : index
    %c5_391 = arith.constant 5 : index
    %539 = memref.load %arg1[%c13_390, %c5_391] : memref<16x6xf32, #tpu.memory_space<smem>>
    %540 = vector.extract_strided_slice %0 {offsets = [0, 5, 0, 0], sizes = [2, 1, 16, 16], strides = [1, 1, 1, 1]} : vector<2x6x16x16xf32> to vector<2x1x16x16xf32>
    %541 = vector.broadcast %539 : f32 to vector<2x1x16x16xf32>
    %542 = arith.mulf %541, %540 : vector<2x1x16x16xf32>
    %543 = arith.addf %538, %542 : vector<2x1x16x16xf32>
    %544 = vector.extract_strided_slice %513 {offsets = [0, 0, 1, 1], sizes = [2, 1, 16, 16], strides = [1, 1, 1, 1]} : vector<2x1x18x18xf32> to vector<2x1x16x16xf32>
    %545 = arith.addf %544, %543 : vector<2x1x16x16xf32>
    %c0_392 = arith.constant 0 : index
    %c13_393 = arith.constant 13 : index
    %c1_394 = arith.constant 1 : index
    %c1_395 = arith.constant 1 : index
    %546 = vector.load %arg5[%c0_392, %c13_393, %c1_394, %c1_395] : memref<2x16x18x18xf32, #tpu.memory_space<vmem>>, vector<2x1x16x16xf32>
    tpu.vector_store %arg5[%c0_392, %c13_393, %c1_394, %c1_395], %545 {strides = array<i32>} : memref<2x16x18x18xf32, #tpu.memory_space<vmem>>, vector<2x1x16x16xf32>,
    %c0_396 = arith.constant 0 : index
    %c14 = arith.constant 14 : index
    %c0_397 = arith.constant 0 : index
    %c0_398 = arith.constant 0 : index
    %547 = vector.load %arg3[%c0_396, %c14, %c0_397, %c0_398] : memref<2x16x18x18xf32, #tpu.memory_space<vmem>>, vector<2x1x18x18xf32>
    %c0_399 = arith.constant 0 : index
    %c14_400 = arith.constant 14 : index
    %c0_401 = arith.constant 0 : index
    %c0_402 = arith.constant 0 : index
    %548 = vector.load %arg4[%c0_399, %c14_400, %c0_401, %c0_402] : memref<2x16x18x18xf32, #tpu.memory_space<vmem>>, vector<2x1x18x18xf32>
    %549 = arith.addf %547, %548 : vector<2x1x18x18xf32>
    %c14_403 = arith.constant 14 : index
    %550 = memref.load %arg2[%c14_403] : memref<16xf32, #tpu.memory_space<smem>>
    %551 = vector.broadcast %550 : f32 to vector<2x1x18x18xf32>
    %552 = arith.addf %549, %551 : vector<2x1x18x18xf32>
    %c0_404 = arith.constant 0 : index
    %c14_405 = arith.constant 14 : index
    %c0_406 = arith.constant 0 : index
    %c0_407 = arith.constant 0 : index
    %553 = vector.load %arg5[%c0_404, %c14_405, %c0_406, %c0_407] : memref<2x16x18x18xf32, #tpu.memory_space<vmem>>, vector<2x1x18x18xf32>
    tpu.vector_store %arg5[%c0_404, %c14_405, %c0_406, %c0_407], %552 {strides = array<i32>} : memref<2x16x18x18xf32, #tpu.memory_space<vmem>>, vector<2x1x18x18xf32>,
    %c14_408 = arith.constant 14 : index
    %c0_409 = arith.constant 0 : index
    %554 = memref.load %arg1[%c14_408, %c0_409] : memref<16x6xf32, #tpu.memory_space<smem>>
    %555 = vector.extract_strided_slice %0 {offsets = [0, 0, 0, 0], sizes = [2, 1, 16, 16], strides = [1, 1, 1, 1]} : vector<2x6x16x16xf32> to vector<2x1x16x16xf32>
    %556 = vector.broadcast %554 : f32 to vector<2x1x16x16xf32>
    %557 = arith.mulf %556, %555 : vector<2x1x16x16xf32>
    %c14_410 = arith.constant 14 : index
    %c1_411 = arith.constant 1 : index
    %558 = memref.load %arg1[%c14_410, %c1_411] : memref<16x6xf32, #tpu.memory_space<smem>>
    %559 = vector.extract_strided_slice %0 {offsets = [0, 1, 0, 0], sizes = [2, 1, 16, 16], strides = [1, 1, 1, 1]} : vector<2x6x16x16xf32> to vector<2x1x16x16xf32>
    %560 = vector.broadcast %558 : f32 to vector<2x1x16x16xf32>
    %561 = arith.mulf %560, %559 : vector<2x1x16x16xf32>
    %562 = arith.addf %557, %561 : vector<2x1x16x16xf32>
    %c14_412 = arith.constant 14 : index
    %c2_413 = arith.constant 2 : index
    %563 = memref.load %arg1[%c14_412, %c2_413] : memref<16x6xf32, #tpu.memory_space<smem>>
    %564 = vector.extract_strided_slice %0 {offsets = [0, 2, 0, 0], sizes = [2, 1, 16, 16], strides = [1, 1, 1, 1]} : vector<2x6x16x16xf32> to vector<2x1x16x16xf32>
    %565 = vector.broadcast %563 : f32 to vector<2x1x16x16xf32>
    %566 = arith.mulf %565, %564 : vector<2x1x16x16xf32>
    %567 = arith.addf %562, %566 : vector<2x1x16x16xf32>
    %c14_414 = arith.constant 14 : index
    %c3_415 = arith.constant 3 : index
    %568 = memref.load %arg1[%c14_414, %c3_415] : memref<16x6xf32, #tpu.memory_space<smem>>
    %569 = vector.extract_strided_slice %0 {offsets = [0, 3, 0, 0], sizes = [2, 1, 16, 16], strides = [1, 1, 1, 1]} : vector<2x6x16x16xf32> to vector<2x1x16x16xf32>
    %570 = vector.broadcast %568 : f32 to vector<2x1x16x16xf32>
    %571 = arith.mulf %570, %569 : vector<2x1x16x16xf32>
    %572 = arith.addf %567, %571 : vector<2x1x16x16xf32>
    %c14_416 = arith.constant 14 : index
    %c4_417 = arith.constant 4 : index
    %573 = memref.load %arg1[%c14_416, %c4_417] : memref<16x6xf32, #tpu.memory_space<smem>>
    %574 = vector.extract_strided_slice %0 {offsets = [0, 4, 0, 0], sizes = [2, 1, 16, 16], strides = [1, 1, 1, 1]} : vector<2x6x16x16xf32> to vector<2x1x16x16xf32>
    %575 = vector.broadcast %573 : f32 to vector<2x1x16x16xf32>
    %576 = arith.mulf %575, %574 : vector<2x1x16x16xf32>
    %577 = arith.addf %572, %576 : vector<2x1x16x16xf32>
    %c14_418 = arith.constant 14 : index
    %c5_419 = arith.constant 5 : index
    %578 = memref.load %arg1[%c14_418, %c5_419] : memref<16x6xf32, #tpu.memory_space<smem>>
    %579 = vector.extract_strided_slice %0 {offsets = [0, 5, 0, 0], sizes = [2, 1, 16, 16], strides = [1, 1, 1, 1]} : vector<2x6x16x16xf32> to vector<2x1x16x16xf32>
    %580 = vector.broadcast %578 : f32 to vector<2x1x16x16xf32>
    %581 = arith.mulf %580, %579 : vector<2x1x16x16xf32>
    %582 = arith.addf %577, %581 : vector<2x1x16x16xf32>
    %583 = vector.extract_strided_slice %552 {offsets = [0, 0, 1, 1], sizes = [2, 1, 16, 16], strides = [1, 1, 1, 1]} : vector<2x1x18x18xf32> to vector<2x1x16x16xf32>
    %584 = arith.addf %583, %582 : vector<2x1x16x16xf32>
    %c0_420 = arith.constant 0 : index
    %c14_421 = arith.constant 14 : index
    %c1_422 = arith.constant 1 : index
    %c1_423 = arith.constant 1 : index
    %585 = vector.load %arg5[%c0_420, %c14_421, %c1_422, %c1_423] : memref<2x16x18x18xf32, #tpu.memory_space<vmem>>, vector<2x1x16x16xf32>
    tpu.vector_store %arg5[%c0_420, %c14_421, %c1_422, %c1_423], %584 {strides = array<i32>} : memref<2x16x18x18xf32, #tpu.memory_space<vmem>>, vector<2x1x16x16xf32>,
    %c0_424 = arith.constant 0 : index
    %c15 = arith.constant 15 : index
    %c0_425 = arith.constant 0 : index
    %c0_426 = arith.constant 0 : index
    %586 = vector.load %arg3[%c0_424, %c15, %c0_425, %c0_426] : memref<2x16x18x18xf32, #tpu.memory_space<vmem>>, vector<2x1x18x18xf32>
    %c0_427 = arith.constant 0 : index
    %c15_428 = arith.constant 15 : index
    %c0_429 = arith.constant 0 : index
    %c0_430 = arith.constant 0 : index
    %587 = vector.load %arg4[%c0_427, %c15_428, %c0_429, %c0_430] : memref<2x16x18x18xf32, #tpu.memory_space<vmem>>, vector<2x1x18x18xf32>
    %588 = arith.addf %586, %587 : vector<2x1x18x18xf32>
    %c15_431 = arith.constant 15 : index
    %589 = memref.load %arg2[%c15_431] : memref<16xf32, #tpu.memory_space<smem>>
    %590 = vector.broadcast %589 : f32 to vector<2x1x18x18xf32>
    %591 = arith.addf %588, %590 : vector<2x1x18x18xf32>
    %c0_432 = arith.constant 0 : index
    %c15_433 = arith.constant 15 : index
    %c0_434 = arith.constant 0 : index
    %c0_435 = arith.constant 0 : index
    %592 = vector.load %arg5[%c0_432, %c15_433, %c0_434, %c0_435] : memref<2x16x18x18xf32, #tpu.memory_space<vmem>>, vector<2x1x18x18xf32>
    tpu.vector_store %arg5[%c0_432, %c15_433, %c0_434, %c0_435], %591 {strides = array<i32>} : memref<2x16x18x18xf32, #tpu.memory_space<vmem>>, vector<2x1x18x18xf32>,
    %c15_436 = arith.constant 15 : index
    %c0_437 = arith.constant 0 : index
    %593 = memref.load %arg1[%c15_436, %c0_437] : memref<16x6xf32, #tpu.memory_space<smem>>
    %594 = vector.extract_strided_slice %0 {offsets = [0, 0, 0, 0], sizes = [2, 1, 16, 16], strides = [1, 1, 1, 1]} : vector<2x6x16x16xf32> to vector<2x1x16x16xf32>
    %595 = vector.broadcast %593 : f32 to vector<2x1x16x16xf32>
    %596 = arith.mulf %595, %594 : vector<2x1x16x16xf32>
    %c15_438 = arith.constant 15 : index
    %c1_439 = arith.constant 1 : index
    %597 = memref.load %arg1[%c15_438, %c1_439] : memref<16x6xf32, #tpu.memory_space<smem>>
    %598 = vector.extract_strided_slice %0 {offsets = [0, 1, 0, 0], sizes = [2, 1, 16, 16], strides = [1, 1, 1, 1]} : vector<2x6x16x16xf32> to vector<2x1x16x16xf32>
    %599 = vector.broadcast %597 : f32 to vector<2x1x16x16xf32>
    %600 = arith.mulf %599, %598 : vector<2x1x16x16xf32>
    %601 = arith.addf %596, %600 : vector<2x1x16x16xf32>
    %c15_440 = arith.constant 15 : index
    %c2_441 = arith.constant 2 : index
    %602 = memref.load %arg1[%c15_440, %c2_441] : memref<16x6xf32, #tpu.memory_space<smem>>
    %603 = vector.extract_strided_slice %0 {offsets = [0, 2, 0, 0], sizes = [2, 1, 16, 16], strides = [1, 1, 1, 1]} : vector<2x6x16x16xf32> to vector<2x1x16x16xf32>
    %604 = vector.broadcast %602 : f32 to vector<2x1x16x16xf32>
    %605 = arith.mulf %604, %603 : vector<2x1x16x16xf32>
    %606 = arith.addf %601, %605 : vector<2x1x16x16xf32>
    %c15_442 = arith.constant 15 : index
    %c3_443 = arith.constant 3 : index
    %607 = memref.load %arg1[%c15_442, %c3_443] : memref<16x6xf32, #tpu.memory_space<smem>>
    %608 = vector.extract_strided_slice %0 {offsets = [0, 3, 0, 0], sizes = [2, 1, 16, 16], strides = [1, 1, 1, 1]} : vector<2x6x16x16xf32> to vector<2x1x16x16xf32>
    %609 = vector.broadcast %607 : f32 to vector<2x1x16x16xf32>
    %610 = arith.mulf %609, %608 : vector<2x1x16x16xf32>
    %611 = arith.addf %606, %610 : vector<2x1x16x16xf32>
    %c15_444 = arith.constant 15 : index
    %c4_445 = arith.constant 4 : index
    %612 = memref.load %arg1[%c15_444, %c4_445] : memref<16x6xf32, #tpu.memory_space<smem>>
    %613 = vector.extract_strided_slice %0 {offsets = [0, 4, 0, 0], sizes = [2, 1, 16, 16], strides = [1, 1, 1, 1]} : vector<2x6x16x16xf32> to vector<2x1x16x16xf32>
    %614 = vector.broadcast %612 : f32 to vector<2x1x16x16xf32>
    %615 = arith.mulf %614, %613 : vector<2x1x16x16xf32>
    %616 = arith.addf %611, %615 : vector<2x1x16x16xf32>
    %c15_446 = arith.constant 15 : index
    %c5_447 = arith.constant 5 : index
    %617 = memref.load %arg1[%c15_446, %c5_447] : memref<16x6xf32, #tpu.memory_space<smem>>
    %618 = vector.extract_strided_slice %0 {offsets = [0, 5, 0, 0], sizes = [2, 1, 16, 16], strides = [1, 1, 1, 1]} : vector<2x6x16x16xf32> to vector<2x1x16x16xf32>
    %619 = vector.broadcast %617 : f32 to vector<2x1x16x16xf32>
    %620 = arith.mulf %619, %618 : vector<2x1x16x16xf32>
    %621 = arith.addf %616, %620 : vector<2x1x16x16xf32>
    %622 = vector.extract_strided_slice %591 {offsets = [0, 0, 1, 1], sizes = [2, 1, 16, 16], strides = [1, 1, 1, 1]} : vector<2x1x18x18xf32> to vector<2x1x16x16xf32>
    %623 = arith.addf %622, %621 : vector<2x1x16x16xf32>
    %c0_448 = arith.constant 0 : index
    %c15_449 = arith.constant 15 : index
    %c1_450 = arith.constant 1 : index
    %c1_451 = arith.constant 1 : index
    %624 = vector.load %arg5[%c0_448, %c15_449, %c1_450, %c1_451] : memref<2x16x18x18xf32, #tpu.memory_space<vmem>>, vector<2x1x16x16xf32>
    tpu.vector_store %arg5[%c0_448, %c15_449, %c1_450, %c1_451], %623 {strides = array<i32>} : memref<2x16x18x18xf32, #tpu.memory_space<vmem>>, vector<2x1x16x16xf32>,
    return
  }
}

</mosaic_0001>

<bundles_post_ra>
// kernel: model_forward.1
= control target key start
LH: loop header
LB: loop body
LE: loop exit
PB: predicated region body
PF: predicated region fallthrough
CT: control target
= control target key end

     0   :  { %10 = vsyncpa [#allocation3], 0  ;;  %s6006_s0 = inlined_call_operand.vmem [shape: f32[2,6,16,16], index: 0, kind: input, shape index: {}]   ;;  %s6007_s1 = inlined_call_operand.vmem [shape: f32[16,6], index: 1, kind: input, shape index: {}]   ;;  %s6008_s2 = inlined_call_operand.vmem [shape: f32[16], index: 2, kind: input, shape index: {}]   ;;  %s6009_s3 = inlined_call_operand.vmem [shape: f32[2,16,18,18], index: 3, kind: input, shape index: {}]   ;;  %s6010_s4 = inlined_call_operand.vmem [shape: f32[2,16,18,18], index: 4, kind: input, shape index: {}]   ;;  %s6011_s5 = inlined_call_operand.vmem [shape: f32[2,16,18,18], index: 5, kind: output, shape index: {}]  }
   0x1   :  { %s19_s20 = sshll.u32 %s6007_s1, 4  ;;  %s20_s20 = int_to_ptr.vmem [resolvable:$true] %s19_s20 }
   0x2   :  { %11 = vsyncpa [#allocation5], 0  ;;  %s32_s23 = sshll.u32 %s6008_s2, 4  ;;  %s2699_s24 = scalar_lea.vmem %s20_s20, 256  ;;  %s33_s23 = int_to_ptr.vmem [resolvable:$true] %s32_s23 }
   0x3   :  { %p2700_p0 = scmp.ne.s32.totalorder %s20_s20, %s2699_s24  ;;  %p2704_p1 = scmp.lt.s32.totalorder %s20_s20, %s20_s20 }
   0x4   :  { %p2705_p2 = scmp.lt.s32.totalorder %s2699_s24, %s2699_s24 }
   0x6   :  { %p2706_p3 = por %p2705_p2, %p2704_p1 }
   0x8   :  { %p2707_p4 = pnand %p2706_p3, %p2700_p0 }
   0xa   :  { %2710 = shalt.err (!%p2707_p4)
}
   0xb   :  { %s2727_s25 = smov [#allocation2]   ;;  %s2728_s26 = smov 128  }
   0xc   :  { %s2729_s27 = smov 8   ;;  %s2711_s28 = scalar_lea.vmem %s33_s23, 16 }
   0xd   :  { %25 = dma.vmem_to_smem %s20_s20, 256, %s2727_s25, [#allocation3], %s2728_s26, %s2728_s26, %s2729_s27  }
   0xe   :  { %p2712_p5 = scmp.ne.s32.totalorder %s33_s23, %s2711_s28  ;;  %p2716_p6 = scmp.lt.s32.totalorder %s33_s23, %s33_s23 }
   0xf   :  { %p2717_p7 = scmp.lt.s32.totalorder %s2711_s28, %s2711_s28 }
  0x11   :  { %p2718_p8 = por %p2717_p7, %p2716_p6 }
  0x13   :  { %p2719_p9 = pnand %p2718_p8, %p2712_p5 }
  0x15   :  { %2722 = shalt.err (!%p2719_p9)
}
  0x16   :  { %s2730_s1 = smov [#allocation4]  }
  0x17   :  { %35 = dma.vmem_to_smem %s33_s23, 16, %s2730_s1, [#allocation5]  }
  0x18   :  { %2723 = dma.done.wait [#allocation3], 256  }
  0x19   :  { %2724 = vsyncadd [#allocation3], 4294967040 }
  0x1a   :  { %2725 = dma.done.wait [#allocation5], 16  }
  0x1b   :  { %2726 = vsyncadd [#allocation5], 4294967280 }
  0x1c   :  { %46 = sfence }
  0x1d   :  { %s105_s2 = sld [smem:[#allocation2]]  ;;  %s2176_s29 = sld [smem:[#allocation2 + $0x1]]  ;;  %v2771_v0 = vld [vmem:[%s6006_s0 + $0x8] sm:$0xff]  ;;  %v2776_v1 = vld [vmem:[%s6006_s0 + $0x18] sm:$0xff]  ;;  %v2781_v2 = vld [vmem:[%s6006_s0] sm:$0xff]  ;;  %vm165_vm0 = vcmask 1040384  }
  0x1e   :  { %s2177_s30 = sld [smem:[#allocation2 + $0x2]]  ;;  %s2178_s6 = sld [smem:[#allocation2 + $0x3]]  ;;  %v2786_v3 = vld [vmem:[%s6006_s0 + $0x60] sm:$0xff]  ;;  %v2791_v4 = vld [vmem:[%s6006_s0 + $0x28] sm:$0xff]  ;;  %v2796_v5 = vld [vmem:[%s6006_s0 + $0x38] sm:$0xff]  ;;  %vm100_vm1 = vcmask 140288  }
  0x1f   :  { %s2179_s9 = sld [smem:[#allocation2 + $0x4]]  ;;  %s2180_s10 = sld [smem:[#allocation2 + $0x5]]  ;;  %v2801_v6 = vld [vmem:[%s6006_s0 + $0x10] sm:$0xff]  ;;  %v2808_v7 = vld [vmem:[%s6006_s0 + $0x48] sm:$0xff]  ;;  %v2813_v8 = vld [vmem:[%s6006_s0 + $0x58] sm:$0xff]  ;;  %vm200_vm2 = vcmask 131080  }
  0x20   :  { %s2803_s23 = sld [smem:[#allocation2 + $0x80]]  ;;  %v2820_v10 = vld [vmem:[%s6006_s0 + $0x20] sm:$0xff]  ;;  %s2822_s7 = sld [smem:[#allocation2 + $0x81]]  ;;  %v2831_v13 = vld [vmem:[%s6006_s0 + $0x30] sm:$0xff]  ;;  %v2936_v59 = vld [vmem:[%s6006_s0 + $0x68] sm:$0xff]  ;;  %vm97_vm3 = vcmask 146432  }
  0x21   :  { %v2836_v14 = vld [vmem:[%s6006_s0 + $0x40] sm:$0xff]  ;;  %s2842_s13 = sld [smem:[#allocation2 + $0x82]]  ;;  %v2855_v20 = vld [vmem:[%s6006_s0 + $0x50] sm:$0xff]  ;;  %s2880_s20 = sld [smem:[#allocation2 + $0x84]]  ;;  %v2941_v60 = vld [vmem:[%s6006_s0 + $0x78] sm:$0xff]  ;;  %vm196_vm4 = vcmask 138249  }
  0x22   :  { %v2862_v22 = vld [vmem:[%s6006_s0 + $0x70] sm:$0xff]  ;;  %v2873_v27 = vld [vmem:[%s6006_s0 + $0x80] sm:$0xff]  ;;  %s2882_s21 = sld [smem:[#allocation2 + $0x85]]  ;;  %s2994_s14 = sld [smem:[#allocation2 + $0x100]]  ;;  %vm198_vm5 = vcmask 138248  }
  0x23   :  { %v2815_v9 = vstv %s105_s2  ;;  %v2826_v12 = vstv %s2176_s29  ;;  %s2844_s29 = sld [smem:[#allocation2 + $0x83]]  ;;  %v2878_v28 = vld [vmem:[%s6006_s0 + $0x90] sm:$0xff]  ;;  %v2890_v33 = vld [vmem:[%s6006_s0 + $0xa0] sm:$0xff]  ;;  %s2996_s15 = sld [smem:[#allocation2 + $0x101]] }
  0x24   :  { %v108_v11 = vmul.f32 %v2815_v9, %v2771_v0  ;;  %v107_v15 = vmul.f32 %v2815_v9, %v2781_v2  ;;  %v109_v16 = vmul.f32 %v2815_v9, %v2786_v3  ;;  %v114_v17 = vmul.f32 %v2826_v12, %v2776_v1  ;;  %v2895_v34 = vld [vmem:[%s6006_s0 + $0xb0] sm:$0xff]  ;;  %s3013_s16 = sld [smem:[#allocation2 + $0x102]]  ;;  %s3015_s17 = sld [smem:[#allocation2 + $0x103]] }
  0x25   :  { %v2848_v18 = vstv %s2177_s30  ;;  %v2850_v19 = vstv %s2178_s6  ;;  %v113_v21 = vmul.f32 %v2826_v12, %v2801_v6  ;;  %v142_v25 = vstv %s2179_s9  ;;  %s3029_s30 = sld [smem:[#allocation2 + $0x104]]  ;;  %s3037_s6 = sld [smem:[#allocation2 + $0x105]] }
  0x26   :  { %v124_v23 = vmul.f32 %v2848_v18, %v2791_v4  ;;  %v134_v24 = vmul.f32 %v2850_v19, %v2796_v5  ;;  %v2868_v26 = vstv %s2180_s10  ;;  %v118_v29 = vadd.f32 %v114_v17, %v108_v11  ;;  %s3054_s18 = sld [smem:[#allocation2 + $0x180]]  ;;  %s3058_s19 = sld [smem:[#allocation2 + $0x181]] }
  0x27   :  { %v144_v30 = vmul.f32 %v142_v25, %v2808_v7  ;;  %v154_v31 = vmul.f32 %v2868_v26, %v2813_v8  ;;  %v117_v32 = vadd.f32 %v113_v21, %v107_v15  ;;  %v123_v35 = vmul.f32 %v2848_v18, %v2820_v10  ;;  %v2952_v15 = vld [vmem:[%s6006_s0 + $0x88] sm:$0xff]  ;;  %s3079_s9 = sld [smem:[#allocation2 + $0x184]]  ;;  %s3081_s10 = sld [smem:[#allocation2 + $0x185]] }
  0x28   :  { %v133_v36 = vmul.f32 %v2850_v19, %v2831_v13  ;;  %v143_v37 = vmul.f32 %v142_v25, %v2836_v14  ;;  %v153_v38 = vmul.f32 %v2868_v26, %v2855_v20  ;;  %v128_v39 = vadd.f32 %v124_v23, %v118_v29  ;;  %v2966_v29 = vld [vmem:[%s6006_s0 + $0xa8] sm:$0xff]  ;;  %s3106_s22 = sld [smem:[#allocation2 + $0x200]]  ;;  %s3108_s24 = sld [smem:[#allocation2 + $0x201]] }
  0x29   :  { %v115_v40 = vmul.f32 %v2826_v12, %v2862_v22  ;;  %v125_v41 = vmul.f32 %v2848_v18, %v2873_v27  ;;  %v135_v42 = vmul.f32 %v2850_v19, %v2878_v28  ;;  %v127_v43 = vadd.f32 %v123_v35, %v117_v32  ;;  %v2971_v35 = vld [vmem:[%s6006_s0 + $0xb8] sm:$0xff]  ;;  %s3120_s25 = sld [smem:[#allocation2 + $0x203]]  ;;  %s3132_s26 = sld [smem:[#allocation2 + $0x204]] }
  0x2a   :  { %v145_v44 = vmul.f32 %v142_v25, %v2890_v33  ;;  %v155_v45 = vmul.f32 %v2868_v26, %v2895_v34  ;;  %v2914_v46 = vstv %s2803_s23  ;;  %v138_v47 = vadd.f32 %v134_v24, %v128_v39  ;;  %s3118_s23 = sld [smem:[#allocation2 + $0x202]]  ;;  %s3134_s27 = sld [smem:[#allocation2 + $0x205]] }
  0x2b   :  { %v119_v48 = vadd.f32 %v115_v40, %v109_v16  ;;  %v242_v49 = vmul.f32 %v2914_v46, %v2781_v2  ;;  %v2919_v50 = vstv %s2822_s7  ;;  %v137_v51 = vadd.f32 %v133_v36, %v127_v43  ;;  %v2957_v16 = vld [vmem:[%s6006_s0 + $0x98] sm:$0xff]  ;;  %s3143_s28 = sld [smem:[#allocation2 + $0x280]]  ;;  %s3157_s1 = sld [smem:[#allocation2 + $0x281]] }
  0x2c   :  { %v248_v52 = vmul.f32 %v2919_v50, %v2801_v6  ;;  %v2924_v53 = vstv %s2842_s13  ;;  %v2927_v54 = vstv %s2844_s29  ;;  %v148_v55 = vadd.f32 %v144_v30, %v138_v47  ;;  %s2731_s29 = smov 1   ;;  %s3172_s7 = sld [smem:[#allocation2 + $0x282]] }
  0x2d   :  { %v129_v56 = vadd.f32 %v125_v41, %v119_v48  ;;  %v258_v57 = vmul.f32 %v2924_v53, %v2820_v10  ;;  %v268_v58 = vmul.f32 %v2927_v54, %v2831_v13  ;;  %v147_v61 = vadd.f32 %v143_v37, %v137_v51  ;;  %s3174_s8 = sld [smem:[#allocation2 + $0x283]]  ;;  %s3183_s11 = sld [smem:[#allocation2 + $0x284]] }
  0x2e   :  { %v252_v62 = vadd.f32 %v248_v52, %v242_v49  ;;  %v2944_v63 = vstv %s2880_s20  ;;  %v2947_v11 = vstv %s2882_s21  ;;  %v158_v17 = vadd.f32 %v154_v31, %v148_v55  ;;  %s3060_s20 = sld [smem:[#allocation2 + $0x182]]  ;;  %s3071_s21 = sld [smem:[#allocation2 + $0x183]] }
  0x2f   :  { %v139_v21 = vadd.f32 %v135_v42, %v129_v56  ;;  %v278_v23 = vmul.f32 %v2944_v63, %v2836_v14  ;;  %v288_v24 = vmul.f32 %v2947_v11, %v2855_v20  ;;  %v157_v30 = vadd.f32 %v153_v38, %v147_v61  ;;  %s3185_s12 = sld [smem:[#allocation2 + $0x285]]  ;;  %s3209_s2 = sld [smem:[#allocation2 + $0x300]] }
  0x30   :  { %v262_v32 = vadd.f32 %v258_v57, %v252_v62  ;;  %v110_v31 = vmul.f32 %v2815_v9, %v2936_v59  ;;  %v116_v36 = vmul.f32 %v2826_v12, %v2941_v60  ;;  %v167_v37 = vrot.slane %v158_v17, 7  ;;  %s3216_s13 = sld [smem:[#allocation2 + $0x301]] }
  0x31   :  { %v149_v39 = vadd.f32 %v145_v44, %v139_v21  ;;  %v126_v40 = vmul.f32 %v2848_v18, %v2952_v15  ;;  %v136_v38 = vmul.f32 %v2850_v19, %v2957_v16  ;;  %v166_v41 = vrot.slane %v157_v30, 7 }
  0x32   :  { %v272_v42 = vadd.f32 %v268_v58, %v262_v32  ;;  %v120_v43 = vadd.f32 %v116_v36, %v110_v31  ;;  %v146_v47 = vmul.f32 %v142_v25, %v2966_v29  ;;  %176 = vrot.lane.b32.xlu1 %v167_v37, %s2731_s29  ;;  %v156_v12 = vmul.f32 %v2868_v26, %v2971_v35 }
  0x33   :  { %v159_v9 = vadd.f32 %v155_v45, %v149_v39  ;;  %v243_v44 = vmul.f32 %v2914_v46, %v2771_v0  ;;  %v249_v18 = vmul.f32 %v2919_v50, %v2776_v1  ;;  %172 = vrot.lane.b32.xlu0 %v166_v41, %s2731_s29  ;;  %v259_v25 = vmul.f32 %v2924_v53, %v2791_v4 }
  0x34   :  { %v282_v19 = vadd.f32 %v278_v23, %v272_v42  ;;  %v130_v48 = vadd.f32 %v126_v40, %v120_v43  ;;  %v269_v49 = vmul.f32 %v2927_v54, %v2796_v5  ;;  %v279_v51 = vmul.f32 %v2944_v63, %v2808_v7 }
  0x35   :  { %v169_v26 = vrot.slane %v159_v9, 7  ;;  %v253_v45 = vadd.f32 %v249_v18, %v243_v44  ;;  %v289_v52 = vmul.f32 %v2947_v11, %v2813_v8  ;;  %v244_v57 = vmul.f32 %v2914_v46, %v2786_v3 }
  0x36   :  { %v292_v55 = vadd.f32 %v288_v24, %v282_v19  ;;  %v140_v56 = vadd.f32 %v136_v38, %v130_v48  ;;  %v250_v58 = vmul.f32 %v2919_v50, %v2862_v22  ;;  %v260_v62 = vmul.f32 %v2924_v53, %v2873_v27 }
  0x37   :  { %178 = vrot.lane.b32.xlu1 %v169_v26, %s2731_s29  ;;  %v263_v61 = vadd.f32 %v259_v25, %v253_v45  ;;  %v270_v17 = vmul.f32 %v2927_v54, %v2878_v28  ;;  %v280_v21 = vmul.f32 %v2944_v63, %v2890_v33  ;;  %v290_v32 = vmul.f32 %v2947_v11, %v2895_v34 }
  0x38   :  { %v300_v23 = vrot.slane %v292_v55, 7  ;;  %v150_v24 = vadd.f32 %v146_v47, %v140_v56  ;;  %v254_v30 = vadd.f32 %v250_v58, %v244_v57  ;;  %v168_v36 = vsel %vm165_vm0, %v166_v41, %v167_v37 }
  0x39   :  { %v273_v31 = vadd.f32 %v269_v49, %v263_v61  ;;  %v245_v39 = vmul.f32 %v2914_v46, %v2936_v59  ;;  %v251_v40 = vmul.f32 %v2919_v50, %v2941_v60  ;;  %v261_v43 = vmul.f32 %v2924_v53, %v2952_v15 }
  0x3a   :  { %306 = vrot.lane.b32.xlu0 %v300_v23, %s2731_s29  ;;  %v160_v38 = vadd.f32 %v156_v12, %v150_v24  ;;  %v264_v42 = vadd.f32 %v260_v62, %v254_v30  ;;  %v271_v47 = vmul.f32 %v2927_v54, %v2957_v16  ;;  %v281_v46 = vmul.f32 %v2944_v63, %v2966_v29 }
  0x3b   :  { %v283_v37 = vadd.f32 %v279_v51, %v273_v31  ;;  %v255_v41 = vadd.f32 %v251_v40, %v245_v39  ;;  %v291_v50 = vmul.f32 %v2947_v11, %v2971_v35  ;;  %v372_v44 = vstv %s2994_s14  ;;  %s3220_s14 = sld [smem:[#allocation2 + $0x302]] }
  0x3c   :  { %v170_v9 = vrot.slane %v160_v38, 7  ;;  %v274_v12 = vadd.f32 %v270_v17, %v264_v42  ;;  %v378_v18 = vstv %s2996_s15  ;;  %v373_v19 = vmul.f32 %v372_v44, %v2781_v2  ;;  %s3222_s15 = sld [smem:[#allocation2 + $0x303]] }
  0x3d   :  { %v293_v53 = vadd.f32 %v289_v52, %v283_v37  ;;  %v265_v54 = vadd.f32 %v261_v43, %v255_v41  ;;  %v374_v48 = vmul.f32 %v372_v44, %v2771_v0  ;;  %v379_v11 = vmul.f32 %v378_v18, %v2801_v6 }
  0x3e   :  { %182 = vrot.lane.b32.xlu1 %v170_v9, %s2731_s29  ;;  %v284_v63 = vadd.f32 %v280_v21, %v274_v12  ;;  %v171_v25 = vsel %vm165_vm0, %v169_v26, %v170_v9  ;;  %v380_v49 = vmul.f32 %v378_v18, %v2776_v1  ;;  %v388_v55 = vstv %s3013_s16  ;;  %s3237_s16 = sld [smem:[#allocation2 + $0x304]] }
  0x3f   :  { %v301_v45 = vrot.slane %v293_v53, 7  ;;  %v275_v51 = vadd.f32 %v271_v47, %v265_v54  ;;  %v398_v56 = vstv %s3015_s17  ;;  %v383_v57 = vadd.f32 %v379_v11, %v373_v19  ;;  %s3239_s17 = sld [smem:[#allocation2 + $0x305]] }
  0x40   :  { %v294_v52 = vadd.f32 %v290_v32, %v284_v63  ;;  %v384_v58 = vadd.f32 %v380_v49, %v374_v48  ;;  %v389_v61 = vmul.f32 %v388_v55, %v2820_v10  ;;  %v390_v26 = vmul.f32 %v388_v55, %v2791_v4 }
  0x41   :  { %310 = vrot.lane.b32.xlu0 %v301_v45, %s2731_s29  ;;  %v285_v62 = vadd.f32 %v281_v46, %v275_v51  ;;  %v302_v17 = vsel %vm165_vm0, %v300_v23, %v301_v45  ;;  %v399_v21 = vmul.f32 %v398_v56, %v2831_v13  ;;  %v400_v31 = vmul.f32 %v398_v56, %v2796_v5 }
  0x42   :  { %v303_v24 = vrot.slane %v294_v52, 7  ;;  %v393_v30 = vadd.f32 %v389_v61, %v383_v57  ;;  %v408_v39 = vstv %s3029_s30  ;;  %v394_v40 = vadd.f32 %v390_v26, %v384_v58  ;;  %s3261_s30 = sld [smem:[#allocation2 + $0x380]] }
  0x43   :  { %v295_v32 = vadd.f32 %v291_v50, %v285_v62  ;;  %v409_v38 = vmul.f32 %v408_v39, %v2836_v14  ;;  %v410_v42 = vmul.f32 %v408_v39, %v2808_v7  ;;  %v418_v43 = vstv %s3037_s6  ;;  %s3268_s6 = sld [smem:[#allocation2 + $0x381]] }
  0x44   :  { %312 = vrot.lane.b32.xlu1 %v303_v24, %s2731_s29  ;;  %v403_v23 = vadd.f32 %v399_v21, %v393_v30  ;;  %v375_v47 = vmul.f32 %v372_v44, %v2786_v3  ;;  %v381_v37 = vmul.f32 %v378_v18, %v2862_v22  ;;  %v404_v46 = vadd.f32 %v400_v31, %v394_v40 }
  0x45   :  { %174 = vrot.lane.b32.xlu0 %v168_v36, %s2731_s29  ;;  %v304_v41 = vrot.slane %v295_v32, 7  ;;  %v419_v50 = vmul.f32 %v418_v43, %v2855_v20  ;;  %v420_v9 = vmul.f32 %v418_v43, %v2813_v8  ;;  %v391_v54 = vmul.f32 %v388_v55, %v2873_v27 }
  0x46   :  { %v413_v12 = vadd.f32 %v409_v38, %v403_v23  ;;  %v385_v53 = vadd.f32 %v381_v37, %v375_v47  ;;  %v401_v19 = vmul.f32 %v398_v56, %v2878_v28  ;;  %v414_v63 = vadd.f32 %v410_v42, %v404_v46 }
  0x47   :  { %v305_v48 = vsel %vm165_vm0, %v303_v24, %v304_v41  ;;  %v411_v11 = vmul.f32 %v408_v39, %v2890_v33  ;;  %v421_v36 = vmul.f32 %v418_v43, %v2895_v34  ;;  %v376_v51 = vmul.f32 %v372_v44, %v2936_v59 }
  0x48   :  { %316 = vrot.lane.b32.xlu1 %v304_v41, %s2731_s29  ;;  %v423_v49 = vadd.f32 %v419_v50, %v413_v12  ;;  %v395_v45 = vadd.f32 %v391_v54, %v385_v53  ;;  %v382_v52 = vmul.f32 %v378_v18, %v2941_v60  ;;  %v424_v57 = vadd.f32 %v420_v9, %v414_v63 }
  0x49   :  { %180 = vrot.lane.b32.xlu0 %v171_v25, %s2731_s29  ;;  %v392_v58 = vmul.f32 %v388_v55, %v2952_v15  ;;  %v402_v61 = vmul.f32 %v398_v56, %v2957_v16  ;;  %v412_v62 = vmul.f32 %v408_v39, %v2966_v29  ;;  %v422_v44 = vmul.f32 %v418_v43, %v2971_v35 }
  0x4a   :  { %v431_v26 = vrot.slane %v423_v49, 7  ;;  %v405_v21 = vadd.f32 %v401_v19, %v395_v45  ;;  %v386_v24 = vadd.f32 %v382_v52, %v376_v51  ;;  %v432_v30 = vrot.slane %v424_v57, 7 }
  0x4b   :  { %v503_v18 = vstv %s3054_s18  ;;  %v509_v31 = vstv %s3058_s19  ;;  %v519_v32 = vstv %s3060_s20  ;;  %v529_v37 = vstv %s3071_s21  ;;  %s3273_s18 = sld [smem:[#allocation2 + $0x382]]  ;;  %s3275_s19 = sld [smem:[#allocation2 + $0x383]] }
  0x4c   :  { %308 = vrot.lane.b32.xlu1 %v302_v17, %s2731_s29  ;;  %v415_v25 = vadd.f32 %v411_v11, %v405_v21  ;;  %v396_v40 = vadd.f32 %v392_v58, %v386_v24  ;;  %v504_v55 = vmul.f32 %v503_v18, %v2781_v2  ;;  %v505_v56 = vmul.f32 %v503_v18, %v2771_v0  ;;  %s3288_s20 = sld [smem:[#allocation2 + $0x384]]  ;;  %s3290_s21 = sld [smem:[#allocation2 + $0x385]] }
  0x4d   :  { %314 = vrot.lane.b32.xlu0 %v305_v48, %s2731_s29  ;;  %v433_v39 = vsel %vm165_vm0, %v431_v26, %v432_v30  ;;  %v510_v38 = vmul.f32 %v509_v31, %v2801_v6  ;;  %v511_v42 = vmul.f32 %v509_v31, %v2776_v1  ;;  %v520_v23 = vmul.f32 %v519_v32, %v2820_v10 }
  0x4e   :  { %v425_v43 = vadd.f32 %v421_v36, %v415_v25  ;;  %v406_v17 = vadd.f32 %v402_v61, %v396_v40  ;;  %v521_v47 = vmul.f32 %v519_v32, %v2791_v4  ;;  %v530_v50 = vmul.f32 %v529_v37, %v2831_v13 }
  0x4f   :  { %v514_v41 = vadd.f32 %v510_v38, %v504_v55  ;;  %v515_v46 = vadd.f32 %v511_v42, %v505_v56  ;;  %v531_v9 = vmul.f32 %v529_v37, %v2796_v5  ;;  %v539_v54 = vstv %s3079_s9  ;;  %s3311_s9 = sld [smem:[#allocation2 + $0x400]] }
  0x50   :  { %439 = vrot.lane.b32.xlu1 %v433_v39, %s2731_s29  ;;  %v434_v12 = vrot.slane %v425_v43, 7  ;;  %v416_v53 = vadd.f32 %v412_v62, %v406_v17  ;;  %v549_v19 = vstv %s3081_s10  ;;  %v540_v11 = vmul.f32 %v539_v54, %v2836_v14  ;;  %s3318_s10 = sld [smem:[#allocation2 + $0x401]] }
  0x51   :  { %437 = vrot.lane.b32.xlu0 %v431_v26, %s2731_s29  ;;  %v524_v48 = vadd.f32 %v520_v23, %v514_v41  ;;  %v525_v63 = vadd.f32 %v521_v47, %v515_v46  ;;  %v541_v36 = vmul.f32 %v539_v54, %v2808_v7  ;;  %v550_v45 = vmul.f32 %v549_v19, %v2855_v20 }
  0x52   :  { %v426_v49 = vadd.f32 %v422_v44, %v416_v53  ;;  %v551_v51 = vmul.f32 %v549_v19, %v2813_v8  ;;  %v506_v52 = vmul.f32 %v503_v18, %v2786_v3  ;;  %v512_v61 = vmul.f32 %v509_v31, %v2862_v22 }
  0x53   :  { %v534_v57 = vadd.f32 %v530_v50, %v524_v48  ;;  %v535_v58 = vadd.f32 %v531_v9, %v525_v63  ;;  %v522_v62 = vmul.f32 %v519_v32, %v2873_v27  ;;  %v532_v21 = vmul.f32 %v529_v37, %v2878_v28 }
  0x54   :  { %443 = vrot.lane.b32.xlu1 %v434_v12, %s2731_s29  ;;  %v435_v26 = vrot.slane %v426_v49, 7  ;;  %v542_v24 = vmul.f32 %v539_v54, %v2890_v33  ;;  %v552_v44 = vmul.f32 %v549_v19, %v2895_v34  ;;  %v516_v55 = vadd.f32 %v512_v61, %v506_v52 }
  0x55   :  { %441 = vrot.lane.b32.xlu0 %v432_v30, %s2731_s29  ;;  %v544_v25 = vadd.f32 %v540_v11, %v534_v57  ;;  %v545_v40 = vadd.f32 %v541_v36, %v535_v58  ;;  %v507_v56 = vmul.f32 %v503_v18, %v2936_v59  ;;  %v513_v38 = vmul.f32 %v509_v31, %v2941_v60 }
  0x56   :  { %v436_v39 = vsel %vm165_vm0, %v434_v12, %v435_v26  ;;  %v523_v42 = vmul.f32 %v519_v32, %v2952_v15  ;;  %v533_v23 = vmul.f32 %v529_v37, %v2957_v16  ;;  %v526_v17 = vadd.f32 %v522_v62, %v516_v55 }
  0x57   :  { %v554_v30 = vadd.f32 %v550_v45, %v544_v25  ;;  %v555_v43 = vadd.f32 %v551_v51, %v545_v40  ;;  %v543_v47 = vmul.f32 %v539_v54, %v2966_v29  ;;  %v517_v18 = vadd.f32 %v513_v38, %v507_v56 }
  0x58   :  { %447 = vrot.lane.b32.xlu1 %v435_v26, %s2731_s29  ;;  %v553_v41 = vmul.f32 %v549_v19, %v2971_v35  ;;  %v634_v31 = vstv %s3106_s22  ;;  %v640_v32 = vstv %s3108_s24  ;;  %v536_v50 = vadd.f32 %v532_v21, %v526_v17  ;;  %s3440_s24 = sld [smem:[#allocation2 + $0x481]]  ;;  %s4026_s22 = sld [smem:[#allocation2 + $0x603]] }
  0x59   :  { %445 = vrot.lane.b32.xlu0 %v436_v39, %s2731_s29  ;;  %v562_v37 = vrot.slane %v554_v30, 7  ;;  %v563_v46 = vrot.slane %v555_v43, 7  ;;  %v635_v9 = vmul.f32 %v634_v31, %v2781_v2  ;;  %v527_v12 = vadd.f32 %v523_v42, %v517_v18 }
  0x5a   :  { %v636_v53 = vmul.f32 %v634_v31, %v2771_v0  ;;  %v641_v54 = vmul.f32 %v640_v32, %v2801_v6  ;;  %v642_v48 = vmul.f32 %v640_v32, %v2776_v1  ;;  %v546_v63 = vadd.f32 %v542_v24, %v536_v50 }
  0x5b   :  { %v564_v19 = vsel %vm165_vm0, %v562_v37, %v563_v46  ;;  %v650_v11 = vstv %s3118_s23  ;;  %v660_v36 = vstv %s3120_s25  ;;  %v537_v49 = vadd.f32 %v533_v23, %v527_v12  ;;  %s3328_s23 = sld [smem:[#allocation2 + $0x402]]  ;;  %s3330_s25 = sld [smem:[#allocation2 + $0x403]] }
  0x5c   :  { %570 = vrot.lane.b32.xlu1 %v564_v19, %s2731_s29  ;;  %v645_v45 = vadd.f32 %v641_v54, %v635_v9  ;;  %v646_v51 = vadd.f32 %v642_v48, %v636_v53  ;;  %v651_v52 = vmul.f32 %v650_v11, %v2820_v10  ;;  %v556_v57 = vadd.f32 %v552_v44, %v546_v63 }
  0x5d   :  { %568 = vrot.lane.b32.xlu0 %v562_v37, %s2731_s29  ;;  %v652_v58 = vmul.f32 %v650_v11, %v2791_v4  ;;  %v661_v61 = vmul.f32 %v660_v36, %v2831_v13  ;;  %v662_v62 = vmul.f32 %v660_v36, %v2796_v5  ;;  %v547_v26 = vadd.f32 %v543_v47, %v537_v49 }
  0x5e   :  { %v655_v21 = vadd.f32 %v651_v52, %v645_v45  ;;  %v670_v24 = vstv %s3132_s26  ;;  %v680_v25 = vstv %s3134_s27  ;;  %v565_v40 = vrot.slane %v556_v57, 7  ;;  %s3343_s26 = sld [smem:[#allocation2 + $0x404]]  ;;  %s3345_s27 = sld [smem:[#allocation2 + $0x405]] }
  0x5f   :  { %v656_v55 = vadd.f32 %v652_v58, %v646_v51  ;;  %v671_v56 = vmul.f32 %v670_v24, %v2836_v14  ;;  %v672_v39 = vmul.f32 %v670_v24, %v2808_v7  ;;  %v557_v44 = vadd.f32 %v553_v41, %v547_v26 }
  0x60   :  { %v665_v38 = vadd.f32 %v661_v61, %v655_v21  ;;  %v681_v42 = vmul.f32 %v680_v25, %v2855_v20  ;;  %v682_v23 = vmul.f32 %v680_v25, %v2813_v8  ;;  %574 = vrot.lane.b32.xlu1 %v565_v40, %s2731_s29  ;;  %v637_v43 = vmul.f32 %v634_v31, %v2786_v3 }
  0x61   :  { %572 = vrot.lane.b32.xlu0 %v563_v46, %s2731_s29  ;;  %v666_v30 = vadd.f32 %v662_v62, %v656_v55  ;;  %v643_v17 = vmul.f32 %v640_v32, %v2862_v22  ;;  %v3170_v47 = vstv %s3143_s28  ;;  %v566_v18 = vrot.slane %v557_v44, 7  ;;  %s3455_s28 = sld [smem:[#allocation2 + $0x482]] }
  0x62   :  { %v675_v41 = vadd.f32 %v671_v56, %v665_v38  ;;  %v653_v37 = vmul.f32 %v650_v11, %v2873_v27  ;;  %v663_v50 = vmul.f32 %v660_v36, %v2878_v28  ;;  %v673_v12 = vmul.f32 %v670_v24, %v2890_v33 }
  0x63   :  { %v676_v9 = vadd.f32 %v672_v39, %v666_v30  ;;  %v647_v46 = vadd.f32 %v643_v17, %v637_v43  ;;  %v683_v53 = vmul.f32 %v680_v25, %v2895_v34  ;;  %v567_v54 = vsel %vm165_vm0, %v565_v40, %v566_v18 }
  0x64   :  { %v685_v48 = vadd.f32 %v681_v42, %v675_v41  ;;  %v638_v19 = vmul.f32 %v634_v31, %v2936_v59  ;;  %v644_v63 = vmul.f32 %v640_v32, %v2941_v60  ;;  %578 = vrot.lane.b32.xlu1 %v566_v18, %s2731_s29  ;;  %v654_v51 = vmul.f32 %v650_v11, %v2952_v15 }
  0x65   :  { %576 = vrot.lane.b32.xlu0 %v567_v54, %s2731_s29  ;;  %v686_v49 = vadd.f32 %v682_v23, %v676_v9  ;;  %v657_v45 = vadd.f32 %v653_v37, %v647_v46  ;;  %v771_v52 = vstv %s3157_s1  ;;  %v664_v31 = vmul.f32 %v660_v36, %v2957_v16  ;;  %s3457_s1 = sld [smem:[#allocation2 + $0x483]] }
  0x66   :  { %v693_v57 = vrot.slane %v685_v48, 7  ;;  %v648_v58 = vadd.f32 %v644_v63, %v638_v19  ;;  %v674_v32 = vmul.f32 %v670_v24, %v2966_v29  ;;  %v684_v26 = vmul.f32 %v680_v25, %v2971_v35 }
  0x67   :  { %v694_v61 = vrot.slane %v686_v49, 7  ;;  %v667_v62 = vadd.f32 %v663_v50, %v657_v45  ;;  %v766_v21 = vmul.f32 %v3170_v47, %v2781_v2  ;;  %v767_v11 = vmul.f32 %v3170_v47, %v2771_v0 }
  0x68   :  { %v658_v40 = vadd.f32 %v654_v51, %v648_v58  ;;  %v772_v55 = vmul.f32 %v771_v52, %v2801_v6  ;;  %v773_v56 = vmul.f32 %v771_v52, %v2776_v1  ;;  %v781_v24 = vstv %s3172_s7  ;;  %s3659_s7 = sld [smem:[#allocation2 + $0x504]] }
  0x69   :  { %v695_v39 = vsel %vm165_vm0, %v693_v57, %v694_v61  ;;  %699 = vrot.lane.b32.xlu0 %v693_v57, %s2731_s29  ;;  %v677_v36 = vadd.f32 %v673_v12, %v667_v62  ;;  %v791_v25 = vstv %s3174_s8  ;;  %v782_v23 = vmul.f32 %v781_v24, %v2820_v10  ;;  %s3661_s8 = sld [smem:[#allocation2 + $0x505]] }
  0x6a   :  { %701 = vrot.lane.b32.xlu1 %v695_v39, %s2731_s29  ;;  %v668_v44 = vadd.f32 %v664_v31, %v658_v40  ;;  %v776_v38 = vadd.f32 %v772_v55, %v766_v21  ;;  %v777_v42 = vadd.f32 %v773_v56, %v767_v11  ;;  %v783_v43 = vmul.f32 %v781_v24, %v2791_v4 }
  0x6b   :  { %v687_v30 = vadd.f32 %v683_v53, %v677_v36  ;;  %v792_v17 = vmul.f32 %v791_v25, %v2831_v13  ;;  %v793_v18 = vmul.f32 %v791_v25, %v2796_v5  ;;  %v801_v50 = vstv %s3183_s11  ;;  %s4062_s11 = sld [smem:[#allocation2 + $0x605]] }
  0x6c   :  { %v678_v41 = vadd.f32 %v674_v32, %v668_v44  ;;  %v786_v37 = vadd.f32 %v782_v23, %v776_v38  ;;  %v811_v9 = vstv %s3185_s12  ;;  %v787_v12 = vadd.f32 %v783_v43, %v777_v42  ;;  %s3984_s12 = sld [smem:[#allocation2 + $0x600]] }
  0x6d   :  { %v696_v46 = vrot.slane %v687_v30, 7  ;;  %703 = vrot.lane.b32.xlu0 %v694_v61, %s2731_s29  ;;  %v802_v54 = vmul.f32 %v801_v50, %v2836_v14  ;;  %v803_v53 = vmul.f32 %v801_v50, %v2808_v7  ;;  %v812_v63 = vmul.f32 %v811_v9, %v2855_v20 }
  0x6e   :  { %v688_v48 = vadd.f32 %v684_v26, %v678_v41  ;;  %v796_v19 = vadd.f32 %v792_v17, %v786_v37  ;;  %v813_v49 = vmul.f32 %v811_v9, %v2813_v8  ;;  %v797_v45 = vadd.f32 %v793_v18, %v787_v12 }
  0x6f   :  { %705 = vrot.lane.b32.xlu1 %v696_v46, %s2731_s29  ;;  %v768_v51 = vmul.f32 %v3170_v47, %v2786_v3  ;;  %v774_v57 = vmul.f32 %v771_v52, %v2862_v22  ;;  %v784_v58 = vmul.f32 %v781_v24, %v2873_v27  ;;  %v794_v61 = vmul.f32 %v791_v25, %v2878_v28 }
  0x70   :  { %v697_v31 = vrot.slane %v688_v48, 7  ;;  %v806_v32 = vadd.f32 %v802_v54, %v796_v19  ;;  %v804_v62 = vmul.f32 %v801_v50, %v2890_v33  ;;  %v807_v26 = vadd.f32 %v803_v53, %v797_v45 }
  0x71   :  { %v778_v21 = vadd.f32 %v774_v57, %v768_v51  ;;  %v814_v40 = vmul.f32 %v811_v9, %v2895_v34  ;;  %v769_v11 = vmul.f32 %v3170_v47, %v2936_v59  ;;  %v775_v39 = vmul.f32 %v771_v52, %v2941_v60 }
  0x72   :  { %v698_v55 = vsel %vm165_vm0, %v696_v46, %v697_v31  ;;  %v816_v56 = vadd.f32 %v812_v63, %v806_v32  ;;  %v785_v36 = vmul.f32 %v781_v24, %v2952_v15  ;;  %v817_v44 = vadd.f32 %v813_v49, %v807_v26 }
  0x73   :  { %709 = vrot.lane.b32.xlu1 %v697_v31, %s2731_s29  ;;  %707 = vrot.lane.b32.xlu0 %v698_v55, %s2731_s29  ;;  %v788_v47 = vadd.f32 %v784_v58, %v778_v21  ;;  %v795_v38 = vmul.f32 %v791_v25, %v2957_v16  ;;  %v896_v42 = vstv %s3209_s2  ;;  %v779_v52 = vadd.f32 %v775_v39, %v769_v11  ;;  %s3790_s2 = sld [smem:[#allocation2 + $0x580]] }
  0x74   :  { %v824_v23 = vrot.slane %v816_v56, 7  ;;  %v805_v24 = vmul.f32 %v801_v50, %v2966_v29  ;;  %v815_v30 = vmul.f32 %v811_v9, %v2971_v35  ;;  %v825_v43 = vrot.slane %v817_v44, 7 }
  0x75   :  { %v798_v17 = vadd.f32 %v794_v61, %v788_v47  ;;  %v897_v18 = vmul.f32 %v896_v42, %v2781_v2  ;;  %v898_v41 = vmul.f32 %v896_v42, %v2771_v0  ;;  %v789_v37 = vadd.f32 %v785_v36, %v779_v52 }
  0x76   :  { %v902_v46 = vstv %s3216_s13  ;;  %v912_v12 = vstv %s3220_s14  ;;  %v922_v54 = vstv %s3222_s15  ;;  %v826_v53 = vsel %vm165_vm0, %v824_v23, %v825_v43  ;;  %s3613_s15 = sld [smem:[#allocation4 + $0x1]]  ;;  %s3798_s14 = sld [smem:[#allocation2 + $0x582]] }
  0x77   :  { %830 = vrot.lane.b32.xlu0 %v824_v23, %s2731_s29  ;;  %v808_v25 = vadd.f32 %v804_v62, %v798_v17  ;;  %v903_v50 = vmul.f32 %v902_v46, %v2801_v6  ;;  %v904_v9 = vmul.f32 %v902_v46, %v2776_v1  ;;  %832 = vrot.lane.b32.xlu1 %v826_v53, %s2731_s29  ;;  %v932_v32 = vstv %s3237_s16  ;;  %s3615_s16 = sld [smem:[#allocation2 + $0x500]]  ;;  %s3796_s13 = sld [smem:[#allocation2 + $0x581]] }
  0x78   :  { %v799_v48 = vadd.f32 %v795_v38, %v789_v37  ;;  %v913_v19 = vmul.f32 %v912_v12, %v2820_v10  ;;  %v914_v63 = vmul.f32 %v912_v12, %v2791_v4  ;;  %v923_v49 = vmul.f32 %v922_v54, %v2831_v13 }
  0x79   :  { %v818_v45 = vadd.f32 %v814_v40, %v808_v25  ;;  %v907_v51 = vadd.f32 %v903_v50, %v897_v18  ;;  %v908_v57 = vadd.f32 %v904_v9, %v898_v41  ;;  %v924_v58 = vmul.f32 %v922_v54, %v2796_v5 }
  0x7a   :  { %v809_v31 = vadd.f32 %v805_v24, %v799_v48  ;;  %v942_v61 = vstv %s3239_s17  ;;  %v899_v62 = vmul.f32 %v896_v42, %v2786_v3  ;;  %v933_v55 = vmul.f32 %v932_v32, %v2836_v14  ;;  %s3623_s17 = sld [smem:[#allocation2 + $0x501]] }
  0x7b   :  { %v827_v26 = vrot.slane %v818_v45, 7  ;;  %834 = vrot.lane.b32.xlu0 %v825_v43, %s2731_s29  ;;  %v917_v21 = vadd.f32 %v913_v19, %v907_v51  ;;  %v918_v11 = vadd.f32 %v914_v63, %v908_v57  ;;  %v934_v56 = vmul.f32 %v932_v32, %v2808_v7 }
  0x7c   :  { %v819_v40 = vadd.f32 %v815_v30, %v809_v31  ;;  %v943_v39 = vmul.f32 %v942_v61, %v2855_v20  ;;  %v944_v36 = vmul.f32 %v942_v61, %v2813_v8  ;;  %v905_v38 = vmul.f32 %v902_v46, %v2862_v22 }
  0x7d   :  { %836 = vrot.lane.b32.xlu1 %v827_v26, %s2731_s29  ;;  %v927_v44 = vadd.f32 %v923_v49, %v917_v21  ;;  %v928_v47 = vadd.f32 %v924_v58, %v918_v11  ;;  %v915_v23 = vmul.f32 %v912_v12, %v2873_v27  ;;  %v925_v24 = vmul.f32 %v922_v54, %v2878_v28 }
  0x7e   :  { %v828_v52 = vrot.slane %v819_v40, 7  ;;  %v935_v30 = vmul.f32 %v932_v32, %v2890_v33  ;;  %v945_v43 = vmul.f32 %v942_v61, %v2895_v34  ;;  %v909_v18 = vadd.f32 %v905_v38, %v899_v62 }
  0x7f   :  { %v937_v8 = vadd.f32 %v933_v55, %v927_v44  ;;  %v938_v17 = vadd.f32 %v934_v56, %v928_v47  ;;  %v900_v41 = vmul.f32 %v896_v42, %v2936_v59  ;;  %v906_v53 = vmul.f32 %v902_v46, %v2941_v60 }
  0x80   :  { %v829_v37 = vsel %vm165_vm0, %v827_v26, %v828_v52  ;;  %v916_v25 = vmul.f32 %v912_v12, %v2952_v15  ;;  %v926_v50 = vmul.f32 %v922_v54, %v2957_v16  ;;  %v919_v48 = vadd.f32 %v915_v23, %v909_v18 }
  0x81   :  { %840 = vrot.lane.b32.xlu1 %v828_v52, %s2731_s29  ;;  %838 = vrot.lane.b32.xlu0 %v829_v37, %s2731_s29  ;;  %v947_v42 = vadd.f32 %v943_v39, %v937_v8  ;;  %v948_v9 = vadd.f32 %v944_v36, %v938_v17  ;;  %v1027_v19 = vstv %s3261_s30  ;;  %v910_v46 = vadd.f32 %v906_v53, %v900_v41  ;;  %s3625_s30 = sld [smem:[#allocation2 + $0x502]] }
  0x82   :  { %v936_v12 = vmul.f32 %v932_v32, %v2966_v29  ;;  %v946_v54 = vmul.f32 %v942_v61, %v2971_v35  ;;  %v1028_v63 = vmul.f32 %v1027_v19, %v2781_v2  ;;  %v929_v51 = vadd.f32 %v925_v24, %v919_v48  ;;  %v3357_v48 = vld [vmem:[%s6006_s0] sm:$0xff] }
  0x83   :  { %v955_v49 = vrot.slane %v947_v42, 7  ;;  %v956_v45 = vrot.slane %v948_v9, 7  ;;  %v1029_v57 = vmul.f32 %v1027_v19, %v2771_v0  ;;  %v920_v58 = vadd.f32 %v916_v25, %v910_v46 }
  0x84   :  { %v1033_v31 = vstv %s3268_s6  ;;  %v1043_v62 = vstv %s3273_s18  ;;  %v1053_v26 = vstv %s3275_s19  ;;  %v939_v32 = vadd.f32 %v935_v30, %v929_v51  ;;  %v3325_v30 = vld [vmem:[%s6006_s0 + $0x58] sm:$0xff]  ;;  %s3821_s19 = sld [smem:[#allocation2 + $0x583]]  ;;  %s4010_s6 = sld [smem:[#allocation2 + $0x602]] }
  0x85   :  { %v957_v21 = vsel %vm165_vm0, %v955_v49, %v956_v45  ;;  %961 = vrot.lane.b32.xlu0 %v955_v49, %s2731_s29  ;;  %v1034_v61 = vmul.f32 %v1033_v31, %v2801_v6  ;;  %v1035_v2 = vmul.f32 %v1033_v31, %v2776_v1  ;;  %v930_v11 = vadd.f32 %v926_v50, %v920_v58  ;;  %s4526_s18 = sld [smem:[#allocation2 + $0x703]] }
  0x86   :  { %963 = vrot.lane.b32.xlu1 %v957_v21, %s2731_s29  ;;  %v1044_v0 = vmul.f32 %v1043_v62, %v2820_v10  ;;  %v1045_v55 = vmul.f32 %v1043_v62, %v2791_v4  ;;  %v1054_v40 = vmul.f32 %v1053_v26, %v2831_v13  ;;  %v949_v56 = vadd.f32 %v945_v43, %v939_v32 }
  0x87   :  { %v1038_v39 = vadd.f32 %v1034_v61, %v1028_v63  ;;  %v1039_v36 = vadd.f32 %v1035_v2, %v1029_v57  ;;  %v1055_v44 = vmul.f32 %v1053_v26, %v2796_v5  ;;  %v940_v47 = vadd.f32 %v936_v12, %v930_v11  ;;  %v3364_v63 = vld [vmem:[%s6006_s0 + $0x8] sm:$0xff]  ;;  %v3397_v61 = vld [vmem:[%s6006_s0 + $0x20] sm:$0xff] }
  0x88   :  { %v1063_v6 = vstv %s3288_s20  ;;  %v1073_v38 = vstv %s3290_s21  ;;  %v1030_v1 = vmul.f32 %v1027_v19, %v2786_v3  ;;  %v958_v23 = vrot.slane %v949_v56, 7  ;;  %v3404_v11 = vld [vmem:[%s6006_s0 + $0x28] sm:$0xff]  ;;  %s3422_s20 = sld [smem:[#allocation2 + $0x480]]  ;;  %s4789_s21 = sld [smem:[#allocation2 + $0x784]] }
  0x89   :  { %965 = vrot.lane.b32.xlu0 %v956_v45, %s2731_s29  ;;  %v1048_v10 = vadd.f32 %v1044_v0, %v1038_v39  ;;  %v1049_v52 = vadd.f32 %v1045_v55, %v1039_v36  ;;  %v1064_v4 = vmul.f32 %v1063_v6, %v2836_v14  ;;  %v950_v13 = vadd.f32 %v946_v54, %v940_v47  ;;  %v3411_v55 = vld [vmem:[%s6006_s0 + $0x30] sm:$0xff] }
  0x8a   :  { %v1065_v24 = vmul.f32 %v1063_v6, %v2808_v7  ;;  %v1074_v5 = vmul.f32 %v1073_v38, %v2855_v20  ;;  %v1075_v3 = vmul.f32 %v3325_v30, %v1073_v38  ;;  %967 = vrot.lane.b32.xlu1 %v958_v23, %s2731_s29  ;;  %v1036_v8 = vmul.f32 %v1033_v31, %v2862_v22 }
  0x8b   :  { %v1058_v14 = vadd.f32 %v1054_v40, %v1048_v10  ;;  %v1059_v43 = vadd.f32 %v1055_v44, %v1049_v52  ;;  %v1046_v7 = vmul.f32 %v1043_v62, %v2873_v27  ;;  %v959_v20 = vrot.slane %v950_v13, 7  ;;  %v3418_v44 = vld [vmem:[%s6006_s0 + $0x38] sm:$0xff] }
  0x8c   :  { %v1056_v17 = vmul.f32 %v1053_v26, %v2878_v28  ;;  %v1066_v18 = vmul.f32 %v1063_v6, %v2890_v33  ;;  %v1076_v41 = vmul.f32 %v1073_v38, %v2895_v34  ;;  %v1040_v25 = vadd.f32 %v1036_v8, %v1030_v1  ;;  %v3451_v8 = vld [vmem:[%s6006_s0 + $0x50] sm:$0xff] }
  0x8d   :  { %v1068_v37 = vadd.f32 %v1064_v4, %v1058_v14  ;;  %v1069_v53 = vadd.f32 %v1065_v24, %v1059_v43  ;;  %v1031_v50 = vmul.f32 %v1027_v19, %v2936_v59  ;;  %v960_v42 = vsel %vm165_vm0, %v958_v23, %v959_v20  ;;  %v3429_v23 = vld [vmem:[%s6006_s0 + $0x60] sm:$0xff]  ;;  %v3445_v14 = vld [vmem:[%s6006_s0 + $0x48] sm:$0xff] }
  0x8e   :  { %v1037_v9 = vmul.f32 %v1033_v31, %v2941_v60  ;;  %v1047_v22 = vmul.f32 %v1043_v62, %v2952_v15  ;;  %v1057_v27 = vmul.f32 %v1053_v26, %v2957_v16  ;;  %971 = vrot.lane.b32.xlu1 %v959_v20, %s2731_s29  ;;  %969 = vrot.lane.b32.xlu0 %v960_v42, %s2731_s29  ;;  %v3350_v59 = vstv %s3311_s9  ;;  %v3382_v31 = vld [vmem:[%s6006_s0 + $0x10] sm:$0xff] }
  0x8f   :  { %v1078_v28 = vadd.f32 %v1074_v5, %v1068_v37  ;;  %v1079_v33 = vadd.f32 %v1075_v3, %v1069_v53  ;;  %v1050_v34 = vadd.f32 %v1046_v7, %v1040_v25  ;;  %v1067_v15 = vmul.f32 %v1063_v6, %v2966_v29  ;;  %v3389_v26 = vld [vmem:[%s6006_s0 + $0x18] sm:$0xff]  ;;  %v3437_v24 = vld [vmem:[%s6006_s0 + $0x40] sm:$0xff]  ;;  %v3477_v42 = vld [vmem:[%s6006_s0 + $0x90] sm:$0xff] }
  0x90   :  { %v1041_v60 = vadd.f32 %v1037_v9, %v1031_v50  ;;  %v1077_v16 = vmul.f32 %v1073_v38, %v2971_v35  ;;  %v1159_v19 = vmul.f32 %v3357_v48, %v3350_v59  ;;  %v1160_v29 = vmul.f32 %v3364_v63, %v3350_v59  ;;  %v3470_v53 = vld [vmem:[%s6006_s0 + $0x80] sm:$0xff] }
  0x91   :  { %v1086_v46 = vrot.slane %v1078_v28, 7  ;;  %v1087_v12 = vrot.slane %v1079_v33, 7  ;;  %v1060_v54 = vadd.f32 %v1056_v17, %v1050_v34  ;;  %v3369_v49 = vstv %s3318_s10  ;;  %v3490_v28 = vld [vmem:[%s6006_s0 + $0xb0] sm:$0xff]  ;;  %s4718_s10 = sld [smem:[#allocation2 + $0x780]] }
  0x92   :  { %v1051_v35 = vadd.f32 %v1047_v22, %v1041_v60  ;;  %v3372_v45 = vstv %s3328_s23  ;;  %v3375_v51 = vstv %s3330_s25  ;;  %v1165_v62 = vmul.f32 %v3382_v31, %v3369_v49  ;;  %v3484_v22 = vld [vmem:[%s6006_s0 + $0xa0] sm:$0xff]  ;;  %s3522_s23 = sld [smem:[#allocation2 + $0x484]]  ;;  %s3524_s25 = sld [smem:[#allocation2 + $0x485]] }
  0x93   :  { %v1088_v57 = vsel %vm165_vm0, %v1086_v46, %v1087_v12  ;;  %1092 = vrot.lane.b32.xlu0 %v1086_v46, %s2731_s29  ;;  %v1070_v58 = vadd.f32 %v1066_v18, %v1060_v54  ;;  %v1166_v21 = vmul.f32 %v3389_v26, %v3369_v49  ;;  %v1175_v2 = vmul.f32 %v3397_v61, %v3372_v45 }
  0x94   :  { %1094 = vrot.lane.b32.xlu1 %v1088_v57, %s2731_s29  ;;  %v1061_v32 = vadd.f32 %v1057_v27, %v1051_v35  ;;  %v1176_v0 = vmul.f32 %v3404_v11, %v3372_v45  ;;  %v1185_v40 = vmul.f32 %v3411_v55, %v3375_v51  ;;  %v1169_v39 = vadd.f32 %v1165_v62, %v1159_v19 }
  0x95   :  { %v1080_v56 = vadd.f32 %v1076_v41, %v1070_v58  ;;  %v1170_v36 = vadd.f32 %v1166_v21, %v1160_v29  ;;  %v1186_v47 = vmul.f32 %v3418_v44, %v3375_v51  ;;  %v1194_v38 = vstv %s3343_s26  ;;  %v3463_v41 = vld [vmem:[%s6006_s0 + $0x70] sm:$0xff]  ;;  %v3511_v29 = vld [vmem:[%s6006_s0 + $0x88] sm:$0xff]  ;;  %s4223_s26 = sld [smem:[#allocation2 + $0x683]] }
  0x96   :  { %v1071_v6 = vadd.f32 %v1067_v15, %v1061_v32  ;;  %v1204_v1 = vstv %s3345_s27  ;;  %v1161_v10 = vmul.f32 %v3429_v23, %v3350_v59  ;;  %v1179_v4 = vadd.f32 %v1175_v2, %v1169_v39  ;;  %v3540_v2 = vld [vmem:[%s6006_s0 + $0xb8] sm:$0xff]  ;;  %s4734_s27 = sld [smem:[#allocation2 + $0x782]] }
  0x97   :  { %v1089_v52 = vrot.slane %v1080_v56, 7  ;;  %1096 = vrot.lane.b32.xlu0 %v1087_v12, %s2731_s29  ;;  %v1180_v13 = vadd.f32 %v1176_v0, %v1170_v36  ;;  %v1195_v5 = vmul.f32 %v3437_v24, %v1194_v38  ;;  %v1196_v43 = vmul.f32 %v3445_v14, %v1194_v38  ;;  %v3504_v12 = vld [vmem:[%s6006_s0 + $0x78] sm:$0xff] }
  0x98   :  { %v1081_v3 = vadd.f32 %v1077_v16, %v1071_v6  ;;  %v1205_v7 = vmul.f32 %v3451_v8, %v1204_v1  ;;  %v1206_v20 = vmul.f32 %v3325_v30, %v1204_v1  ;;  %v1189_v17 = vadd.f32 %v1185_v40, %v1179_v4  ;;  %v3496_v16 = vld [vmem:[%s6006_s0 + $0x68] sm:$0xff] }
  0x99   :  { %1098 = vrot.lane.b32.xlu1 %v1089_v52, %s2731_s29  ;;  %v1190_v18 = vadd.f32 %v1186_v47, %v1180_v13  ;;  %v1167_v37 = vmul.f32 %v3463_v41, %v3369_v49  ;;  %v1177_v25 = vmul.f32 %v3470_v53, %v3372_v45  ;;  %v1187_v9 = vmul.f32 %v3477_v42, %v3375_v51 }
  0x9a   :  { %v1090_v50 = vrot.slane %v1081_v3, 7  ;;  %v1197_v27 = vmul.f32 %v3484_v22, %v1194_v38  ;;  %v1207_v33 = vmul.f32 %v3490_v28, %v1204_v1  ;;  %v1199_v34 = vadd.f32 %v1195_v5, %v1189_v17 }
  0x9b   :  { %v1200_v60 = vadd.f32 %v1196_v43, %v1190_v18  ;;  %v1171_v15 = vadd.f32 %v1167_v37, %v1161_v10  ;;  %v1162_v19 = vmul.f32 %v3496_v16, %v3350_v59  ;;  %v1168_v54 = vmul.f32 %v3504_v12, %v3369_v49  ;;  %v3518_v59 = vld [vmem:[%s6006_s0 + $0x98] sm:$0xff] }
  0x9c   :  { %v1091_v46 = vsel %vm165_vm0, %v1089_v52, %v1090_v50  ;;  %v1178_v35 = vmul.f32 %v3511_v29, %v3372_v45  ;;  %v1188_v57 = vmul.f32 %v3518_v59, %v3375_v51  ;;  %v1209_v49 = vadd.f32 %v1205_v7, %v1199_v34  ;;  %v3534_v51 = vld [vmem:[%s6006_s0 + $0xa8] sm:$0xff] }
  0x9d   :  { %1102 = vrot.lane.b32.xlu1 %v1090_v50, %s2731_s29  ;;  %1100 = vrot.lane.b32.xlu0 %v1091_v46, %s2731_s29  ;;  %v1210_v45 = vadd.f32 %v1206_v20, %v1200_v60  ;;  %v1181_v58 = vadd.f32 %v1177_v25, %v1171_v15  ;;  %v3529_v62 = vstv %s3422_s20  ;;  %v1172_v21 = vadd.f32 %v1168_v54, %v1162_v19  ;;  %s3569_s20 = sld [smem:[#allocation4]] }
  0x9e   :  { %v1198_v32 = vmul.f32 %v3534_v51, %v1194_v38  ;;  %v1208_v0 = vmul.f32 %v3540_v2, %v1204_v1  ;;  %v1290_v40 = vmul.f32 %v3357_v48, %v3529_v62  ;;  %v1217_v56 = vrot.slane %v1209_v49, 7 }
  0x9f   :  { %v1218_v39 = vrot.slane %v1210_v45, 7  ;;  %v1191_v36 = vadd.f32 %v1187_v9, %v1181_v58  ;;  %v1291_v47 = vmul.f32 %v3364_v63, %v3529_v62  ;;  %v1182_v6 = vadd.f32 %v1178_v35, %v1172_v21  ;;  %v73_v45 = vld [vmem:[%s6009_s3 + $0x10] sm:$0x3] }
  0xa0   :  { %v3548_v10 = vstv %s3440_s24  ;;  %v3551_v38 = vstv %s3455_s28  ;;  %v3554_v52 = vstv %s3457_s1  ;;  %v3574_v9 = vstv %s3522_s23  ;;  %s3852_s24 = sld [smem:[#allocation2 + $0x585]]  ;;  %s4060_s1 = sld [smem:[#allocation2 + $0x604]] }
  0xa1   :  { %v1219_v4 = vsel %vm165_vm0, %v1217_v56, %v1218_v39  ;;  %1223 = vrot.lane.b32.xlu0 %v1217_v56, %s2731_s29  ;;  %v1201_v1 = vadd.f32 %v1197_v27, %v1191_v36  ;;  %v1296_v13 = vmul.f32 %v3382_v31, %v3548_v10  ;;  %v1297_v5 = vmul.f32 %v3389_v26, %v3548_v10  ;;  %v79_v58 = vld [vmem:[%s6010_s4 + $0x10] sm:$0x3]  ;;  %s4221_s23 = sld [smem:[#allocation2 + $0x682]] }
  0xa2   :  { %1225 = vrot.lane.b32.xlu1 %v1219_v4, %s2731_s29  ;;  %v1192_v3 = vadd.f32 %v1188_v57, %v1182_v6  ;;  %v1306_v43 = vmul.f32 %v3397_v61, %v3551_v38  ;;  %v1307_v7 = vmul.f32 %v3404_v11, %v3551_v38  ;;  %v1316_v20 = vmul.f32 %v3411_v55, %v3554_v52 }
  0xa3   :  { %v1211_v17 = vadd.f32 %v1207_v33, %v1201_v1  ;;  %v1300_v18 = vadd.f32 %v1296_v13, %v1290_v40  ;;  %v1301_v37 = vadd.f32 %v1297_v5, %v1291_v47  ;;  %v1317_v25 = vmul.f32 %v3418_v44, %v3554_v52 }
  0xa4   :  { %v1202_v50 = vadd.f32 %v1198_v32, %v1192_v3  ;;  %v3577_v27 = vstv %s3524_s25  ;;  %v1292_v34 = vmul.f32 %v3429_v23, %v3529_v62  ;;  %v1326_v33 = vmul.f32 %v3437_v24, %v3574_v9  ;;  %v177_v46 = vpop.permute.xlu1 %176  ;;  %v71_v3 = vld [vmem:[%s6009_s3] sm:$0xff]  ;;  %s3644_s25 = sld [smem:[#allocation2 + $0x503]] }
  0xa5   :  { %v1220_v60 = vrot.slane %v1211_v17, 7  ;;  %1227 = vrot.lane.b32.xlu0 %v1218_v39, %s2731_s29  ;;  %v1310_v15 = vadd.f32 %v1306_v43, %v1300_v18  ;;  %v1311_v19 = vadd.f32 %v1307_v7, %v1301_v37  ;;  %v1327_v35 = vmul.f32 %v3445_v14, %v3574_v9  ;;  %v173_v56 = vpop.permute.xlu0 %172  ;;  %v77_v43 = vld [vmem:[%s6010_s4] sm:$0xff] }
  0xa6   :  { %v1212_v54 = vadd.f32 %v1208_v0, %v1202_v50  ;;  %v1336_v57 = vmul.f32 %v3451_v8, %v3577_v27  ;;  %v1337_v49 = vmul.f32 %v3325_v30, %v3577_v27  ;;  %v1298_v0 = vmul.f32 %v3463_v41, %v3548_v10 }
  0xa7   :  { %1229 = vrot.lane.b32.xlu1 %v1220_v60, %s2731_s29  ;;  %v1320_v21 = vadd.f32 %v1316_v20, %v1310_v15  ;;  %v1321_v32 = vadd.f32 %v1317_v25, %v1311_v19  ;;  %v1308_v40 = vmul.f32 %v3470_v53, %v3551_v38  ;;  %v1318_v36 = vmul.f32 %v3477_v42, %v3554_v52  ;;  %v74_v15 = vld [vmem:[%s6009_s3 + $0x180] sm:$0xff] }
  0xa8   :  { %v1221_v39 = vrot.slane %v1212_v54, 7  ;;  %v1328_v47 = vmul.f32 %v3484_v22, %v3574_v9  ;;  %v1338_v6 = vmul.f32 %v3490_v28, %v3577_v27  ;;  %v1302_v13 = vadd.f32 %v1298_v0, %v1292_v34  ;;  %v80_v19 = vld [vmem:[%s6010_s4 + $0x180] sm:$0xff] }
  0xa9   :  { %v1330_v4 = vadd.f32 %v1326_v33, %v1320_v21  ;;  %v1331_v1 = vadd.f32 %v1327_v35, %v1321_v32  ;;  %v85_v5 = vadd.f32 %v79_v58, %v73_v45  ;;  %v3619_v20 = vstv %s3569_s20  ;;  %v179_v17 = vpop.permute.xlu1 %178  ;;  %s3850_s20 = sld [smem:[#allocation2 + $0x584]] }
  0xaa   :  { %v1222_v7 = vsel %vm165_vm0, %v1220_v60, %v1221_v39  ;;  %v1312_v25 = vadd.f32 %v1308_v40, %v1302_v13  ;;  %v83_v34 = vadd.f32 %v77_v43, %v71_v3  ;;  %v1293_v60 = vmul.f32 %v3496_v16, %v3529_v62  ;;  %v2187_v62 = vld [vmem:[%s6010_s4 + $0x18] sm:$0xff] }
  0xab   :  { %1233 = vrot.lane.b32.xlu1 %v1221_v39, %s2731_s29  ;;  %1231 = vrot.lane.b32.xlu0 %v1222_v7, %s2731_s29  ;;  %v1340_v18 = vadd.f32 %v1336_v57, %v1330_v4  ;;  %v1341_v37 = vadd.f32 %v1337_v49, %v1331_v1  ;;  %v93_v50 = vadd.f32 %v3619_v20, %v85_v5  ;;  %v2181_v49 = vld [vmem:[%s6009_s3 + $0x18] sm:$0xff]  ;;  %v3675_v13 = vstv %s3613_s15  ;;  %s4261_s15 = sld [smem:[#allocation2 + $0x685]] }
  0xac   :  { %v1322_v35 = vadd.f32 %v1318_v36, %v1312_v25  ;;  %v1299_v57 = vmul.f32 %v3504_v12, %v3548_v10  ;;  %v307_v45 = vpop.permute.xlu0 %306  ;;  %v91_v21 = vadd.f32 %v3619_v20, %v83_v34  ;;  %v1309_v10 = vmul.f32 %v3511_v29, %v3551_v38 }
  0xad   :  { %v1348_v33 = vrot.slane %v1340_v18, 7  ;;  %v1349_v54 = vrot.slane %v1341_v37, 7  ;;  %101 = vst.msk [vmem:[%s6011_s5 + $0x10] sm:$0x3] %vm100_vm1, %v93_v50  ;;  %v192_v58 = vadd.f32 %v177_v46, %v93_v50  ;;  %v1319_v32 = vmul.f32 %v3518_v59, %v3554_v52 }
  0xae   :  { %v1332_v40 = vadd.f32 %v1328_v47, %v1322_v35  ;;  %v1303_v39 = vadd.f32 %v1299_v57, %v1293_v60  ;;  %v1329_v36 = vmul.f32 %v3534_v51, %v3574_v9  ;;  %98 = vst.msk [vmem:[%s6011_s5] sm:$0xff] %vm97_vm3, %v91_v21  ;;  %v190_v38 = vadd.f32 %v173_v56, %v91_v21 }
  0xaf   :  { %v1350_v0 = vsel %vm165_vm0, %v1348_v33, %v1349_v54  ;;  %1354 = vrot.lane.b32.xlu0 %v1348_v33, %s2731_s29  ;;  %201 = vst.msk [vmem:[%s6011_s5 + $0x10] sm:$0x1] %vm200_vm2, %v192_v58  ;;  %v1339_v52 = vmul.f32 %v3540_v2, %v3577_v27  ;;  %v86_v9 = vadd.f32 %v80_v19, %v74_v15  ;;  %v3678_v5 = vstv %s3615_s16  ;;  %v76_v19 = vld [vmem:[%s6009_s3 + $0x190] sm:$0x3] }
  0xb0   :  { %1356 = vrot.lane.b32.xlu1 %v1350_v0, %s2731_s29  ;;  %v219_v46 = vadd.f32 %v2187_v62, %v2181_v49  ;;  %v183_v47 = vpop.permute.xlu1 %182  ;;  %v1342_v4 = vadd.f32 %v1338_v6, %v1332_v40  ;;  %v1313_v1 = vadd.f32 %v1309_v10, %v1303_v39  ;;  %197 = vst.msk [vmem:[%s6011_s5] sm:$0xfe] %vm196_vm4, %v190_v38  ;;  %v3692_v18 = vstv %s3623_s17  ;;  %v2183_v39 = vld [vmem:[%s6009_s3 + $0x28] sm:$0x3]  ;;  %s4191_s17 = sld [smem:[#allocation2 + $0x680]] }
  0xb1   :  { %v94_v56 = vadd.f32 %v3619_v20, %v86_v9  ;;  %v1421_v3 = vmul.f32 %v3357_v48, %v3678_v5  ;;  %v1422_v6 = vmul.f32 %v3364_v63, %v3678_v5  ;;  %v3695_v37 = vstv %s3625_s30  ;;  %s4008_s30 = sld [smem:[#allocation2 + $0x601]] }
  0xb2   :  { %v227_v27 = vadd.f32 %v3675_v13, %v219_v46  ;;  %v1351_v43 = vrot.slane %v1342_v4, 7  ;;  %v1323_v7 = vadd.f32 %v1319_v32, %v1313_v1  ;;  %v1427_v60 = vmul.f32 %v3382_v31, %v3692_v18 }
  0xb3   :  { %1358 = vrot.lane.b32.xlu0 %v1349_v54, %s2731_s29  ;;  %v3697_v25 = vpop.permute.xlu0 %310  ;;  %102 = vst.msk [vmem:[%s6011_s5 + $0x180] sm:$0xff] %vm97_vm3, %v94_v56  ;;  %v193_v50 = vadd.f32 %v179_v17, %v94_v56  ;;  %v1428_v15 = vmul.f32 %v3389_v26, %v3692_v18  ;;  %v82_v17 = vld [vmem:[%s6010_s4 + $0x190] sm:$0x3]  ;;  %v1437_v54 = vmul.f32 %v3397_v61, %v3695_v37  ;;  %v3723_v57 = vstv %s3644_s25  ;;  %s3940_s25 = sld [smem:[#allocation4 + $0x2]] }
  0xb4   :  { %2194 = vst.msk [vmem:[%s6011_s5 + $0x18] sm:$0xff] %vm97_vm3, %v227_v27  ;;  %v324_v34 = vadd.f32 %v307_v45, %v227_v27  ;;  %1360 = vrot.lane.b32.xlu1 %v1351_v43, %s2731_s29  ;;  %v1333_v33 = vadd.f32 %v1329_v36, %v1323_v7  ;;  %v1438_v35 = vmul.f32 %v3404_v11, %v3695_v37  ;;  %v3740_v32 = vstv %s3659_s7  ;;  %v2189_v36 = vld [vmem:[%s6010_s4 + $0x28] sm:$0x3] }
  0xb5   :  { %202 = vst.msk [vmem:[%s6011_s5 + $0x180] sm:$0xfe] %vm196_vm4, %v193_v50  ;;  %v1431_v49 = vadd.f32 %v1427_v60, %v1421_v3  ;;  %v1432_v62 = vadd.f32 %v1428_v15, %v1422_v6  ;;  %v1447_v45 = vmul.f32 %v3411_v55, %v3723_v57  ;;  %v1448_v58 = vmul.f32 %v3418_v44, %v3723_v57  ;;  %v2184_v60 = vld [vmem:[%s6009_s3 + $0x198] sm:$0xff] }
  0xb6   :  { %2206 = vst.msk [vmem:[%s6011_s5 + $0x18] sm:$0xfe] %vm196_vm4, %v324_v34  ;;  %v3737_v21 = vpop.permute.xlu1 %312  ;;  %v1343_v10 = vadd.f32 %v1339_v52, %v1333_v33  ;;  %v3743_v0 = vstv %s3661_s8  ;;  %v88_v40 = vadd.f32 %v82_v17, %v76_v19  ;;  %v1457_v52 = vmul.f32 %v3437_v24, %v3740_v32  ;;  %v2190_v15 = vld [vmem:[%s6010_s4 + $0x198] sm:$0xff]  ;;  %s4484_s8 = sld [smem:[#allocation2 + $0x701]] }
  0xb7   :  { %v3751_v38 = vpop.permute.xlu0 %174  ;;  %v1441_v9 = vadd.f32 %v1437_v54, %v1431_v49  ;;  %v1442_v46 = vadd.f32 %v1438_v35, %v1432_v62  ;;  %v1458_v4 = vmul.f32 %v3445_v14, %v3740_v32  ;;  %v1467_v56 = vmul.f32 %v3451_v8, %v3743_v0  ;;  %v72_v49 = vld [vmem:[%s6009_s3 + $0x8] sm:$0xff] }
  0xb8   :  { %v1352_v1 = vrot.slane %v1343_v10, 7  ;;  %v1468_v27 = vmul.f32 %v3325_v30, %v3743_v0  ;;  %v96_v3 = vadd.f32 %v3619_v20, %v88_v40  ;;  %v221_v50 = vadd.f32 %v2189_v36, %v2183_v39 }
  0xb9   :  { %v1451_v6 = vadd.f32 %v1447_v45, %v1441_v9  ;;  %v1452_v7 = vadd.f32 %v1448_v58, %v1442_v46  ;;  %v1423_v34 = vmul.f32 %v3429_v23, %v3678_v5  ;;  %v1429_v54 = vmul.f32 %v3463_v41, %v3692_v18 }
  0xba   :  { %v3770_v19 = vpop.permute.xlu1 %316  ;;  %1364 = vrot.lane.b32.xlu1 %v1352_v1, %s2731_s29  ;;  %v1353_v17 = vsel %vm165_vm0, %v1351_v43, %v1352_v1  ;;  %104 = vst.msk [vmem:[%s6011_s5 + $0x190] sm:$0x3] %vm100_vm1, %v96_v3  ;;  %v195_v33 = vadd.f32 %v183_v47, %v96_v3  ;;  %v1439_v35 = vmul.f32 %v3470_v53, %v3695_v37  ;;  %v78_v43 = vld [vmem:[%s6010_s4 + $0x8] sm:$0xff] }
  0xbb   :  { %v3788_v62 = vpop.permute.xlu0 %180  ;;  %1362 = vrot.lane.b32.xlu0 %v1353_v17, %s2731_s29  ;;  %v1461_v47 = vadd.f32 %v1457_v52, %v1451_v6  ;;  %v1462_v45 = vadd.f32 %v1458_v4, %v1452_v7  ;;  %v229_v58 = vadd.f32 %v3675_v13, %v221_v50  ;;  %v1449_v10 = vmul.f32 %v3477_v42, %v3723_v57  ;;  %v75_v17 = vld [vmem:[%s6009_s3 + $0x188] sm:$0xff] }
  0xbc   :  { %204 = vst.msk [vmem:[%s6011_s5 + $0x190] sm:$0x1] %vm200_vm2, %v195_v33  ;;  %v1433_v40 = vadd.f32 %v1429_v54, %v1423_v34  ;;  %v1459_v39 = vmul.f32 %v3484_v22, %v3740_v32  ;;  %v1469_v36 = vmul.f32 %v3490_v28, %v3743_v0  ;;  %v222_v9 = vadd.f32 %v2190_v15, %v2184_v60  ;;  %v2192_v15 = vld [vmem:[%s6010_s4 + $0x1a8] sm:$0x3] }
  0xbd   :  { %v1471_v46 = vadd.f32 %v1467_v56, %v1461_v47  ;;  %v1472_v52 = vadd.f32 %v1468_v27, %v1462_v45  ;;  %2196 = vst.msk [vmem:[%s6011_s5 + $0x28] sm:$0x3] %vm100_vm1, %v229_v58  ;;  %v326_v4 = vadd.f32 %v3697_v25, %v229_v58  ;;  %v84_v1 = vadd.f32 %v78_v43, %v72_v49  ;;  %v2186_v56 = vld [vmem:[%s6009_s3 + $0x1a8] sm:$0x3] }
  0xbe   :  { %v3813_v3 = vpop.permute.xlu1 %308  ;;  %v1443_v6 = vadd.f32 %v1439_v35, %v1433_v40  ;;  %v230_v7 = vadd.f32 %v3675_v13, %v222_v9  ;;  %v1424_v50 = vmul.f32 %v3496_v16, %v3678_v5  ;;  %v1430_v5 = vmul.f32 %v3504_v12, %v3692_v18  ;;  %v81_v33 = vld [vmem:[%s6010_s4 + $0x188] sm:$0xff] }
  0xbf   :  { %v3823_v27 = vpop.permute.xlu0 %314  ;;  %v1479_v34 = vrot.slane %v1471_v46, 7  ;;  %v1480_v25 = vrot.slane %v1472_v52, 7  ;;  %2208 = vst.msk [vmem:[%s6011_s5 + $0x28] sm:$0x1] %vm200_vm2, %v326_v4  ;;  %v92_v60 = vadd.f32 %v3619_v20, %v84_v1  ;;  %v1440_v35 = vmul.f32 %v3511_v29, %v3695_v37 }
  0xc0   :  { %v1453_v54 = vadd.f32 %v1449_v10, %v1443_v6  ;;  %2197 = vst.msk [vmem:[%s6011_s5 + $0x198] sm:$0xff] %vm97_vm3, %v230_v7  ;;  %v327_v18 = vadd.f32 %v3737_v21, %v230_v7  ;;  %v1450_v49 = vmul.f32 %v3518_v59, %v3723_v57  ;;  %v1434_v21 = vadd.f32 %v1430_v5, %v1424_v50 }
  0xc1   :  { %v1481_v43 = vsel %vm165_vm0, %v1479_v34, %v1480_v25  ;;  %1485 = vrot.lane.b32.xlu0 %v1479_v34, %s2731_s29  ;;  %99 = vst.msk [vmem:[%s6011_s5 + $0x8] sm:$0xff] %vm97_vm3, %v92_v60  ;;  %v191_v37 = vadd.f32 %v3751_v38, %v92_v60  ;;  %v1460_v57 = vmul.f32 %v3534_v51, %v3740_v32  ;;  %v3879_v9 = vstv %s3790_s2  ;;  %s5300_s2 = sld [smem:[#allocation4 + $0xb]] }
  0xc2   :  { %v3863_v47 = vpop.permute.xlu1 %439  ;;  %1487 = vrot.lane.b32.xlu1 %v1481_v43, %s2731_s29  ;;  %v1463_v45 = vadd.f32 %v1459_v39, %v1453_v54  ;;  %2209 = vst.msk [vmem:[%s6011_s5 + $0x198] sm:$0xfe] %vm196_vm4, %v327_v18  ;;  %v1470_v58 = vmul.f32 %v3540_v2, %v3743_v0  ;;  %v224_v10 = vadd.f32 %v2192_v15, %v2186_v56  ;;  %v3882_v39 = vstv %s3796_s13  ;;  %s4585_s13 = sld [smem:[#allocation2 + $0x704]] }
  0xc3   :  { %v87_v40 = vadd.f32 %v81_v33, %v75_v17  ;;  %v3872_v38 = vpop.permute.xlu0 %437  ;;  %199 = vst.msk [vmem:[%s6011_s5 + $0x8] sm:$0xff] %vm198_vm5, %v191_v37  ;;  %v1444_v32 = vadd.f32 %v1440_v35, %v1434_v21  ;;  %v3885_v46 = vstv %s3798_s14  ;;  %v1552_v1 = vmul.f32 %v3357_v48, %v3879_v9  ;;  %s4587_s14 = sld [smem:[#allocation2 + $0x705]] }
  0xc4   :  { %v1473_v52 = vadd.f32 %v1469_v36, %v1463_v45  ;;  %v232_v4 = vadd.f32 %v3675_v13, %v224_v10  ;;  %v1553_v7 = vmul.f32 %v3364_v63, %v3879_v9  ;;  %v1558_v50 = vmul.f32 %v3382_v31, %v3882_v39  ;;  %v2182_v36 = vld [vmem:[%s6009_s3 + $0x20] sm:$0xff] }
  0xc5   :  { %v95_v0 = vadd.f32 %v3619_v20, %v87_v40  ;;  %1489 = vrot.lane.b32.xlu0 %v1480_v25, %s2731_s29  ;;  %v1454_v6 = vadd.f32 %v1450_v49, %v1444_v32  ;;  %v1559_v56 = vmul.f32 %v3389_v26, %v3882_v39  ;;  %v2188_v20 = vld [vmem:[%s6010_s4 + $0x20] sm:$0xff]  ;;  %v1568_v15 = vmul.f32 %v3397_v61, %v3885_v46 }
  0xc6   :  { %v3904_v34 = vpop.permute.xlu1 %443  ;;  %v1482_v25 = vrot.slane %v1473_v52, 7  ;;  %2199 = vst.msk [vmem:[%s6011_s5 + $0x1a8] sm:$0x3] %vm100_vm1, %v232_v4  ;;  %v329_v60 = vadd.f32 %v3770_v19, %v232_v4  ;;  %v1562_v54 = vadd.f32 %v1558_v50, %v1552_v1  ;;  %v1569_v35 = vmul.f32 %v3404_v11, %v3885_v46  ;;  %v2185_v10 = vld [vmem:[%s6009_s3 + $0x1a0] sm:$0xff] }
  0xc7   :  { %103 = vst.msk [vmem:[%s6011_s5 + $0x188] sm:$0xff] %vm97_vm3, %v95_v0  ;;  %v194_v5 = vadd.f32 %v3788_v62, %v95_v0  ;;  %v3918_v17 = vpop.permute.xlu0 %441  ;;  %v1464_v33 = vadd.f32 %v1460_v57, %v1454_v6  ;;  %v1563_v18 = vadd.f32 %v1559_v56, %v1553_v7  ;;  %v3932_v19 = vstv %s3821_s19  ;;  %v2191_v40 = vld [vmem:[%s6010_s4 + $0x1a0] sm:$0xff]  ;;  %s4401_s19 = sld [smem:[#allocation4 + $0x4]] }
  0xc8   :  { %1491 = vrot.lane.b32.xlu1 %v1482_v25, %s2731_s29  ;;  %2211 = vst.msk [vmem:[%s6011_s5 + $0x1a8] sm:$0x1] %vm200_vm2, %v329_v60  ;;  %v3935_v62 = vstv %s3850_s20  ;;  %v3938_v49 = vstv %s3852_s24  ;;  %v220_v43 = vadd.f32 %v2188_v20, %v2182_v36  ;;  %v1572_v21 = vadd.f32 %v1568_v15, %v1562_v54  ;;  %s4155_s24 = sld [smem:[#allocation4 + $0x3]] }
  0xc9   :  { %203 = vst.msk [vmem:[%s6011_s5 + $0x188] sm:$0xff] %vm198_vm5, %v194_v5  ;;  %v1474_v37 = vadd.f32 %v1470_v58, %v1464_v33  ;;  %v1573_v57 = vadd.f32 %v1569_v35, %v1563_v18  ;;  %v1578_v45 = vmul.f32 %v3411_v55, %v3932_v19  ;;  %v1579_v52 = vmul.f32 %v3418_v44, %v3932_v19  ;;  %v2213_v15 = vld [vmem:[%s6009_s3 + $0x38] sm:$0xff] }
  0xca   :  { %v3950_v32 = vpop.permute.xlu1 %447  ;;  %v1588_v58 = vmul.f32 %v3437_v24, %v3935_v62  ;;  %v1589_v4 = vmul.f32 %v3445_v14, %v3935_v62  ;;  %v1598_v0 = vmul.f32 %v3451_v8, %v3938_v49  ;;  %v1599_v50 = vmul.f32 %v3325_v30, %v3938_v49  ;;  %v2219_v33 = vld [vmem:[%s6010_s4 + $0x38] sm:$0xff] }
  0xcb   :  { %v3960_v1 = vpop.permute.xlu0 %445  ;;  %v1483_v6 = vrot.slane %v1474_v37, 7  ;;  %v1582_v7 = vadd.f32 %v1578_v45, %v1572_v21  ;;  %v228_v56 = vadd.f32 %v3675_v13, %v220_v43  ;;  %v1583_v36 = vadd.f32 %v1579_v52, %v1573_v57 }
  0xcc   :  { %v223_v20 = vadd.f32 %v2191_v40, %v2185_v10  ;;  %v1554_v60 = vmul.f32 %v3429_v23, %v3879_v9  ;;  %v1560_v5 = vmul.f32 %v3463_v41, %v3882_v39  ;;  %v1570_v43 = vmul.f32 %v3470_v53, %v3885_v46  ;;  %v2218_v10 = vld [vmem:[%s6010_s4 + $0x30] sm:$0xff] }
  0xcd   :  { %1495 = vrot.lane.b32.xlu1 %v1483_v6, %s2731_s29  ;;  %v1484_v54 = vsel %vm165_vm0, %v1482_v25, %v1483_v6  ;;  %v1592_v18 = vadd.f32 %v1588_v58, %v1582_v7  ;;  %2195 = vst.msk [vmem:[%s6011_s5 + $0x20] sm:$0xff] %vm97_vm3, %v228_v56  ;;  %v325_v35 = vadd.f32 %v3813_v3, %v228_v56  ;;  %v2212_v3 = vld [vmem:[%s6009_s3 + $0x30] sm:$0xff]  ;;  %v4018_v56 = vstv %s3940_s25 }
  0xce   :  { %v3986_v37 = vpop.permute.xlu1 %570  ;;  %1493 = vrot.lane.b32.xlu0 %v1484_v54, %s2731_s29  ;;  %v1593_v21 = vadd.f32 %v1589_v4, %v1583_v36  ;;  %v231_v25 = vadd.f32 %v3675_v13, %v223_v20  ;;  %v1564_v57 = vadd.f32 %v1560_v5, %v1554_v60  ;;  %v1580_v45 = vmul.f32 %v3477_v42, %v3932_v19 }
  0xcf   :  { %v3998_v40 = vpop.permute.xlu0 %568  ;;  %v1602_v52 = vadd.f32 %v1598_v0, %v1592_v18  ;;  %2207 = vst.msk [vmem:[%s6011_s5 + $0x20] sm:$0xff] %vm198_vm5, %v325_v35  ;;  %v1590_v13 = vmul.f32 %v3484_v22, %v3935_v62  ;;  %v1600_v58 = vmul.f32 %v3490_v28, %v3938_v49  ;;  %v351_v4 = vadd.f32 %v2219_v33, %v2213_v15  ;;  %v2214_v18 = vld [vmem:[%s6009_s3 + $0x40] sm:$0x3] }
  0xd0   :  { %v1603_v6 = vadd.f32 %v1599_v50, %v1593_v21  ;;  %2198 = vst.msk [vmem:[%s6011_s5 + $0x1a0] sm:$0xff] %vm97_vm3, %v231_v25  ;;  %v328_v0 = vadd.f32 %v3823_v27, %v231_v25  ;;  %v1574_v7 = vadd.f32 %v1570_v43, %v1564_v57  ;;  %v350_v60 = vadd.f32 %v2218_v10, %v2212_v3  ;;  %v2215_v50 = vld [vmem:[%s6009_s3 + $0x1b0] sm:$0xff]  ;;  %v2220_v35 = vld [vmem:[%s6010_s4 + $0x40] sm:$0x3] }
  0xd1   :  { %v1610_v36 = vrot.slane %v1602_v52, 7  ;;  %v359_v20 = vadd.f32 %v4018_v56, %v351_v4  ;;  %v1555_v5 = vmul.f32 %v3496_v16, %v3879_v9  ;;  %v1561_v33 = vmul.f32 %v3504_v12, %v3882_v39  ;;  %v2221_v9 = vld [vmem:[%s6010_s4 + $0x1b0] sm:$0xff] }
  0xd2   :  { %v1611_v15 = vrot.slane %v1603_v6, 7  ;;  %2210 = vst.msk [vmem:[%s6011_s5 + $0x1a0] sm:$0xff] %vm198_vm5, %v328_v0  ;;  %v1584_v27 = vadd.f32 %v1580_v45, %v1574_v7  ;;  %v1571_v54 = vmul.f32 %v3511_v29, %v3885_v46  ;;  %v4045_v43 = vpop.permute.xlu1 %574  ;;  %v358_v46 = vadd.f32 %v4018_v56, %v350_v60 }
  0xd3   :  { %v4047_v21 = vpop.permute.xlu0 %572  ;;  %1616 = vrot.lane.b32.xlu0 %v1610_v36, %s2731_s29  ;;  %2226 = vst.msk [vmem:[%s6011_s5 + $0x38] sm:$0xff] %vm97_vm3, %v359_v20  ;;  %v456_v39 = vadd.f32 %v3863_v47, %v359_v20  ;;  %v1581_v25 = vmul.f32 %v3518_v59, %v3932_v19  ;;  %v1591_v57 = vmul.f32 %v3534_v51, %v3935_v62  ;;  %v4096_v20 = vstv %s4008_s30  ;;  %s4205_s30 = sld [smem:[#allocation2 + $0x681]] }
  0xd4   :  { %v1612_v45 = vsel %vm165_vm0, %v1610_v36, %v1611_v15  ;;  %v1594_v3 = vadd.f32 %v1590_v13, %v1584_v27  ;;  %v1565_v10 = vadd.f32 %v1561_v33, %v1555_v5  ;;  %v1601_v47 = vmul.f32 %v3540_v2, %v3938_v49  ;;  %2225 = vst.msk [vmem:[%s6011_s5 + $0x30] sm:$0xff] %vm97_vm3, %v358_v46 }
  0xd5   :  { %1618 = vrot.lane.b32.xlu1 %v1612_v45, %s2731_s29  ;;  %2238 = vst.msk [vmem:[%s6011_s5 + $0x38] sm:$0xff] %vm198_vm5, %v456_v39  ;;  %v455_v19 = vadd.f32 %v3872_v38, %v358_v46  ;;  %v353_v62 = vadd.f32 %v2221_v9, %v2215_v50  ;;  %v352_v52 = vadd.f32 %v2220_v35, %v2214_v18  ;;  %v4078_v13 = vstv %s3984_s12  ;;  %v2217_v18 = vld [vmem:[%s6009_s3 + $0x1c0] sm:$0x3]  ;;  %s4524_s12 = sld [smem:[#allocation2 + $0x702]] }
  0xd6   :  { %v1604_v49 = vadd.f32 %v1600_v58, %v1594_v3  ;;  %v1575_v4 = vadd.f32 %v1571_v54, %v1565_v10  ;;  %v1683_v6 = vmul.f32 %v3357_v48, %v4078_v13  ;;  %v1684_v0 = vmul.f32 %v3364_v63, %v4078_v13  ;;  %v4084_v7 = vpop.permute.xlu1 %578 }
  0xd7   :  { %v4086_v36 = vpop.permute.xlu0 %576  ;;  %1620 = vrot.lane.b32.xlu0 %v1611_v15, %s2731_s29  ;;  %2237 = vst.msk [vmem:[%s6011_s5 + $0x30] sm:$0xfe] %vm196_vm4, %v455_v19  ;;  %v361_v38 = vadd.f32 %v4018_v56, %v353_v62  ;;  %v360_v58 = vadd.f32 %v4018_v56, %v352_v52  ;;  %v4099_v48 = vstv %s4010_s6  ;;  %v1689_v5 = vmul.f32 %v3382_v31, %v4096_v20  ;;  %s4791_s6 = sld [smem:[#allocation2 + $0x785]] }
  0xd8   :  { %v1613_v63 = vrot.slane %v1604_v49, 7  ;;  %v1585_v60 = vadd.f32 %v1581_v25, %v1575_v4  ;;  %v1690_v50 = vmul.f32 %v3389_v26, %v4096_v20  ;;  %v1699_v31 = vmul.f32 %v3397_v61, %v4099_v48  ;;  %v2216_v25 = vld [vmem:[%s6009_s3 + $0x1b8] sm:$0xff] }
  0xd9   :  { %2228 = vst.msk [vmem:[%s6011_s5 + $0x1b0] sm:$0xff] %vm97_vm3, %v361_v38  ;;  %v458_v15 = vadd.f32 %v3904_v34, %v361_v38  ;;  %v457_v27 = vadd.f32 %v3918_v17, %v360_v58  ;;  %v1700_v26 = vmul.f32 %v3404_v11, %v4099_v48  ;;  %v1693_v54 = vadd.f32 %v1689_v5, %v1683_v6  ;;  %v2223_v17 = vld [vmem:[%s6010_s4 + $0x1c0] sm:$0x3] }
  0xda   :  { %2227 = vst.msk [vmem:[%s6011_s5 + $0x40] sm:$0x3] %vm100_vm1, %v360_v58  ;;  %1622 = vrot.lane.b32.xlu1 %v1613_v63, %s2731_s29  ;;  %v1595_v33 = vadd.f32 %v1591_v57, %v1585_v60  ;;  %v1694_v34 = vadd.f32 %v1690_v50, %v1684_v0  ;;  %v4121_v9 = vstv %s4026_s22  ;;  %v4144_v39 = vstv %s4060_s1  ;;  %s4482_s22 = sld [smem:[#allocation2 + $0x700]]  ;;  %s4877_s1 = sld [smem:[#allocation4 + $0x6]] }
  0xdb   :  { %v4129_v35 = vpop.permute.xlu0 %699  ;;  %2240 = vst.msk [vmem:[%s6011_s5 + $0x1b0] sm:$0xfe] %vm196_vm4, %v458_v15  ;;  %v1709_v61 = vmul.f32 %v3411_v55, %v4121_v9  ;;  %v1710_v11 = vmul.f32 %v3418_v44, %v4121_v9  ;;  %v4147_v46 = vstv %s4062_s11  ;;  %v2222_v57 = vld [vmem:[%s6010_s4 + $0x1b8] sm:$0xff]  ;;  %v1703_v3 = vadd.f32 %v1699_v31, %v1693_v54  ;;  %s4259_s11 = sld [smem:[#allocation2 + $0x684]] }
  0xdc   :  { %2239 = vst.msk [vmem:[%s6011_s5 + $0x40] sm:$0x1] %vm200_vm2, %v457_v27  ;;  %v4157_v45 = vpop.permute.xlu1 %701  ;;  %v1605_v55 = vadd.f32 %v1601_v47, %v1595_v33  ;;  %v1704_v10 = vadd.f32 %v1700_v26, %v1694_v34  ;;  %v1719_v44 = vmul.f32 %v3437_v24, %v4144_v39  ;;  %v1720_v19 = vmul.f32 %v3445_v14, %v4144_v39 }
  0xdd   :  { %v1729_v62 = vmul.f32 %v3451_v8, %v4147_v46  ;;  %v1730_v52 = vmul.f32 %v3325_v30, %v4147_v46  ;;  %v355_v49 = vadd.f32 %v2223_v17, %v2217_v18  ;;  %v1713_v6 = vadd.f32 %v1709_v61, %v1703_v3  ;;  %v2244_v30 = vld [vmem:[%s6009_s3 + $0x50] sm:$0xff] }
  0xde   :  { %v1614_v4 = vrot.slane %v1605_v55, 7  ;;  %v1714_v0 = vadd.f32 %v1710_v11, %v1704_v10  ;;  %v354_v38 = vadd.f32 %v2222_v57, %v2216_v25  ;;  %v1685_v24 = vmul.f32 %v3429_v23, %v4078_v13  ;;  %v2250_v23 = vld [vmem:[%s6010_s4 + $0x50] sm:$0xff]  ;;  %v2246_v25 = vld [vmem:[%s6009_s3 + $0x1c8] sm:$0xff] }
  0xdf   :  { %v4167_v47 = vpop.permute.xlu0 %703  ;;  %v363_v58 = vadd.f32 %v4018_v56, %v355_v49  ;;  %v1691_v14 = vmul.f32 %v3463_v41, %v4096_v20  ;;  %v1701_v8 = vmul.f32 %v3470_v53, %v4099_v48  ;;  %v1723_v5 = vadd.f32 %v1719_v44, %v1713_v6  ;;  %v2243_v41 = vld [vmem:[%s6009_s3 + $0x48] sm:$0xff] }
  0xe0   :  { %1626 = vrot.lane.b32.xlu1 %v1614_v4, %s2731_s29  ;;  %v1615_v60 = vsel %vm165_vm0, %v1613_v63, %v1614_v4  ;;  %v1724_v50 = vadd.f32 %v1720_v19, %v1714_v0  ;;  %v362_v15 = vadd.f32 %v4018_v56, %v354_v38  ;;  %v2249_v53 = vld [vmem:[%s6010_s4 + $0x48] sm:$0xff]  ;;  %v1711_v31 = vmul.f32 %v3477_v42, %v4121_v9 }
  0xe1   :  { %v4193_v27 = vpop.permute.xlu1 %705  ;;  %1624 = vrot.lane.b32.xlu0 %v1615_v60, %s2731_s29  ;;  %2230 = vst.msk [vmem:[%s6011_s5 + $0x1c0] sm:$0x3] %vm100_vm1, %v363_v58  ;;  %v460_v56 = vadd.f32 %v3950_v32, %v363_v58  ;;  %v1695_v63 = vadd.f32 %v1691_v14, %v1685_v24  ;;  %v1721_v26 = vmul.f32 %v3484_v22, %v4144_v39  ;;  %v4219_v18 = vstv %s4155_s24  ;;  %v4316_v60 = vld [vmem:[%s6006_s0 + $0x10] sm:$0xff]  ;;  %s4666_s24 = sld [smem:[#allocation4 + $0x5]] }
  0xe2   :  { %v1733_v33 = vadd.f32 %v1729_v62, %v1723_v5  ;;  %v1734_v54 = vadd.f32 %v1730_v52, %v1724_v50  ;;  %2229 = vst.msk [vmem:[%s6011_s5 + $0x1b8] sm:$0xff] %vm97_vm3, %v362_v15  ;;  %v459_v34 = vadd.f32 %v3960_v1, %v362_v15  ;;  %v1731_v32 = vmul.f32 %v3490_v28, %v4147_v46  ;;  %v4324_v15 = vld [vmem:[%s6006_s0 + $0x18] sm:$0xff] }
  0xe3   :  { %2242 = vst.msk [vmem:[%s6011_s5 + $0x1c0] sm:$0x1] %vm200_vm2, %v460_v56  ;;  %v1705_v42 = vadd.f32 %v1701_v8, %v1695_v63  ;;  %v482_v22 = vadd.f32 %v2250_v23, %v2244_v30  ;;  %v481_v17 = vadd.f32 %v2249_v53, %v2243_v41  ;;  %v1686_v28 = vmul.f32 %v3496_v16, %v4078_v13  ;;  %v2252_v16 = vld [vmem:[%s6010_s4 + $0x1c8] sm:$0xff]  ;;  %v2251_v13 = vld [vmem:[%s6010_s4 + $0x58] sm:$0x3] }
  0xe4   :  { %v1741_v61 = vrot.slane %v1733_v33, 7  ;;  %v1742_v11 = vrot.slane %v1734_v54, 7  ;;  %2241 = vst.msk [vmem:[%s6011_s5 + $0x1b8] sm:$0xff] %vm198_vm5, %v459_v34  ;;  %v1692_v1 = vmul.f32 %v3504_v12, %v4096_v20  ;;  %v1702_v19 = vmul.f32 %v3511_v29, %v4099_v48  ;;  %v2245_v12 = vld [vmem:[%s6009_s3 + $0x58] sm:$0x3]  ;;  %v4350_v34 = vld [vmem:[%s6006_s0 + $0x20] sm:$0xff] }
  0xe5   :  { %v4236_v57 = vpop.permute.xlu1 %709  ;;  %v4238_v55 = vpop.permute.xlu0 %707  ;;  %v1715_v3 = vadd.f32 %v1711_v31, %v1705_v42  ;;  %v490_v10 = vadd.f32 %v4219_v18, %v482_v22  ;;  %v489_v44 = vadd.f32 %v4219_v18, %v481_v17  ;;  %v1712_v29 = vmul.f32 %v3518_v59, %v4121_v9  ;;  %v4364_v42 = vld [vmem:[%s6006_s0 + $0x30] sm:$0xff]  ;;  %v2248_v17 = vld [vmem:[%s6009_s3 + $0x1d8] sm:$0x3] }
  0xe6   :  { %v1743_v20 = vsel %vm165_vm0, %v1741_v61, %v1742_v11  ;;  %1747 = vrot.lane.b32.xlu0 %v1741_v61, %s2731_s29  ;;  %v1696_v62 = vadd.f32 %v1692_v1, %v1686_v28  ;;  %v1722_v48 = vmul.f32 %v3534_v51, %v4144_v39  ;;  %v1732_v51 = vmul.f32 %v3540_v2, %v4147_v46  ;;  %v4294_v2 = vld [vmem:[%s6006_s0] sm:$0xff]  ;;  %v2254_v61 = vld [vmem:[%s6010_s4 + $0x1d8] sm:$0x3] }
  0xe7   :  { %1749 = vrot.lane.b32.xlu1 %v1743_v20, %s2731_s29  ;;  %v1725_v52 = vadd.f32 %v1721_v26, %v1715_v3  ;;  %2257 = vst.msk [vmem:[%s6011_s5 + $0x50] sm:$0xff] %vm97_vm3, %v490_v10  ;;  %v587_v49 = vadd.f32 %v3986_v37, %v490_v10  ;;  %2256 = vst.msk [vmem:[%s6011_s5 + $0x48] sm:$0xff] %vm97_vm3, %v489_v44  ;;  %v586_v59 = vadd.f32 %v3998_v40, %v489_v44  ;;  %v4301_v40 = vld [vmem:[%s6006_s0 + $0x8] sm:$0xff] }
  0xe8   :  { %v1706_v9 = vadd.f32 %v1702_v19, %v1696_v62  ;;  %v484_v39 = vadd.f32 %v2252_v16, %v2246_v25  ;;  %v483_v4 = vadd.f32 %v2251_v13, %v2245_v12  ;;  %v4277_v6 = vstv %s4191_s17  ;;  %v4385_v28 = vld [vmem:[%s6006_s0 + $0x38] sm:$0xff]  ;;  %v2247_v10 = vld [vmem:[%s6009_s3 + $0x1d0] sm:$0xff]  ;;  %v4408_v13 = vld [vmem:[%s6006_s0 + $0x40] sm:$0xff] }
  0xe9   :  { %v4279_v0 = vpop.permute.xlu0 %830  ;;  %v4281_v38 = vadd.f32 %v1731_v32, %v1725_v52  ;;  %2269 = vst.msk [vmem:[%s6011_s5 + $0x50] sm:$0xff] %vm198_vm5, %v587_v49  ;;  %v1814_v37 = vmul.f32 %v4294_v2, %v4277_v6  ;;  %v1815_v46 = vmul.f32 %v4301_v40, %v4277_v6  ;;  %v4306_v58 = vstv %s4205_s30  ;;  %v4308_v24 = vpop.permute.xlu1 %832  ;;  %v2253_v44 = vld [vmem:[%s6010_s4 + $0x1d0] sm:$0xff]  ;;  %v4415_v62 = vld [vmem:[%s6006_s0 + $0x48] sm:$0xff]  ;;  %s5006_s30 = sld [smem:[#allocation4 + $0x8]] }
  0xea   :  { %2268 = vst.msk [vmem:[%s6011_s5 + $0x48] sm:$0xfe] %vm196_vm4, %v586_v59  ;;  %1751 = vrot.lane.b32.xlu0 %v1742_v11, %s2731_s29  ;;  %v1716_v14 = vadd.f32 %v1712_v29, %v1706_v9  ;;  %v492_v8 = vadd.f32 %v4219_v18, %v484_v39  ;;  %v491_v30 = vadd.f32 %v4219_v18, %v483_v4  ;;  %v4329_v41 = vstv %s4221_s23  ;;  %v4422_v52 = vld [vmem:[%s6006_s0 + $0x50] sm:$0xff] }
  0xeb   :  { %v1820_v5 = vmul.f32 %v4316_v60, %v4306_v58  ;;  %v1744_v50 = vrot.slane %v4281_v38, 7  ;;  %v1821_v23 = vmul.f32 %v4324_v15, %v4306_v58  ;;  %v4332_v53 = vstv %s4223_s26  ;;  %v4429_v59 = vld [vmem:[%s6006_s0 + $0x58] sm:$0xff]  ;;  %s4763_s26 = sld [smem:[#allocation2 + $0x783]] }
  0xec   :  { %v1726_v56 = vadd.f32 %v1722_v48, %v1716_v14  ;;  %2259 = vst.msk [vmem:[%s6011_s5 + $0x1c8] sm:$0xff] %vm97_vm3, %v492_v8  ;;  %v589_v63 = vadd.f32 %v4045_v43, %v492_v8  ;;  %v588_v31 = vadd.f32 %v4047_v21, %v491_v30  ;;  %v1830_v43 = vmul.f32 %v4350_v34, %v4329_v41  ;;  %v4357_v21 = vld [vmem:[%s6006_s0 + $0x28] sm:$0xff] }
  0xed   :  { %2258 = vst.msk [vmem:[%s6011_s5 + $0x58] sm:$0x3] %vm100_vm1, %v491_v30  ;;  %v1824_v26 = vadd.f32 %v1820_v5, %v1814_v37  ;;  %v4344_v33 = vpop.permute.xlu0 %834  ;;  %1753 = vrot.lane.b32.xlu1 %v1744_v50, %s2731_s29  ;;  %v1825_v54 = vadd.f32 %v1821_v23, %v1815_v46  ;;  %v1831_v32 = vmul.f32 %v4357_v21, %v4329_v41  ;;  %v4390_v25 = vstv %s4259_s11  ;;  %v4436_v37 = vld [vmem:[%s6006_s0 + $0x60] sm:$0xff]  ;;  %s5430_s11 = sld [smem:[#allocation4 + $0xd]] }
  0xee   :  { %v1840_v22 = vmul.f32 %v4364_v42, %v4332_v53  ;;  %v1736_v11 = vadd.f32 %v1732_v51, %v1726_v56  ;;  %2271 = vst.msk [vmem:[%s6011_s5 + $0x1c8] sm:$0xfe] %vm196_vm4, %v589_v63  ;;  %v1841_v1 = vmul.f32 %v4385_v28, %v4332_v53  ;;  %v4393_v3 = vstv %s4261_s15  ;;  %v4446_v30 = vld [vmem:[%s6006_s0 + $0x70] sm:$0xff]  ;;  %v4453_v23 = vld [vmem:[%s6006_s0 + $0x80] sm:$0xff]  ;;  %s5591_s15 = sld [smem:[#allocation4 + $0xf]] }
  0xef   :  { %2270 = vst.msk [vmem:[%s6011_s5 + $0x58] sm:$0x1] %vm200_vm2, %v588_v31  ;;  %v4403_v19 = vpop.permute.xlu1 %836  ;;  %v1834_v16 = vadd.f32 %v1830_v43, %v1824_v26  ;;  %v1835_v12 = vadd.f32 %v1831_v32, %v1825_v54  ;;  %v1850_v20 = vmul.f32 %v4408_v13, %v4390_v25  ;;  %v1851_v29 = vmul.f32 %v4415_v62, %v4390_v25  ;;  %v2281_v63 = vld [vmem:[%s6010_s4 + $0x68] sm:$0xff] }
  0xf0   :  { %v1745_v48 = vrot.slane %v1736_v11, 7  ;;  %v1860_v49 = vmul.f32 %v4422_v52, %v4393_v3  ;;  %v1861_v51 = vmul.f32 %v4429_v59, %v4393_v3  ;;  %v486_v9 = vadd.f32 %v2254_v61, %v2248_v17  ;;  %v2274_v61 = vld [vmem:[%s6009_s3 + $0x60] sm:$0xff] }
  0xf1   :  { %v1844_v39 = vadd.f32 %v1840_v22, %v1834_v16  ;;  %v1845_v4 = vadd.f32 %v1841_v1, %v1835_v12  ;;  %v485_v38 = vadd.f32 %v2253_v44, %v2247_v10  ;;  %v1816_v46 = vmul.f32 %v4436_v37, %v4277_v6  ;;  %v4472_v22 = vld [vmem:[%s6006_s0 + $0x90] sm:$0xff]  ;;  %v2280_v11 = vld [vmem:[%s6010_s4 + $0x60] sm:$0xff] }
  0xf2   :  { %1757 = vrot.lane.b32.xlu1 %v1745_v48, %s2731_s29  ;;  %v1746_v14 = vsel %vm165_vm0, %v1744_v50, %v1745_v48  ;;  %v494_v8 = vadd.f32 %v4219_v18, %v486_v9  ;;  %v1822_v5 = vmul.f32 %v4446_v30, %v4306_v58  ;;  %v1832_v56 = vmul.f32 %v4453_v23, %v4329_v41  ;;  %v2275_v50 = vld [vmem:[%s6009_s3 + $0x68] sm:$0xff]  ;;  %v4494_v10 = vld [vmem:[%s6006_s0 + $0xa0] sm:$0xff]  ;;  %v4501_v16 = vld [vmem:[%s6006_s0 + $0xb0] sm:$0xff] }
  0xf3   :  { %v4463_v31 = vpop.permute.xlu1 %840  ;;  %v4465_v26 = vpop.permute.xlu0 %838  ;;  %1755 = vrot.lane.b32.xlu0 %v1746_v14, %s2731_s29  ;;  %v1854_v54 = vadd.f32 %v1850_v20, %v1844_v39  ;;  %v1855_v43 = vadd.f32 %v1851_v29, %v1845_v4  ;;  %v493_v32 = vadd.f32 %v4219_v18, %v485_v38  ;;  %v1842_v17 = vmul.f32 %v4472_v22, %v4332_v53 }
  0xf4   :  { %2261 = vst.msk [vmem:[%s6011_s5 + $0x1d8] sm:$0x3] %vm100_vm1, %v494_v8  ;;  %v591_v18 = vadd.f32 %v4084_v7, %v494_v8  ;;  %v1826_v1 = vadd.f32 %v1822_v5, %v1816_v46  ;;  %v1852_v44 = vmul.f32 %v4494_v10, %v4390_v25  ;;  %v1862_v12 = vmul.f32 %v4501_v16, %v4393_v3  ;;  %v4538_v8 = vld [vmem:[%s6006_s0 + $0x78] sm:$0xff]  ;;  %v2277_v5 = vld [vmem:[%s6009_s3 + $0x1e0] sm:$0xff] }
  0xf5   :  { %v1864_v20 = vadd.f32 %v1860_v49, %v1854_v54  ;;  %v1865_v29 = vadd.f32 %v1861_v51, %v1855_v43  ;;  %2260 = vst.msk [vmem:[%s6011_s5 + $0x1d0] sm:$0xff] %vm97_vm3, %v493_v32  ;;  %v590_v7 = vadd.f32 %v4086_v36, %v493_v32  ;;  %v613_v48 = vadd.f32 %v2281_v63, %v2275_v50  ;;  %v4520_v49 = vld [vmem:[%s6006_s0 + $0x68] sm:$0xff]  ;;  %v4561_v32 = vld [vmem:[%s6006_s0 + $0x98] sm:$0xff] }
  0xf6   :  { %2273 = vst.msk [vmem:[%s6011_s5 + $0x1d8] sm:$0x1] %vm200_vm2, %v591_v18  ;;  %v1836_v9 = vadd.f32 %v1832_v56, %v1826_v1  ;;  %v4515_v39 = vstv %s4401_s19  ;;  %v612_v4 = vadd.f32 %v2280_v11, %v2274_v61  ;;  %v1817_v51 = vmul.f32 %v4520_v49, %v4277_v6  ;;  %v2283_v56 = vld [vmem:[%s6010_s4 + $0x1e0] sm:$0xff]  ;;  %v4554_v43 = vld [vmem:[%s6006_s0 + $0x88] sm:$0xff]  ;;  %s5095_s19 = sld [smem:[#allocation4 + $0x9]] }
  0xf7   :  { %v4528_v36 = vpop.permute.xlu0 %961  ;;  %v1872_v38 = vrot.slane %v1864_v20, 7  ;;  %v1873_v46 = vrot.slane %v1865_v29, 7  ;;  %2272 = vst.msk [vmem:[%s6011_s5 + $0x1d0] sm:$0xff] %vm198_vm5, %v590_v7  ;;  %v621_v14 = vadd.f32 %v4515_v39, %v613_v48  ;;  %v1823_v6 = vmul.f32 %v4538_v8, %v4306_v58  ;;  %v2282_v11 = vld [vmem:[%s6010_s4 + $0x70] sm:$0x3]  ;;  %v4581_v1 = vld [vmem:[%s6006_s0 + $0xa8] sm:$0xff] }
  0xf8   :  { %v4548_v50 = vpop.permute.xlu1 %963  ;;  %v1846_v63 = vadd.f32 %v1842_v17, %v1836_v9  ;;  %v620_v54 = vadd.f32 %v4515_v39, %v612_v4  ;;  %v1833_v58 = vmul.f32 %v4554_v43, %v4329_v41  ;;  %v1843_v61 = vmul.f32 %v4561_v32, %v4332_v53  ;;  %v2276_v17 = vld [vmem:[%s6009_s3 + $0x70] sm:$0x3]  ;;  %v4598_v7 = vld [vmem:[%s6006_s0 + $0xb8] sm:$0xff] }
  0xf9   :  { %v1874_v18 = vsel %vm165_vm0, %v1872_v38, %v1873_v46  ;;  %1878 = vrot.lane.b32.xlu0 %v1872_v38, %s2731_s29  ;;  %2288 = vst.msk [vmem:[%s6011_s5 + $0x68] sm:$0xff] %vm97_vm3, %v621_v14  ;;  %v718_v41 = vadd.f32 %v4157_v45, %v621_v14  ;;  %v1827_v53 = vadd.f32 %v1823_v6, %v1817_v51  ;;  %v4609_v51 = vstv %s4482_s22 }
  0xfa   :  { %v1853_v20 = vmul.f32 %v4581_v1, %v4390_v25  ;;  %1880 = vrot.lane.b32.xlu1 %v1874_v18, %s2731_s29  ;;  %v1856_v29 = vadd.f32 %v1852_v44, %v1846_v63  ;;  %2287 = vst.msk [vmem:[%s6011_s5 + $0x60] sm:$0xff] %vm97_vm3, %v620_v54  ;;  %v717_v45 = vadd.f32 %v4129_v35, %v620_v54  ;;  %v4612_v35 = vstv %s4484_s8  ;;  %v2285_v18 = vld [vmem:[%s6010_s4 + $0x1f0] sm:$0x3]  ;;  %s4732_s8 = sld [smem:[#allocation2 + $0x781]] }
  0xfb   :  { %v1863_v25 = vmul.f32 %v4598_v7, %v4393_v3  ;;  %v615_v48 = vadd.f32 %v2283_v56, %v2277_v5  ;;  %v4602_v9 = vpop.permute.xlu0 %965  ;;  %2300 = vst.msk [vmem:[%s6011_s5 + $0x68] sm:$0xff] %vm198_vm5, %v718_v41  ;;  %v1837_v44 = vadd.f32 %v1833_v58, %v1827_v53  ;;  %v614_v4 = vadd.f32 %v2282_v11, %v2276_v17 }
  0xfc   :  { %6012 = vst [vmem:[#allocation8_spill] sm:$0xff] %v4602_v9  ;;  %v1866_v38 = vadd.f32 %v1862_v12, %v1856_v29  ;;  %2299 = vst.msk [vmem:[%s6011_s5 + $0x60] sm:$0xfe] %vm196_vm4, %v717_v45  ;;  %v1945_v14 = vmul.f32 %v4294_v2, %v4609_v51  ;;  %v1946_v6 = vmul.f32 %v4301_v40, %v4609_v51  ;;  %v4623_v5 = vpop.permute.xlu1 %967  ;;  %v4637_v11 = vstv %s4524_s12 }
  0xfd   :  { %v623_v3 = vadd.f32 %v4515_v39, %v615_v48  ;;  %1882 = vrot.lane.b32.xlu0 %v1873_v46, %s2731_s29  ;;  %v1847_v56 = vadd.f32 %v1843_v61, %v1837_v44  ;;  %v622_v12 = vadd.f32 %v4515_v39, %v614_v4  ;;  %v1951_v63 = vmul.f32 %v4316_v60, %v4612_v35  ;;  %v2279_v61 = vld [vmem:[%s6009_s3 + $0x1f0] sm:$0x3] }
  0xfe   :  { %v1952_v54 = vmul.f32 %v4324_v15, %v4612_v35  ;;  %v1875_v58 = vrot.slane %v1866_v38, 7  ;;  %v4640_v46 = vstv %s4526_s18  ;;  %v1962_v45 = vmul.f32 %v4357_v21, %v4637_v11 }
  0xff   :  { %2290 = vst.msk [vmem:[%s6011_s5 + $0x1e0] sm:$0xff] %vm97_vm3, %v623_v3  ;;  %v720_v17 = vadd.f32 %v4193_v27, %v623_v3  ;;  %v1857_v41 = vadd.f32 %v1853_v20, %v1847_v56  ;;  %v719_v27 = vadd.f32 %v4167_v47, %v622_v12  ;;  %v1955_v53 = vadd.f32 %v1951_v63, %v1945_v14  ;;  %v2278_v56 = vld [vmem:[%s6009_s3 + $0x1e8] sm:$0xff] }
 0x100   :  { %2289 = vst.msk [vmem:[%s6011_s5 + $0x70] sm:$0x3] %vm100_vm1, %v622_v12  ;;  %v1956_v29 = vadd.f32 %v1952_v54, %v1946_v6  ;;  %1884 = vrot.lane.b32.xlu1 %v1875_v58, %s2731_s29  ;;  %v1961_v20 = vmul.f32 %v4350_v34, %v4637_v11  ;;  %v1971_v48 = vmul.f32 %v4364_v42, %v4640_v46  ;;  %v4668_v44 = vpop.permute.xlu1 %971  ;;  %v4670_v4 = vpop.permute.xlu0 %969  ;;  %v4677_v3 = vstv %s4585_s13  ;;  %v2284_v12 = vld [vmem:[%s6010_s4 + $0x1e8] sm:$0xff] }
 0x101   :  { %2302 = vst.msk [vmem:[%s6011_s5 + $0x1e0] sm:$0xfe] %vm196_vm4, %v720_v17  ;;  %v1972_v47 = vmul.f32 %v4385_v28, %v4640_v46  ;;  %6013 = vst [vmem:[#allocation9_spill] sm:$0xff] %v4668_v44  ;;  %v1867_v38 = vadd.f32 %v1863_v25, %v1857_v41  ;;  %v4680_v14 = vstv %s4587_s14  ;;  %v617_v6 = vadd.f32 %v2285_v18, %v2279_v61 }
 0x102   :  { %6014 = vst [vmem:[#allocation10_spill] sm:$0xff] %v4670_v4  ;;  %2301 = vst.msk [vmem:[%s6011_s5 + $0x70] sm:$0x1] %vm200_vm2, %v719_v27  ;;  %v1965_v63 = vadd.f32 %v1961_v20, %v1955_v53  ;;  %v1966_v25 = vadd.f32 %v1962_v45, %v1956_v29  ;;  %v1981_v54 = vmul.f32 %v4408_v13, %v4677_v3  ;;  %v2306_v29 = vld [vmem:[%s6009_s3 + $0x80] sm:$0xff] }
 0x103   :  { %v1982_v17 = vmul.f32 %v4415_v62, %v4677_v3  ;;  %v1876_v41 = vrot.slane %v1867_v38, 7  ;;  %v1991_v61 = vmul.f32 %v4422_v52, %v4680_v14  ;;  %v1992_v18 = vmul.f32 %v4429_v59, %v4680_v14  ;;  %v2312_v20 = vld [vmem:[%s6010_s4 + $0x80] sm:$0xff] }
 0x104   :  { %v625_v27 = vadd.f32 %v4515_v39, %v617_v6  ;;  %v1975_v4 = vadd.f32 %v1971_v48, %v1965_v63  ;;  %v1976_v44 = vadd.f32 %v1972_v47, %v1966_v25  ;;  %v616_v9 = vadd.f32 %v2284_v12, %v2278_v56  ;;  %v2305_v25 = vld [vmem:[%s6009_s3 + $0x78] sm:$0xff] }
 0x105   :  { %v1947_v53 = vmul.f32 %v4436_v37, %v4609_v51  ;;  %v4705_v45 = vpop.permute.xlu0 %1092  ;;  %1888 = vrot.lane.b32.xlu1 %v1876_v41, %s2731_s29  ;;  %v1877_v38 = vsel %vm165_vm0, %v1875_v58, %v1876_v41  ;;  %v1953_v47 = vmul.f32 %v4446_v30, %v4612_v35  ;;  %v1963_v6 = vmul.f32 %v4453_v23, %v4637_v11  ;;  %v2311_v41 = vld [vmem:[%s6010_s4 + $0x78] sm:$0xff] }
 0x106   :  { %6015 = vst [vmem:[#allocation11_spill] sm:$0xff] %v4705_v45  ;;  %2292 = vst.msk [vmem:[%s6011_s5 + $0x1f0] sm:$0x3] %vm100_vm1, %v625_v27  ;;  %v722_v48 = vadd.f32 %v4236_v57, %v625_v27  ;;  %v4720_v56 = vpop.permute.xlu1 %1094  ;;  %1886 = vrot.lane.b32.xlu0 %v1877_v38, %s2731_s29  ;;  %v1985_v58 = vadd.f32 %v1981_v54, %v1975_v4  ;;  %v1986_v12 = vadd.f32 %v1982_v17, %v1976_v44 }
 0x107   :  { %v624_v63 = vadd.f32 %v4515_v39, %v616_v9  ;;  %v1973_v57 = vmul.f32 %v4472_v22, %v4640_v46  ;;  %v1957_v39 = vadd.f32 %v1953_v47, %v1947_v53  ;;  %v1983_v9 = vmul.f32 %v4494_v10, %v4677_v3 }
 0x108   :  { %2304 = vst.msk [vmem:[%s6011_s5 + $0x1f0] sm:$0x1] %vm200_vm2, %v722_v48  ;;  %v1993_v44 = vmul.f32 %v4501_v16, %v4680_v14  ;;  %v744_v4 = vadd.f32 %v2312_v20, %v2306_v29  ;;  %v1995_v54 = vadd.f32 %v1991_v61, %v1985_v58  ;;  %v1996_v17 = vadd.f32 %v1992_v18, %v1986_v12  ;;  %v2308_v61 = vld [vmem:[%s6009_s3 + $0x1f8] sm:$0xff]  ;;  %v2307_v58 = vld [vmem:[%s6009_s3 + $0x88] sm:$0x3] }
 0x109   :  { %2291 = vst.msk [vmem:[%s6011_s5 + $0x1e8] sm:$0xff] %vm97_vm3, %v624_v63  ;;  %v721_v27 = vadd.f32 %v4238_v55, %v624_v63  ;;  %v4750_v38 = vstv %s4666_s24  ;;  %v4752_v48 = vpop.permute.xlu0 %1096  ;;  %v1967_v53 = vadd.f32 %v1963_v6, %v1957_v39  ;;  %v743_v45 = vadd.f32 %v2311_v41, %v2305_v25  ;;  %v2314_v18 = vld [vmem:[%s6010_s4 + $0x1f8] sm:$0xff]  ;;  %v2313_v12 = vld [vmem:[%s6010_s4 + $0x88] sm:$0x3] }
 0x10a   :  { %v752_v47 = vadd.f32 %v4750_v38, %v744_v4  ;;  %v1948_v29 = vmul.f32 %v4520_v49, %v4609_v51  ;;  %v2003_v55 = vrot.slane %v1995_v54, 7  ;;  %v2004_v20 = vrot.slane %v1996_v17, 7 }
 0x10b   :  { %2303 = vst.msk [vmem:[%s6011_s5 + $0x1e8] sm:$0xff] %vm198_vm5, %v721_v27  ;;  %v1954_v51 = vmul.f32 %v4538_v8, %v4612_v35  ;;  %v1964_v6 = vmul.f32 %v4554_v43, %v4637_v11  ;;  %v4779_v63 = vpop.permute.xlu1 %1098  ;;  %v1977_v25 = vadd.f32 %v1973_v57, %v1967_v53  ;;  %v751_v11 = vadd.f32 %v4750_v38, %v743_v45 }
 0x10c   :  { %2319 = vst.msk [vmem:[%s6011_s5 + $0x80] sm:$0xff] %vm97_vm3, %v752_v47  ;;  %v849_v35 = vadd.f32 %v4308_v24, %v752_v47  ;;  %v1974_v41 = vmul.f32 %v4561_v32, %v4640_v46  ;;  %v2005_v57 = vsel %vm165_vm0, %v2003_v55, %v2004_v20  ;;  %2009 = vrot.lane.b32.xlu0 %v2003_v55, %s2731_s29  ;;  %v4810_v27 = vstv %s4718_s10  ;;  %s5525_s10 = sld [smem:[#allocation4 + $0xe]] }
 0x10d   :  { %v1958_v39 = vadd.f32 %v1954_v51, %v1948_v29  ;;  %v1984_v24 = vmul.f32 %v4581_v1, %v4677_v3  ;;  %v1994_v45 = vmul.f32 %v4598_v7, %v4680_v14  ;;  %2011 = vrot.lane.b32.xlu1 %v2005_v57, %s2731_s29  ;;  %v1987_v46 = vadd.f32 %v1983_v9, %v1977_v25 }
 0x10e   :  { %2331 = vst.msk [vmem:[%s6011_s5 + $0x80] sm:$0xff] %vm198_vm5, %v849_v35  ;;  %v848_v4 = vadd.f32 %v4279_v0, %v751_v11  ;;  %v746_v54 = vadd.f32 %v2314_v18, %v2308_v61  ;;  %v745_v3 = vadd.f32 %v2313_v12, %v2307_v58  ;;  %v4813_v14 = vstv %s4732_s8  ;;  %v2310_v58 = vld [vmem:[%s6009_s3 + $0x208] sm:$0x3] }
 0x10f   :  { %2318 = vst.msk [vmem:[%s6011_s5 + $0x78] sm:$0xff] %vm97_vm3, %v751_v11  ;;  %v1968_v17 = vadd.f32 %v1964_v6, %v1958_v39  ;;  %v4816_v9 = vstv %s4734_s27  ;;  %v4818_v53 = vpop.permute.xlu1 %1102  ;;  %v4820_v47 = vpop.permute.xlu0 %1100  ;;  %v1997_v29 = vadd.f32 %v1993_v44, %v1987_v46  ;;  %v2076_v18 = vmul.f32 %v4294_v2, %v4810_v27  ;;  %v2316_v2 = vld [vmem:[%s6010_s4 + $0x208] sm:$0x3]  ;;  %s4941_s27 = sld [smem:[#allocation4 + $0x7]] }
 0x110   :  { %2330 = vst.msk [vmem:[%s6011_s5 + $0x78] sm:$0xfe] %vm196_vm4, %v848_v4  ;;  %v754_v0 = vadd.f32 %v4750_v38, %v746_v54  ;;  %v753_v61 = vadd.f32 %v4750_v38, %v745_v3  ;;  %2013 = vrot.lane.b32.xlu0 %v2004_v20, %s2731_s29  ;;  %v2077_v51 = vmul.f32 %v4301_v40, %v4810_v27  ;;  %v2309_v54 = vld [vmem:[%s6009_s3 + $0x200] sm:$0xff] }
 0x111   :  { %v1978_v55 = vadd.f32 %v1974_v41, %v1968_v17  ;;  %v2082_v44 = vmul.f32 %v4316_v60, %v4813_v14  ;;  %v2083_v6 = vmul.f32 %v4324_v15, %v4813_v14  ;;  %v2006_v20 = vrot.slane %v1997_v29, 7  ;;  %v2315_v3 = vld [vmem:[%s6010_s4 + $0x200] sm:$0xff] }
 0x112   :  { %2321 = vst.msk [vmem:[%s6011_s5 + $0x1f8] sm:$0xff] %vm97_vm3, %v754_v0  ;;  %v851_v40 = vadd.f32 %v4403_v19, %v754_v0  ;;  %v850_v60 = vadd.f32 %v4344_v33, %v753_v61  ;;  %v2092_v15 = vmul.f32 %v4350_v34, %v4816_v9  ;;  %v2093_v11 = vmul.f32 %v4357_v21, %v4816_v9 }
 0x113   :  { %2320 = vst.msk [vmem:[%s6011_s5 + $0x88] sm:$0x3] %vm100_vm1, %v753_v61  ;;  %v1988_v12 = vadd.f32 %v1984_v24, %v1978_v55  ;;  %v2086_v25 = vadd.f32 %v2082_v44, %v2076_v18  ;;  %v2087_v35 = vadd.f32 %v2083_v6, %v2077_v51  ;;  %v4857_v41 = vpop.permute.xlu0 %1223  ;;  %2015 = vrot.lane.b32.xlu1 %v2006_v20, %s2731_s29  ;;  %v4869_v33 = vstv %s4763_s26 }
 0x114   :  { %2333 = vst.msk [vmem:[%s6011_s5 + $0x1f8] sm:$0xfe] %vm196_vm4, %v851_v40  ;;  %v4872_v34 = vstv %s4789_s21  ;;  %v4875_v19 = vstv %s4791_s6  ;;  %v748_v21 = vadd.f32 %v2316_v2, %v2310_v58  ;;  %v4879_v57 = vpop.permute.xlu1 %1225  ;;  %v2102_v4 = vmul.f32 %v4364_v42, %v4869_v33 }
 0x115   :  { %2332 = vst.msk [vmem:[%s6011_s5 + $0x88] sm:$0x1] %vm200_vm2, %v850_v60  ;;  %v1998_v39 = vadd.f32 %v1994_v45, %v1988_v12  ;;  %v2096_v24 = vadd.f32 %v2092_v15, %v2086_v25  ;;  %v2097_v46 = vadd.f32 %v2093_v11, %v2087_v35  ;;  %v2103_v17 = vmul.f32 %v4385_v28, %v4869_v33  ;;  %v2336_v12 = vld [vmem:[%s6009_s3 + $0x90] sm:$0xff] }
 0x116   :  { %v2112_v29 = vmul.f32 %v4408_v13, %v4872_v34  ;;  %v2113_v45 = vmul.f32 %v4415_v62, %v4872_v34  ;;  %v2122_v42 = vmul.f32 %v4422_v52, %v4875_v19  ;;  %v2123_v18 = vmul.f32 %v4429_v59, %v4875_v19  ;;  %v2337_v52 = vld [vmem:[%s6009_s3 + $0x98] sm:$0xff] }
 0x117   :  { %v2007_v0 = vrot.slane %v1998_v39, 7  ;;  %v2106_v61 = vadd.f32 %v2102_v4, %v2096_v24  ;;  %v756_v55 = vadd.f32 %v4750_v38, %v748_v21  ;;  %v4900_v51 = vpop.permute.xlu0 %1227  ;;  %v2107_v44 = vadd.f32 %v2103_v17, %v2097_v46  ;;  %v2343_v59 = vld [vmem:[%s6010_s4 + $0x98] sm:$0xff] }
 0x118   :  { %v747_v28 = vadd.f32 %v2315_v3, %v2309_v54  ;;  %v2078_v13 = vmul.f32 %v4436_v37, %v4810_v27  ;;  %v2084_v62 = vmul.f32 %v4446_v30, %v4813_v14  ;;  %v2094_v30 = vmul.f32 %v4453_v23, %v4816_v9  ;;  %v2342_v23 = vld [vmem:[%s6010_s4 + $0x90] sm:$0xff]  ;;  %v2344_v3 = vld [vmem:[%s6010_s4 + $0xa0] sm:$0x3] }
 0x119   :  { %2019 = vrot.lane.b32.xlu1 %v2007_v0, %s2731_s29  ;;  %v2008_v6 = vsel %vm165_vm0, %v2006_v20, %v2007_v0  ;;  %v2116_v58 = vadd.f32 %v2112_v29, %v2106_v61  ;;  %2323 = vst.msk [vmem:[%s6011_s5 + $0x208] sm:$0x3] %vm100_vm1, %v756_v55  ;;  %v853_v37 = vadd.f32 %v4463_v31, %v756_v55  ;;  %v4921_v2 = vpop.permute.xlu1 %1229  ;;  %v881_v39 = vstv %s4877_s1  ;;  %v2345_v54 = vld [vmem:[%s6010_s4 + $0x210] sm:$0xff] }
 0x11a   :  { %2017 = vrot.lane.b32.xlu0 %v2008_v6, %s2731_s29  ;;  %v2117_v40 = vadd.f32 %v2113_v45, %v2107_v44  ;;  %v755_v60 = vadd.f32 %v4750_v38, %v747_v28  ;;  %v2088_v20 = vadd.f32 %v2084_v62, %v2078_v13  ;;  %v2104_v15 = vmul.f32 %v4472_v22, %v4869_v33  ;;  %v2341_v0 = vld [vmem:[%s6009_s3 + $0x220] sm:$0x3]  ;;  %v2346_v55 = vld [vmem:[%s6010_s4 + $0x218] sm:$0xff]  ;;  %v2368_v44 = vld [vmem:[%s6009_s3 + $0xb0] sm:$0xff] }
 0x11b   :  { %v2126_v31 = vadd.f32 %v2122_v42, %v2116_v58  ;;  %2335 = vst.msk [vmem:[%s6011_s5 + $0x208] sm:$0x1] %vm200_vm2, %v853_v37  ;;  %v2114_v38 = vmul.f32 %v4494_v10, %v4872_v34  ;;  %v2124_v22 = vmul.f32 %v4501_v16, %v4875_v19  ;;  %v875_v25 = vadd.f32 %v2343_v59, %v2337_v52  ;;  %v2339_v10 = vld [vmem:[%s6009_s3 + $0x210] sm:$0xff]  ;;  %v2347_v61 = vld [vmem:[%s6010_s4 + $0x220] sm:$0x3] }
 0x11c   :  { %v2127_v35 = vadd.f32 %v2123_v18, %v2117_v40  ;;  %2322 = vst.msk [vmem:[%s6011_s5 + $0x200] sm:$0xff] %vm97_vm3, %v755_v60  ;;  %v852_v11 = vadd.f32 %v4465_v26, %v755_v60  ;;  %v2098_v21 = vadd.f32 %v2094_v30, %v2088_v20  ;;  %v874_v16 = vadd.f32 %v2342_v23, %v2336_v12  ;;  %v2338_v26 = vld [vmem:[%s6009_s3 + $0xa0] sm:$0x3]  ;;  %v2340_v18 = vld [vmem:[%s6009_s3 + $0x218] sm:$0xff]  ;;  %v2374_v28 = vld [vmem:[%s6010_s4 + $0xb0] sm:$0xff] }
 0x11d   :  { %v2134_v24 = vrot.slane %v2126_v31, 7  ;;  %v883_v46 = vadd.f32 %v881_v39, %v875_v25  ;;  %v2079_v4 = vmul.f32 %v4520_v49, %v4810_v27  ;;  %v4963_v17 = vpop.permute.xlu1 %1233  ;;  %v4965_v29 = vpop.permute.xlu0 %1231  ;;  %v2085_v27 = vmul.f32 %v4538_v8, %v4813_v14  ;;  %v2376_v30 = vld [vmem:[%s6010_s4 + $0x228] sm:$0xff]  ;;  %v2369_v40 = vld [vmem:[%s6009_s3 + $0xb8] sm:$0x3] }
 0x11e   :  { %v2135_v45 = vrot.slane %v2127_v35, 7  ;;  %2334 = vst.msk [vmem:[%s6011_s5 + $0x200] sm:$0xff] %vm198_vm5, %v852_v11  ;;  %v2108_v49 = vadd.f32 %v2104_v15, %v2098_v21  ;;  %v2095_v42 = vmul.f32 %v4554_v43, %v4816_v9  ;;  %v882_v43 = vadd.f32 %v881_v39, %v874_v16  ;;  %v2375_v31 = vld [vmem:[%s6010_s4 + $0xb8] sm:$0x3]  ;;  %v6016_v16 = vld [vmem:[#allocation8_spill] sm:$0xff] }
 0x11f   :  { %2140 = vrot.lane.b32.xlu0 %v2134_v24, %s2731_s29  ;;  %2350 = vst.msk [vmem:[%s6011_s5 + $0x98] sm:$0xff] %vm97_vm3, %v883_v46  ;;  %v980_v8 = vadd.f32 %v4548_v50, %v883_v46  ;;  %v2105_v14 = vmul.f32 %v4561_v32, %v4869_v33  ;;  %v2115_v9 = vmul.f32 %v4581_v1, %v4872_v34  ;;  %v1012_v23 = vstv %s4941_s27  ;;  %v2377_v46 = vld [vmem:[%s6010_s4 + $0x230] sm:$0xff] }
 0x120   :  { %v2136_v50 = vsel %vm165_vm0, %v2134_v24, %v2135_v45  ;;  %v2118_v13 = vadd.f32 %v2114_v38, %v2108_v49  ;;  %v2089_v62 = vadd.f32 %v2085_v27, %v2079_v4  ;;  %v2125_v32 = vmul.f32 %v4598_v7, %v4875_v19  ;;  %2349 = vst.msk [vmem:[%s6011_s5 + $0x90] sm:$0xff] %vm97_vm3, %v882_v43  ;;  %v2367_v7 = vld [vmem:[%s6009_s3 + $0xa8] sm:$0xff]  ;;  %v2372_v38 = vld [vmem:[%s6009_s3 + $0x238] sm:$0x3]  ;;  %v2371_v24 = vld [vmem:[%s6009_s3 + $0x230] sm:$0xff] }
 0x121   :  { %2142 = vrot.lane.b32.xlu1 %v2136_v50, %s2731_s29  ;;  %2362 = vst.msk [vmem:[%s6011_s5 + $0x98] sm:$0xff] %vm198_vm5, %v980_v8  ;;  %v979_v1 = vadd.f32 %v4528_v36, %v882_v43  ;;  %v877_v33 = vadd.f32 %v2345_v54, %v2339_v10  ;;  %v876_v34 = vadd.f32 %v2344_v3, %v2338_v26  ;;  %v2373_v19 = vld [vmem:[%s6010_s4 + $0xa8] sm:$0xff]  ;;  %v5035_v60 = vpop.permute.xlu0 %1354  ;;  %v2378_v10 = vld [vmem:[%s6010_s4 + $0x238] sm:$0x3]  ;;  %v6018_v27 = vld [vmem:[#allocation10_spill] sm:$0xff] }
 0x122   :  { %v879_v52 = vadd.f32 %v2347_v61, %v2341_v0  ;;  %v5024_v59 = vadd.f32 %v2124_v22, %v2118_v13  ;;  %v2099_v6 = vadd.f32 %v2095_v42, %v2089_v62  ;;  %v878_v58 = vadd.f32 %v2346_v55, %v2340_v18  ;;  %v2370_v36 = vld [vmem:[%s6009_s3 + $0x228] sm:$0xff]  ;;  %v5049_v22 = vpop.permute.xlu1 %1356  ;;  %v2401_v55 = vld [vmem:[%s6009_s3 + $0x240] sm:$0xff] }
 0x123   :  { %v1006_v37 = vadd.f32 %v2374_v28, %v2368_v44  ;;  %2144 = vrot.lane.b32.xlu0 %v2135_v45, %s2731_s29  ;;  %2361 = vst.msk [vmem:[%s6011_s5 + $0x90] sm:$0xfe] %vm196_vm4, %v979_v1  ;;  %v885_v20 = vadd.f32 %v881_v39, %v877_v33  ;;  %v884_v15 = vadd.f32 %v881_v39, %v876_v34  ;;  %v6017_v54 = vld [vmem:[#allocation9_spill] sm:$0xff]  ;;  %v5127_v13 = vstv %s5006_s30  ;;  %v2407_v62 = vld [vmem:[%s6010_s4 + $0x240] sm:$0xff]  ;;  %v6019_v34 = vld [vmem:[#allocation11_spill] sm:$0xff]  ;;  %s5196_s30 = sld [smem:[#allocation4 + $0xa]] }
 0x124   :  { %v887_v12 = vadd.f32 %v881_v39, %v879_v52  ;;  %v2137_v25 = vrot.slane %v5024_v59, 7  ;;  %v2109_v35 = vadd.f32 %v2105_v14, %v2099_v6  ;;  %v886_v11 = vadd.f32 %v881_v39, %v878_v58  ;;  %v2399_v45 = vld [vmem:[%s6009_s3 + $0xc8] sm:$0xff]  ;;  %v2398_v14 = vld [vmem:[%s6009_s3 + $0xc0] sm:$0xff]  ;;  %v2406_v1 = vld [vmem:[%s6010_s4 + $0xd0] sm:$0x3] }
 0x125   :  { %v1014_v21 = vadd.f32 %v1012_v23, %v1006_v37  ;;  %2352 = vst.msk [vmem:[%s6011_s5 + $0x210] sm:$0xff] %vm97_vm3, %v885_v20  ;;  %v982_v39 = vadd.f32 %v4623_v5, %v885_v20  ;;  %v981_v4 = vadd.f32 %v6016_v16, %v884_v15  ;;  %v1005_v3 = vadd.f32 %v2373_v19, %v2367_v7  ;;  %v2405_v5 = vld [vmem:[%s6010_s4 + $0xc8] sm:$0xff]  ;;  %v5138_v33 = vpop.permute.xlu0 %1358  ;;  %v2403_v58 = vld [vmem:[%s6009_s3 + $0x250] sm:$0x3]  ;;  %v2432_v59 = vld [vmem:[%s6009_s3 + $0x258] sm:$0xff] }
 0x126   :  { %2351 = vst.msk [vmem:[%s6011_s5 + $0xa0] sm:$0x3] %vm100_vm1, %v884_v15  ;;  %2354 = vst.msk [vmem:[%s6011_s5 + $0x220] sm:$0x3] %vm100_vm1, %v887_v12  ;;  %v984_v26 = vadd.f32 %v6017_v54, %v887_v12  ;;  %2146 = vrot.lane.b32.xlu1 %v2137_v25, %s2731_s29  ;;  %v2119_v49 = vadd.f32 %v2115_v9, %v2109_v35  ;;  %v983_v42 = vadd.f32 %v6018_v27, %v886_v11  ;;  %v2404_v9 = vld [vmem:[%s6010_s4 + $0xc0] sm:$0xff] }
 0x127   :  { %2353 = vst.msk [vmem:[%s6011_s5 + $0x218] sm:$0xff] %vm97_vm3, %v886_v11  ;;  %2381 = vst.msk [vmem:[%s6011_s5 + $0xb0] sm:$0xff] %vm97_vm3, %v1014_v21  ;;  %v1111_v0 = vadd.f32 %v4720_v56, %v1014_v21  ;;  %v1008_v61 = vadd.f32 %v2376_v30, %v2370_v36  ;;  %v1013_v56 = vadd.f32 %v1012_v23, %v1005_v3  ;;  %v2409_v37 = vld [vmem:[%s6010_s4 + $0x250] sm:$0x3]  ;;  %v2402_v36 = vld [vmem:[%s6009_s3 + $0x248] sm:$0xff]  ;;  %v5154_v30 = vpop.permute.xlu1 %1360 }
 0x128   :  { %2364 = vst.msk [vmem:[%s6011_s5 + $0x210] sm:$0xfe] %vm196_vm4, %v982_v39  ;;  %v1007_v18 = vadd.f32 %v2375_v31, %v2369_v40  ;;  %v1010_v8 = vadd.f32 %v2378_v10, %v2372_v38  ;;  %v1009_v43 = vadd.f32 %v2377_v46, %v2371_v24  ;;  %v2129_v44 = vadd.f32 %v2125_v32, %v2119_v49  ;;  %v2400_v32 = vld [vmem:[%s6009_s3 + $0xd0] sm:$0x3]  ;;  %v2430_v31 = vld [vmem:[%s6009_s3 + $0xe0] sm:$0xff]  ;;  %v2429_v10 = vld [vmem:[%s6009_s3 + $0xd8] sm:$0xff] }
 0x129   :  { %2363 = vst.msk [vmem:[%s6011_s5 + $0xa0] sm:$0x1] %vm200_vm2, %v981_v4  ;;  %2366 = vst.msk [vmem:[%s6011_s5 + $0x220] sm:$0x1] %vm200_vm2, %v984_v26  ;;  %v1016_v28 = vadd.f32 %v1012_v23, %v1008_v61  ;;  %v1137_v50 = vadd.f32 %v2405_v5, %v2399_v45  ;;  %v1110_v52 = vadd.f32 %v6019_v34, %v1013_v56  ;;  %v2436_v38 = vld [vmem:[%s6010_s4 + $0xe0] sm:$0xff]  ;;  %v1274_v27 = vstv %s5095_s19  ;;  %s5370_s19 = sld [smem:[#allocation4 + $0xc]] }
 0x12a   :  { %2365 = vst.msk [vmem:[%s6011_s5 + $0x218] sm:$0xff] %vm198_vm5, %v983_v42  ;;  %2393 = vst.msk [vmem:[%s6011_s5 + $0xb0] sm:$0xff] %vm198_vm5, %v1111_v0  ;;  %v1015_v7 = vadd.f32 %v1012_v23, %v1007_v18  ;;  %v1018_v19 = vadd.f32 %v1012_v23, %v1010_v8  ;;  %v1017_v6 = vadd.f32 %v1012_v23, %v1009_v43  ;;  %v2138_v40 = vrot.slane %v2129_v44, 7  ;;  %v2408_v23 = vld [vmem:[%s6010_s4 + $0x248] sm:$0xff]  ;;  %v2433_v0 = vld [vmem:[%s6009_s3 + $0x260] sm:$0xff] }
 0x12b   :  { %2380 = vst.msk [vmem:[%s6011_s5 + $0xa8] sm:$0xff] %vm97_vm3, %v1013_v56  ;;  %2383 = vst.msk [vmem:[%s6011_s5 + $0x228] sm:$0xff] %vm97_vm3, %v1016_v28  ;;  %v1113_v20 = vadd.f32 %v4779_v63, %v1016_v28  ;;  %v1145_v15 = vadd.f32 %v5127_v13, %v1137_v50  ;;  %v1136_v12 = vadd.f32 %v2404_v9, %v2398_v14  ;;  %v2431_v39 = vld [vmem:[%s6009_s3 + $0xe8] sm:$0x3]  ;;  %v2439_v61 = vld [vmem:[%s6010_s4 + $0x260] sm:$0xff] }
 0x12c   :  { %2392 = vst.msk [vmem:[%s6011_s5 + $0xa8] sm:$0xfe] %vm196_vm4, %v1110_v52  ;;  %v1112_v63 = vadd.f32 %v4752_v48, %v1015_v7  ;;  %v1115_v35 = vadd.f32 %v4818_v53, %v1018_v19  ;;  %v1114_v11 = vadd.f32 %v4820_v47, %v1017_v6  ;;  %v1139_v21 = vadd.f32 %v2407_v62, %v2401_v55  ;;  %v2435_v48 = vld [vmem:[%s6010_s4 + $0xd8] sm:$0xff]  ;;  %v2437_v26 = vld [vmem:[%s6010_s4 + $0xe8] sm:$0x3]  ;;  %v1365_v9 = vpop.permute.xlu1 %1364  ;;  %v2460_v44 = vld [vmem:[%s6009_s3 + $0xf0] sm:$0xff] }
 0x12d   :  { %2382 = vst.msk [vmem:[%s6011_s5 + $0xb8] sm:$0x3] %vm100_vm1, %v1015_v7  ;;  %2385 = vst.msk [vmem:[%s6011_s5 + $0x238] sm:$0x3] %vm100_vm1, %v1018_v19  ;;  %2150 = vrot.lane.b32.xlu1 %v2138_v40, %s2731_s29  ;;  %v2139_v53 = vsel %vm165_vm0, %v2137_v25, %v2138_v40  ;;  %v1242_v47 = vadd.f32 %v4879_v57, %v1145_v15  ;;  %v1144_v24 = vadd.f32 %v5127_v13, %v1136_v12  ;;  %v2438_v25 = vld [vmem:[%s6010_s4 + $0x258] sm:$0xff]  ;;  %v5261_v56 = vpop.permute.xlu0 %1362 }
 0x12e   :  { %2384 = vst.msk [vmem:[%s6011_s5 + $0x230] sm:$0xff] %vm97_vm3, %v1017_v6  ;;  %2412 = vst.msk [vmem:[%s6011_s5 + $0xc8] sm:$0xff] %vm97_vm3, %v1145_v15  ;;  %v1138_v46 = vadd.f32 %v2406_v1, %v2400_v32  ;;  %2148 = vrot.lane.b32.xlu0 %v2139_v53, %s2731_s29  ;;  %v1147_v57 = vadd.f32 %v5127_v13, %v1139_v21  ;;  %v1141_v16 = vadd.f32 %v2409_v37, %v2403_v58  ;;  %v2434_v3 = vld [vmem:[%s6009_s3 + $0x268] sm:$0x3] }
 0x12f   :  { %2395 = vst.msk [vmem:[%s6011_s5 + $0x228] sm:$0xfe] %vm196_vm4, %v1113_v20  ;;  %v1140_v4 = vadd.f32 %v2408_v23, %v2402_v36  ;;  %v1268_v54 = vadd.f32 %v2436_v38, %v2430_v31  ;;  %v2440_v45 = vld [vmem:[%s6010_s4 + $0x268] sm:$0x3]  ;;  %v1241_v5 = vadd.f32 %v4857_v41, %v1144_v24  ;;  %v1267_v42 = vadd.f32 %v2435_v48, %v2429_v10  ;;  %v2461_v18 = vld [vmem:[%s6009_s3 + $0xf8] sm:$0xff]  ;;  %v2466_v28 = vld [vmem:[%s6010_s4 + $0xf0] sm:$0xff] }
 0x130   :  { %2394 = vst.msk [vmem:[%s6011_s5 + $0xb8] sm:$0x1] %vm200_vm2, %v1112_v63  ;;  %2397 = vst.msk [vmem:[%s6011_s5 + $0x238] sm:$0x1] %vm200_vm2, %v1115_v35  ;;  %v1146_v49 = vadd.f32 %v5127_v13, %v1138_v46  ;;  %v1244_v41 = vadd.f32 %v4921_v2, %v1147_v57  ;;  %v1149_v8 = vadd.f32 %v5127_v13, %v1141_v16  ;;  %v2467_v55 = vld [vmem:[%s6010_s4 + $0xf8] sm:$0xff]  ;;  %v2463_v32 = vld [vmem:[%s6009_s3 + $0x270] sm:$0xff] }
 0x131   :  { %2396 = vst.msk [vmem:[%s6011_s5 + $0x230] sm:$0xff] %vm198_vm5, %v1114_v11  ;;  %2424 = vst.msk [vmem:[%s6011_s5 + $0xc8] sm:$0xff] %vm198_vm5, %v1242_v47  ;;  %v1148_v43 = vadd.f32 %v5127_v13, %v1140_v4  ;;  %v1276_v14 = vadd.f32 %v1274_v27, %v1268_v54  ;;  %v1275_v50 = vadd.f32 %v1274_v27, %v1267_v42  ;;  %v2469_v1 = vld [vmem:[%s6010_s4 + $0x270] sm:$0xff]  ;;  %v2462_v34 = vld [vmem:[%s6009_s3 + $0x100] sm:$0x3] }
 0x132   :  { %2411 = vst.msk [vmem:[%s6011_s5 + $0xc0] sm:$0xff] %vm97_vm3, %v1144_v24  ;;  %2414 = vst.msk [vmem:[%s6011_s5 + $0x240] sm:$0xff] %vm97_vm3, %v1147_v57  ;;  %v1243_v2 = vadd.f32 %v4900_v51, %v1146_v49  ;;  %v1270_v13 = vadd.f32 %v2438_v25, %v2432_v59  ;;  %v1269_v62 = vadd.f32 %v2437_v26, %v2431_v39  ;;  %v2468_v6 = vld [vmem:[%s6010_s4 + $0x100] sm:$0x3]  ;;  %v2464_v40 = vld [vmem:[%s6009_s3 + $0x278] sm:$0xff] }
 0x133   :  { %2423 = vst.msk [vmem:[%s6011_s5 + $0xc0] sm:$0xfe] %vm196_vm4, %v1241_v5  ;;  %2426 = vst.msk [vmem:[%s6011_s5 + $0x240] sm:$0xfe] %vm196_vm4, %v1244_v41  ;;  %v1246_v51 = vadd.f32 %v4963_v17, %v1149_v8  ;;  %v1245_v52 = vadd.f32 %v4965_v29, %v1148_v43  ;;  %v1373_v7 = vadd.f32 %v5049_v22, %v1276_v14  ;;  %v2465_v17 = vld [vmem:[%s6009_s3 + $0x280] sm:$0x3]  ;;  %v1405_v23 = vstv %s5196_s30  ;;  %v1486_v48 = vpop.permute.xlu0 %1485 }
 0x134   :  { %2413 = vst.msk [vmem:[%s6011_s5 + $0xd0] sm:$0x3] %vm100_vm1, %v1146_v49  ;;  %2416 = vst.msk [vmem:[%s6011_s5 + $0x250] sm:$0x3] %vm100_vm1, %v1149_v8  ;;  %v1272_v19 = vadd.f32 %v2440_v45, %v2434_v3  ;;  %v2471_v29 = vld [vmem:[%s6010_s4 + $0x280] sm:$0x3]  ;;  %v1372_v22 = vadd.f32 %v5035_v60, %v1275_v50  ;;  %v1278_v58 = vadd.f32 %v1274_v27, %v1270_v13  ;;  %v1488_v59 = vpop.permute.xlu1 %1487 }
 0x135   :  { %2415 = vst.msk [vmem:[%s6011_s5 + $0x248] sm:$0xff] %vm97_vm3, %v1148_v43  ;;  %2443 = vst.msk [vmem:[%s6011_s5 + $0xe0] sm:$0xff] %vm97_vm3, %v1276_v14  ;;  %v1277_v37 = vadd.f32 %v1274_v27, %v1269_v62  ;;  %v1271_v36 = vadd.f32 %v2439_v61, %v2433_v0  ;;  %v2470_v20 = vld [vmem:[%s6010_s4 + $0x278] sm:$0xff]  ;;  %v2492_v15 = vld [vmem:[%s6009_s3 + $0x110] sm:$0xff]  ;;  %v1399_v12 = vadd.f32 %v2467_v55, %v2461_v18 }
 0x136   :  { %2425 = vst.msk [vmem:[%s6011_s5 + $0xd0] sm:$0x1] %vm200_vm2, %v1243_v2  ;;  %2428 = vst.msk [vmem:[%s6011_s5 + $0x250] sm:$0x1] %vm200_vm2, %v1246_v51  ;;  %v1280_v60 = vadd.f32 %v1274_v27, %v1272_v19  ;;  %v1398_v31 = vadd.f32 %v2466_v28, %v2460_v44  ;;  %v2498_v38 = vld [vmem:[%s6010_s4 + $0x110] sm:$0xff]  ;;  %v2491_v63 = vld [vmem:[%s6009_s3 + $0x108] sm:$0xff]  ;;  %v1375_v11 = vadd.f32 %v5154_v30, %v1278_v58 }
 0x137   :  { %2442 = vst.msk [vmem:[%s6011_s5 + $0xd8] sm:$0xff] %vm97_vm3, %v1275_v50  ;;  %v2497_v35 = vld [vmem:[%s6010_s4 + $0x108] sm:$0xff]  ;;  %2445 = vst.msk [vmem:[%s6011_s5 + $0x258] sm:$0xff] %vm97_vm3, %v1278_v58  ;;  %v1374_v21 = vadd.f32 %v5138_v33, %v1277_v37  ;;  %v1279_v10 = vadd.f32 %v1274_v27, %v1271_v36  ;;  %v1401_v53 = vadd.f32 %v2469_v1, %v2463_v32  ;;  %v2493_v30 = vld [vmem:[%s6009_s3 + $0x118] sm:$0x3]  ;;  %v1490_v43 = vpop.permute.xlu0 %1489 }
 0x138   :  { %2427 = vst.msk [vmem:[%s6011_s5 + $0x248] sm:$0xff] %vm198_vm5, %v1245_v52  ;;  %2455 = vst.msk [vmem:[%s6011_s5 + $0xe0] sm:$0xff] %vm198_vm5, %v1373_v7  ;;  %v2494_v47 = vld [vmem:[%s6009_s3 + $0x288] sm:$0xff]  ;;  %v1377_v33 = vadd.f32 %v1365_v9, %v1280_v60  ;;  %v1407_v46 = vadd.f32 %v1405_v23, %v1399_v12  ;;  %v1406_v25 = vadd.f32 %v1405_v23, %v1398_v31  ;;  %v2499_v57 = vld [vmem:[%s6010_s4 + $0x118] sm:$0x3] }
 0x139   :  { %2454 = vst.msk [vmem:[%s6011_s5 + $0xd8] sm:$0xfe] %vm196_vm4, %v1372_v22  ;;  %v2500_v24 = vld [vmem:[%s6010_s4 + $0x288] sm:$0xff]  ;;  %v1400_v39 = vadd.f32 %v2468_v6, %v2462_v34  ;;  %v2496_v16 = vld [vmem:[%s6009_s3 + $0x298] sm:$0x3]  ;;  %v1376_v54 = vadd.f32 %v5261_v56, %v1279_v10  ;;  %v1409_v26 = vadd.f32 %v1405_v23, %v1401_v53  ;;  %v1403_v3 = vadd.f32 %v2471_v29, %v2465_v17  ;;  %v2495_v5 = vld [vmem:[%s6009_s3 + $0x290] sm:$0xff] }
 0x13a   :  { %2444 = vst.msk [vmem:[%s6011_s5 + $0xe8] sm:$0x3] %vm100_vm1, %v1277_v37  ;;  %2447 = vst.msk [vmem:[%s6011_s5 + $0x268] sm:$0x3] %vm100_vm1, %v1280_v60  ;;  %v2502_v4 = vld [vmem:[%s6010_s4 + $0x298] sm:$0x3]  ;;  %v1402_v45 = vadd.f32 %v2470_v20, %v2464_v40  ;;  %v1504_v42 = vadd.f32 %v1488_v59, %v1407_v46  ;;  %v1503_v0 = vadd.f32 %v1486_v48, %v1406_v25  ;;  %v1536_v55 = vstv %s5300_s2  ;;  %v1492_v40 = vpop.permute.xlu1 %1491 }
 0x13b   :  { %2457 = vst.msk [vmem:[%s6011_s5 + $0x258] sm:$0xfe] %vm196_vm4, %v1375_v11  ;;  %v2501_v49 = vld [vmem:[%s6010_s4 + $0x290] sm:$0xff]  ;;  %v2523_v27 = vld [vmem:[%s6009_s3 + $0x128] sm:$0xff]  ;;  %v1408_v61 = vadd.f32 %v1405_v23, %v1400_v39  ;;  %v1530_v56 = vadd.f32 %v2498_v38, %v2492_v15  ;;  %v2522_v41 = vld [vmem:[%s6009_s3 + $0x120] sm:$0xff]  ;;  %v5461_v14 = vadd.f32 %v1405_v23, %v1403_v3  ;;  %v1529_v44 = vadd.f32 %v2497_v35, %v2491_v63 }
 0x13c   :  { %2456 = vst.msk [vmem:[%s6011_s5 + $0xe8] sm:$0x1] %vm200_vm2, %v1374_v21  ;;  %2459 = vst.msk [vmem:[%s6011_s5 + $0x268] sm:$0x1] %vm200_vm2, %v1377_v33  ;;  %v2529_v18 = vld [vmem:[%s6010_s4 + $0x128] sm:$0xff]  ;;  %v2528_v8 = vld [vmem:[%s6010_s4 + $0x120] sm:$0xff]  ;;  %v5463_v9 = vadd.f32 %v1405_v23, %v1402_v45  ;;  %v1532_v34 = vadd.f32 %v2500_v24, %v2494_v47  ;;  %v1531_v51 = vadd.f32 %v2499_v57, %v2493_v30 }
 0x13d   :  { %2446 = vst.msk [vmem:[%s6011_s5 + $0x260] sm:$0xff] %vm97_vm3, %v1279_v10  ;;  %2474 = vst.msk [vmem:[%s6011_s5 + $0xf8] sm:$0xff] %vm97_vm3, %v1407_v46  ;;  %v2525_v28 = vld [vmem:[%s6009_s3 + $0x2a0] sm:$0xff]  ;;  %v2524_v50 = vld [vmem:[%s6009_s3 + $0x130] sm:$0x3]  ;;  %v1505_v32 = vadd.f32 %v1490_v43, %v1408_v61  ;;  %v5493_v1 = vadd.f32 %v1536_v55, %v1530_v56  ;;  %v5514_v6 = vadd.f32 %v1536_v55, %v1529_v44 }
 0x13e   :  { %2473 = vst.msk [vmem:[%s6011_s5 + $0xf0] sm:$0xff] %vm97_vm3, %v1406_v25  ;;  %2476 = vst.msk [vmem:[%s6011_s5 + $0x270] sm:$0xff] %vm97_vm3, %v1409_v26  ;;  %v2531_v2 = vld [vmem:[%s6010_s4 + $0x2a0] sm:$0xff]  ;;  %v2530_v13 = vld [vmem:[%s6010_s4 + $0x130] sm:$0x3]  ;;  %v1534_v17 = vadd.f32 %v2502_v4, %v2496_v16  ;;  %v1533_v29 = vadd.f32 %v2501_v49, %v2495_v5  ;;  %v1661_v22 = vadd.f32 %v2529_v18, %v2523_v27 }
 0x13f   :  { %2458 = vst.msk [vmem:[%s6011_s5 + $0x260] sm:$0xff] %vm198_vm5, %v1376_v54  ;;  %v2527_v62 = vld [vmem:[%s6009_s3 + $0x2b0] sm:$0x3]  ;;  %2486 = vst.msk [vmem:[%s6011_s5 + $0xf8] sm:$0xff] %vm198_vm5, %v1504_v42  ;;  %v2526_v7 = vld [vmem:[%s6009_s3 + $0x2a8] sm:$0xff]  ;;  %v5536_v20 = vadd.f32 %v1536_v55, %v1532_v34  ;;  %v5538_v15 = vadd.f32 %v1536_v55, %v1531_v51  ;;  %v1660_v12 = vadd.f32 %v2528_v8, %v2522_v41  ;;  %v1496_v56 = vpop.permute.xlu1 %1495 }
 0x140   :  { %2485 = vst.msk [vmem:[%s6011_s5 + $0xf0] sm:$0xfe] %vm196_vm4, %v1503_v0  ;;  %v2533_v52 = vld [vmem:[%s6010_s4 + $0x2b0] sm:$0x3]  ;;  %v2532_v19 = vld [vmem:[%s6010_s4 + $0x2a8] sm:$0xff]  ;;  %v2554_v58 = vld [vmem:[%s6009_s3 + $0x140] sm:$0xff]  ;;  %v1506_v63 = vadd.f32 %v1492_v40, %v1409_v26  ;;  %v5555_v35 = vadd.f32 %v1536_v55, %v1534_v17  ;;  %v5557_v11 = vadd.f32 %v1536_v55, %v1533_v29  ;;  %v1663_v24 = vadd.f32 %v2531_v2, %v2525_v28 }
 0x141   :  { %2475 = vst.msk [vmem:[%s6011_s5 + $0x100] sm:$0x3] %vm100_vm1, %v1408_v61  ;;  %2478 = vst.msk [vmem:[%s6011_s5 + $0x280] sm:$0x3] %vm100_vm1, %v5461_v14  ;;  %v2560_v37 = vld [vmem:[%s6010_s4 + $0x140] sm:$0xff]  ;;  %v2553_v36 = vld [vmem:[%s6009_s3 + $0x138] sm:$0xff]  ;;  %v1662_v30 = vadd.f32 %v2530_v13, %v2524_v50  ;;  %v1665_v33 = vadd.f32 %v2533_v52, %v2527_v62  ;;  %v1664_v39 = vadd.f32 %v2532_v19, %v2526_v7  ;;  %v1494_v50 = vpop.permute.xlu0 %1493 }
 0x142   :  { %2477 = vst.msk [vmem:[%s6011_s5 + $0x278] sm:$0xff] %vm97_vm3, %v5463_v9  ;;  %2505 = vst.msk [vmem:[%s6011_s5 + $0x110] sm:$0xff] %vm97_vm3, %v5493_v1  ;;  %v1667_v60 = vstv %s5370_s19  ;;  %v2559_v23 = vld [vmem:[%s6010_s4 + $0x138] sm:$0xff]  ;;  %v1792_v57 = vadd.f32 %v2560_v37, %v2554_v58  ;;  %v1508_v2 = vadd.f32 %v1496_v56, %v5461_v14  ;;  %v1507_v52 = vadd.f32 %v1494_v50, %v5463_v9 }
 0x143   :  { %2487 = vst.msk [vmem:[%s6011_s5 + $0x100] sm:$0x1] %vm200_vm2, %v1505_v32  ;;  %v2556_v31 = vld [vmem:[%s6009_s3 + $0x2b8] sm:$0xff]  ;;  %v5559_v21 = vadd.f32 %v1667_v60, %v1661_v22  ;;  %v2555_v10 = vld [vmem:[%s6009_s3 + $0x148] sm:$0x3]  ;;  %v5580_v47 = vadd.f32 %v1667_v60, %v1660_v12  ;;  %v2557_v59 = vld [vmem:[%s6009_s3 + $0x2c0] sm:$0xff]  ;;  %v1791_v4 = vadd.f32 %v2559_v23, %v2553_v36  ;;  %v5627_v45 = vadd.f32 %v1667_v60, %v1663_v24 }
 0x144   :  { %v2562_v38 = vld [vmem:[%s6010_s4 + $0x2b8] sm:$0xff]  ;;  %2504 = vst.msk [vmem:[%s6011_s5 + $0x108] sm:$0xff] %vm97_vm3, %v5514_v6  ;;  %v2561_v48 = vld [vmem:[%s6010_s4 + $0x148] sm:$0x3]  ;;  %2507 = vst.msk [vmem:[%s6011_s5 + $0x288] sm:$0xff] %vm97_vm3, %v5536_v20  ;;  %v5629_v5 = vadd.f32 %v1667_v60, %v1662_v30  ;;  %v5631_v49 = vadd.f32 %v1667_v60, %v1665_v33  ;;  %v5642_v18 = vadd.f32 %v1667_v60, %v1664_v39 }
 0x145   :  { %v2558_v53 = vld [vmem:[%s6009_s3 + $0x2c8] sm:$0x3]  ;;  %2506 = vst.msk [vmem:[%s6011_s5 + $0x118] sm:$0x3] %vm100_vm1, %v5538_v15  ;;  %v2563_v25 = vld [vmem:[%s6010_s4 + $0x2c0] sm:$0xff]  ;;  %v1798_v16 = vstv %s5430_s11  ;;  %v1794_v27 = vadd.f32 %v2562_v38, %v2556_v31  ;;  %v1793_v43 = vadd.f32 %v2561_v48, %v2555_v10 }
 0x146   :  { %v2564_v46 = vld [vmem:[%s6010_s4 + $0x2c8] sm:$0x3]  ;;  %2488 = vst.msk [vmem:[%s6011_s5 + $0x270] sm:$0xfe] %vm196_vm4, %v1506_v63  ;;  %v2585_v54 = vld [vmem:[%s6009_s3 + $0x158] sm:$0xff]  ;;  %v2584_v3 = vld [vmem:[%s6009_s3 + $0x150] sm:$0xff]  ;;  %v5644_v41 = vadd.f32 %v1798_v16, %v1792_v57  ;;  %v5646_v8 = vadd.f32 %v1798_v16, %v1791_v4  ;;  %v1795_v62 = vadd.f32 %v2563_v25, %v2557_v59 }
 0x147   :  { %2509 = vst.msk [vmem:[%s6011_s5 + $0x298] sm:$0x3] %vm100_vm1, %v5555_v35  ;;  %v2591_v26 = vld [vmem:[%s6010_s4 + $0x158] sm:$0xff]  ;;  %v2590_v42 = vld [vmem:[%s6010_s4 + $0x150] sm:$0xff]  ;;  %v2586_v55 = vld [vmem:[%s6009_s3 + $0x160] sm:$0x3]  ;;  %v5673_v14 = vadd.f32 %v1798_v16, %v1794_v27  ;;  %v1796_v13 = vadd.f32 %v2564_v46, %v2558_v53  ;;  %v5700_v7 = vadd.f32 %v1798_v16, %v1793_v43  ;;  %v1619_v56 = vpop.permute.xlu1 %1618 }
 0x148   :  { %2508 = vst.msk [vmem:[%s6011_s5 + $0x290] sm:$0xff] %vm97_vm3, %v5557_v11  ;;  %2536 = vst.msk [vmem:[%s6011_s5 + $0x128] sm:$0xff] %vm97_vm3, %v5559_v21  ;;  %v2587_v0 = vld [vmem:[%s6009_s3 + $0x2d0] sm:$0xff]  ;;  %v2592_v44 = vld [vmem:[%s6010_s4 + $0x160] sm:$0x3]  ;;  %v1923_v9 = vadd.f32 %v2591_v26, %v2585_v54  ;;  %v5723_v37 = vadd.f32 %v1798_v16, %v1795_v62  ;;  %v1922_v36 = vadd.f32 %v2590_v42, %v2584_v3 }
 0x149   :  { %2535 = vst.msk [vmem:[%s6011_s5 + $0x120] sm:$0xff] %vm97_vm3, %v5580_v47  ;;  %v2593_v61 = vld [vmem:[%s6010_s4 + $0x2d0] sm:$0xff]  ;;  %v2589_v28 = vld [vmem:[%s6009_s3 + $0x2e0] sm:$0x3]  ;;  %2538 = vst.msk [vmem:[%s6011_s5 + $0x2a0] sm:$0xff] %vm97_vm3, %v5627_v45  ;;  %v5721_v58 = vadd.f32 %v1798_v16, %v1796_v13  ;;  %v1924_v38 = vadd.f32 %v2592_v44, %v2586_v55  ;;  %v1617_v16 = vpop.permute.xlu0 %1616  ;;  %v1635_v44 = vadd.f32 %v1619_v56, %v5493_v1 }
 0x14a   :  { %2537 = vst.msk [vmem:[%s6011_s5 + $0x130] sm:$0x3] %vm100_vm1, %v5629_v5  ;;  %2540 = vst.msk [vmem:[%s6011_s5 + $0x2b0] sm:$0x3] %vm100_vm1, %v5631_v49  ;;  %v2595_v32 = vld [vmem:[%s6010_s4 + $0x2e0] sm:$0x3]  ;;  %v1929_v19 = vstv %s5525_s10  ;;  %v1925_v40 = vadd.f32 %v2593_v61, %v2587_v0  ;;  %v1634_v27 = vadd.f32 %v1617_v16, %v5514_v6 }
 0x14b   :  { %v2588_v34 = vld [vmem:[%s6009_s3 + $0x2d8] sm:$0xff]  ;;  %2539 = vst.msk [vmem:[%s6011_s5 + $0x2a8] sm:$0xff] %vm97_vm3, %v5642_v18  ;;  %2567 = vst.msk [vmem:[%s6011_s5 + $0x140] sm:$0xff] %vm97_vm3, %v5644_v41  ;;  %v2616_v17 = vld [vmem:[%s6009_s3 + $0x170] sm:$0xff]  ;;  %v5743_v31 = vadd.f32 %v1929_v19, %v1923_v9  ;;  %v1927_v63 = vadd.f32 %v2595_v32, %v2589_v28  ;;  %v5764_v30 = vadd.f32 %v1929_v19, %v1922_v36 }
 0x14c   :  { %v2594_v51 = vld [vmem:[%s6010_s4 + $0x2d8] sm:$0xff]  ;;  %2566 = vst.msk [vmem:[%s6011_s5 + $0x138] sm:$0xff] %vm97_vm3, %v5646_v8  ;;  %v2622_v29 = vld [vmem:[%s6010_s4 + $0x170] sm:$0xff]  ;;  %v2615_v22 = vld [vmem:[%s6009_s3 + $0x168] sm:$0xff]  ;;  %v5766_v33 = vadd.f32 %v1929_v19, %v1925_v40  ;;  %v5783_v4 = vadd.f32 %v1929_v19, %v1924_v38 }
 0x14d   :  { %2490 = vst.msk [vmem:[%s6011_s5 + $0x280] sm:$0x1] %vm200_vm2, %v1508_v2  ;;  %v2621_v60 = vld [vmem:[%s6010_s4 + $0x168] sm:$0xff]  ;;  %v1926_v10 = vadd.f32 %v2594_v51, %v2588_v34  ;;  %v2617_v48 = vld [vmem:[%s6009_s3 + $0x178] sm:$0x3]  ;;  %v2054_v46 = vadd.f32 %v2622_v29, %v2616_v17  ;;  %v2060_v59 = vstv %s5591_s15  ;;  %v5785_v54 = vadd.f32 %v1929_v19, %v1927_v63  ;;  %v1621_v50 = vpop.permute.xlu0 %1620 }
 0x14e   :  { %2569 = vst.msk [vmem:[%s6011_s5 + $0x2b8] sm:$0xff] %vm97_vm3, %v5673_v14  ;;  %v2618_v12 = vld [vmem:[%s6009_s3 + $0x2e8] sm:$0xff]  ;;  %v2623_v53 = vld [vmem:[%s6010_s4 + $0x178] sm:$0x3]  ;;  %2570 = vst.msk [vmem:[%s6011_s5 + $0x2c0] sm:$0xff] %vm97_vm3, %v5723_v37  ;;  %v2053_v3 = vadd.f32 %v2621_v60, %v2615_v22  ;;  %v1636_v62 = vadd.f32 %v1621_v50, %v5538_v15  ;;  %v1623_v15 = vpop.permute.xlu1 %1622 }
 0x14f   :  { %v2624_v23 = vld [vmem:[%s6010_s4 + $0x2e8] sm:$0xff]  ;;  %2489 = vst.msk [vmem:[%s6011_s5 + $0x278] sm:$0xff] %vm198_vm5, %v1507_v52  ;;  %v2620_v24 = vld [vmem:[%s6009_s3 + $0x2f8] sm:$0x3]  ;;  %v2619_v39 = vld [vmem:[%s6009_s3 + $0x2f0] sm:$0xff]  ;;  %v5787_v26 = vadd.f32 %v1929_v19, %v1926_v10  ;;  %v5800_v42 = vadd.f32 %v2060_v59, %v2054_v46  ;;  %v2055_v61 = vadd.f32 %v2623_v53, %v2617_v48  ;;  %v1637_v32 = vadd.f32 %v1623_v15, %v5536_v20 }
 0x150   :  { %2568 = vst.msk [vmem:[%s6011_s5 + $0x148] sm:$0x3] %vm100_vm1, %v5700_v7  ;;  %2571 = vst.msk [vmem:[%s6011_s5 + $0x2c8] sm:$0x3] %vm100_vm1, %v5721_v58  ;;  %v2626_v25 = vld [vmem:[%s6010_s4 + $0x2f8] sm:$0x3]  ;;  %v2056_v0 = vadd.f32 %v2624_v23, %v2618_v12  ;;  %v5817_v6 = vadd.f32 %v2060_v59, %v2053_v3 }
 0x151   :  { %v2625_v57 = vld [vmem:[%s6010_s4 + $0x2f0] sm:$0xff]  ;;  %2598 = vst.msk [vmem:[%s6011_s5 + $0x158] sm:$0xff] %vm97_vm3, %v5743_v31  ;;  %2597 = vst.msk [vmem:[%s6011_s5 + $0x150] sm:$0xff] %vm97_vm3, %v5764_v30  ;;  %v2058_v43 = vadd.f32 %v2626_v25, %v2620_v24  ;;  %v5831_v2 = vadd.f32 %v2060_v59, %v2055_v61 }
 0x152   :  { %2600 = vst.msk [vmem:[%s6011_s5 + $0x2d0] sm:$0xff] %vm97_vm3, %v5766_v33  ;;  %2601 = vst.msk [vmem:[%s6011_s5 + $0x2d8] sm:$0xff] %vm97_vm3, %v5787_v26  ;;  %v2057_v55 = vadd.f32 %v2625_v57, %v2619_v39  ;;  %v5829_v28 = vadd.f32 %v2060_v59, %v2056_v0  ;;  %v1627_v34 = vpop.permute.xlu1 %1626 }
 0x153   :  { %2599 = vst.msk [vmem:[%s6011_s5 + $0x160] sm:$0x3] %vm100_vm1, %v5783_v4  ;;  %2602 = vst.msk [vmem:[%s6011_s5 + $0x2e0] sm:$0x3] %vm100_vm1, %v5785_v54  ;;  %v5838_v1 = vadd.f32 %v2060_v59, %v2058_v43  ;;  %v1639_v51 = vadd.f32 %v1627_v34, %v5555_v35  ;;  %v1625_v52 = vpop.permute.xlu0 %1624 }
 0x154   :  { %2516 = vst.msk [vmem:[%s6011_s5 + $0x108] sm:$0xfe] %vm196_vm4, %v1634_v27  ;;  %v5840_v13 = vadd.f32 %v2060_v59, %v2057_v55  ;;  %2519 = vst.msk [vmem:[%s6011_s5 + $0x288] sm:$0xfe] %vm196_vm4, %v1637_v32  ;;  %v1638_v9 = vadd.f32 %v1625_v52, %v5557_v11 }
 0x155   :  { %2629 = vst.msk [vmem:[%s6011_s5 + $0x170] sm:$0xff] %vm97_vm3, %v5800_v42  ;;  %2628 = vst.msk [vmem:[%s6011_s5 + $0x168] sm:$0xff] %vm97_vm3, %v5817_v6 }
 0x156   :  { %2517 = vst.msk [vmem:[%s6011_s5 + $0x110] sm:$0xff] %vm198_vm5, %v1635_v44  ;;  %2520 = vst.msk [vmem:[%s6011_s5 + $0x290] sm:$0xff] %vm198_vm5, %v1638_v9 }
 0x157   :  { %2631 = vst.msk [vmem:[%s6011_s5 + $0x2e8] sm:$0xff] %vm97_vm3, %v5829_v28  ;;  %2632 = vst.msk [vmem:[%s6011_s5 + $0x2f0] sm:$0xff] %vm97_vm3, %v5840_v13 }
 0x158   :  { %2630 = vst.msk [vmem:[%s6011_s5 + $0x178] sm:$0x3] %vm100_vm1, %v5831_v2  ;;  %2633 = vst.msk [vmem:[%s6011_s5 + $0x2f8] sm:$0x3] %vm100_vm1, %v5838_v1  ;;  %v1748_v20 = vpop.permute.xlu0 %1747 }
 0x159   :  { %2518 = vst.msk [vmem:[%s6011_s5 + $0x118] sm:$0x1] %vm200_vm2, %v1636_v62  ;;  %2521 = vst.msk [vmem:[%s6011_s5 + $0x298] sm:$0x1] %vm200_vm2, %v1639_v51  ;;  %v1750_v19 = vpop.permute.xlu1 %1749  ;;  %v1765_v17 = vadd.f32 %v1748_v20, %v5580_v47 }
 0x15a   :  { %v1766_v29 = vadd.f32 %v1750_v19, %v5559_v21 }
 0x15b   :  { %2547 = vst.msk [vmem:[%s6011_s5 + $0x120] sm:$0xfe] %vm196_vm4, %v1765_v17 }
 0x15c   :  { %2548 = vst.msk [vmem:[%s6011_s5 + $0x128] sm:$0xff] %vm198_vm5, %v1766_v29  ;;  %v1752_v35 = vpop.permute.xlu0 %1751 }
 0x15d   :  { %v1767_v11 = vadd.f32 %v1752_v35, %v5629_v5 }
 0x15f   :  { %v1754_v22 = vpop.permute.xlu1 %1753  ;;  %2549 = vst.msk [vmem:[%s6011_s5 + $0x130] sm:$0x1] %vm200_vm2, %v1767_v11 }
 0x160   :  { %v1768_v21 = vadd.f32 %v1754_v22, %v5627_v45 }
 0x162   :  { %2550 = vst.msk [vmem:[%s6011_s5 + $0x2a0] sm:$0xfe] %vm196_vm4, %v1768_v21 }
 0x164   :  { %v1758_v47 = vpop.permute.xlu1 %1757 }
 0x165   :  { %v1770_v36 = vadd.f32 %v1758_v47, %v5631_v49  ;;  %v1756_v40 = vpop.permute.xlu0 %1755 }
 0x166   :  { %v1769_v60 = vadd.f32 %v1756_v40, %v5642_v18 }
 0x167   :  { %2552 = vst.msk [vmem:[%s6011_s5 + $0x2b0] sm:$0x1] %vm200_vm2, %v1770_v36 }
 0x168   :  { %2551 = vst.msk [vmem:[%s6011_s5 + $0x2a8] sm:$0xff] %vm198_vm5, %v1769_v60 }
 0x16b   :  { %v1879_v45 = vpop.permute.xlu0 %1878 }
 0x16c   :  { %v1881_v5 = vpop.permute.xlu1 %1880  ;;  %v1896_v12 = vadd.f32 %v1879_v45, %v5646_v8 }
 0x16d   :  { %v1897_v23 = vadd.f32 %v1881_v5, %v5644_v41 }
 0x16e   :  { %2578 = vst.msk [vmem:[%s6011_s5 + $0x138] sm:$0xfe] %vm196_vm4, %v1896_v12 }
 0x16f   :  { %2579 = vst.msk [vmem:[%s6011_s5 + $0x140] sm:$0xff] %vm198_vm5, %v1897_v23  ;;  %v1883_v49 = vpop.permute.xlu0 %1882 }
 0x170   :  { %v1898_v18 = vadd.f32 %v1883_v49, %v5700_v7 }
 0x172   :  { %v1885_v38 = vpop.permute.xlu1 %1884  ;;  %2580 = vst.msk [vmem:[%s6011_s5 + $0x148] sm:$0x1] %vm200_vm2, %v1898_v18 }
 0x173   :  { %v1899_v41 = vadd.f32 %v1885_v38, %v5673_v14 }
 0x175   :  { %2581 = vst.msk [vmem:[%s6011_s5 + $0x2b8] sm:$0xfe] %vm196_vm4, %v1899_v41 }
 0x177   :  { %v1889_v8 = vpop.permute.xlu1 %1888 }
 0x178   :  { %v1901_v63 = vadd.f32 %v1889_v8, %v5721_v58  ;;  %v1887_v10 = vpop.permute.xlu0 %1886 }
 0x179   :  { %v1900_v48 = vadd.f32 %v1887_v10, %v5723_v37 }
 0x17a   :  { %2583 = vst.msk [vmem:[%s6011_s5 + $0x2c8] sm:$0x1] %vm200_vm2, %v1901_v63 }
 0x17b   :  { %2582 = vst.msk [vmem:[%s6011_s5 + $0x2c0] sm:$0xff] %vm198_vm5, %v1900_v48 }
 0x17e   :  { %v2010_v14 = vpop.permute.xlu0 %2009 }
 0x17f   :  { %v2012_v7 = vpop.permute.xlu1 %2011  ;;  %v2027_v53 = vadd.f32 %v2010_v14, %v5764_v30 }
 0x180   :  { %v2028_v24 = vadd.f32 %v2012_v7, %v5743_v31 }
 0x181   :  { %2609 = vst.msk [vmem:[%s6011_s5 + $0x150] sm:$0xfe] %vm196_vm4, %v2027_v53 }
 0x182   :  { %2610 = vst.msk [vmem:[%s6011_s5 + $0x158] sm:$0xff] %vm198_vm5, %v2028_v24  ;;  %v2014_v58 = vpop.permute.xlu0 %2013 }
 0x183   :  { %v2029_v37 = vadd.f32 %v2014_v58, %v5783_v4 }
 0x185   :  { %v2016_v46 = vpop.permute.xlu1 %2015  ;;  %2611 = vst.msk [vmem:[%s6011_s5 + $0x160] sm:$0x1] %vm200_vm2, %v2029_v37 }
 0x186   :  { %v2030_v31 = vadd.f32 %v2016_v46, %v5766_v33 }
 0x188   :  { %2612 = vst.msk [vmem:[%s6011_s5 + $0x2d0] sm:$0xfe] %vm196_vm4, %v2030_v31 }
 0x18b   :  { %v2020_v30 = vpop.permute.xlu1 %2019 }
 0x18c   :  { %v2032_v59 = vadd.f32 %v2020_v30, %v5785_v54  ;;  %v2018_v25 = vpop.permute.xlu0 %2017 }
 0x18d   :  { %v2031_v39 = vadd.f32 %v2018_v25, %v5787_v26 }
 0x18e   :  { %2614 = vst.msk [vmem:[%s6011_s5 + $0x2e0] sm:$0x1] %vm200_vm2, %v2032_v59 }
 0x18f   :  { %2613 = vst.msk [vmem:[%s6011_s5 + $0x2d8] sm:$0xff] %vm198_vm5, %v2031_v39 }
 0x191   :  { %v2141_v33 = vpop.permute.xlu0 %2140 }
 0x192   :  { %v2158_v57 = vadd.f32 %v2141_v33, %v5817_v6 }
 0x193   :  { %v2143_v16 = vpop.permute.xlu1 %2142 }
 0x194   :  { %v2159_v4 = vadd.f32 %v2143_v16, %v5800_v42  ;;  %2640 = vst.msk [vmem:[%s6011_s5 + $0x168] sm:$0xfe] %vm196_vm4, %v2158_v57 }
 0x195   :  { %v2145_v54 = vpop.permute.xlu0 %2144 }
 0x196   :  { %2641 = vst.msk [vmem:[%s6011_s5 + $0x170] sm:$0xff] %vm198_vm5, %v2159_v4  ;;  %v2160_v26 = vadd.f32 %v2145_v54, %v5831_v2 }
 0x198   :  { %v2147_v3 = vpop.permute.xlu1 %2146  ;;  %2642 = vst.msk [vmem:[%s6011_s5 + $0x178] sm:$0x1] %vm200_vm2, %v2160_v26 }
 0x199   :  { %v2161_v27 = vadd.f32 %v2147_v3, %v5829_v28 }
 0x19b   :  { %2643 = vst.msk [vmem:[%s6011_s5 + $0x2e8] sm:$0xfe] %vm196_vm4, %v2161_v27 }
 0x19f   :  { %v2151_v42 = vpop.permute.xlu1 %2150 }
 0x1a0   :  { %v2163_v0 = vadd.f32 %v2151_v42, %v5838_v1  ;;  %v2149_v61 = vpop.permute.xlu0 %2148 }
 0x1a1   :  { %v2162_v56 = vadd.f32 %v2149_v61, %v5840_v13 }
 0x1a2   :  { %2645 = vst.msk [vmem:[%s6011_s5 + $0x2f8] sm:$0x1] %vm200_vm2, %v2163_v0 }
 0x1a3   :  { %2644 = vst.msk [vmem:[%s6011_s5 + $0x2f0] sm:$0xff] %vm198_vm5, %v2162_v56 }
 0x1a4   :  { %2174 = vsyncpa [#allocation3], 1 }
 0x1a5   :  { %2175 = vsyncpa [#allocation5], 1 }

</bundles_post_ra>
